<compile_context>
chip_gen: v7x
topology: tpu7x:2x2x1
jax: 0.10.0
libtpu: 0.0.40
codegen_flags: <defaults>
</compile_context>

<pallas_src>
import jax
import jax.numpy as jnp
from jax.experimental import pallas as pl
from jax.experimental.pallas import tpu as pltpu

BN_EPS = 1e-5
CP = 128          # padded channel width -> lane-dense vregs / MXU tiles


# ------------------------------ fused kernel ------------------------------- #

def _upad_block_kernel(x_ref, s1_ref, h1_ref, w1_ref,
                       s2_ref, h2_ref, w2_ref,
                       aw1_ref, ab1_ref, aw2_ref, ab2_ref,
                       sg0_ref, hg0_ref, wg0_ref,
                       sg1_ref, hg1_ref, wg1_ref,
                       sres_ref, hres_ref, wres_ref,
                       o_ref, tmp_ref, pad_ref, copy_sem):
    _, H, W, Cin = x_ref.shape
    Cp = o_ref.shape[-1]
    M = H * W

    def conv3x3(y2d, w_ref):
        # y2d: (M, Cp) f32, already BN+ReLU'ed (padded channels are zero).
        # Build the "same"-padding halo in VMEM scratch with a local DMA, then
        # do 9 shifted (M, Cp) x (Cp, Cp) bf16 MXU matmuls with f32 accumulate.
        tmp_ref[...] = y2d.reshape(1, H, W, Cp)
        pad_ref[...] = jnp.zeros_like(pad_ref)
        cp = pltpu.make_async_copy(
            tmp_ref, pad_ref.at[:, 1:H + 1, 1:W + 1, :], copy_sem.at[0])
        cp.start()
        cp.wait()
        acc = jnp.zeros((M, Cp), jnp.float32)
        for dh in range(3):
            for dw in range(3):
                patch = pad_ref[:, dh:dh + H, dw:dw + W, :]
                acc = acc + jnp.dot(
                    patch.reshape(M, Cp).astype(jnp.bfloat16), w_ref[dh, dw],
                    preferred_element_type=jnp.float32)
        return acc

    x2 = x_ref[...].reshape(M, Cin).astype(jnp.float32)

    # ---- conv_1 / conv_2: BN -> ReLU -> 1x1 conv, intermediates stay on-chip.
    y = jnp.maximum(x2 * s1_ref[...] + h1_ref[...], 0.0)
    a = jnp.dot(y.astype(jnp.bfloat16), w1_ref[...],
                preferred_element_type=jnp.float32)
    y = jnp.maximum(a * s2_ref[...] + h2_ref[...], 0.0)
    a = jnp.dot(y.astype(jnp.bfloat16), w2_ref[...],
                preferred_element_type=jnp.float32)               # (M, Cp)

    # ---- SelfAttention squeeze-excite (f32; per-sample: grid is over batch).
    pooled = jnp.sum(a, axis=0, keepdims=True) * (1.0 / M)        # (1, Cp)
    hsq = jnp.maximum(
        jnp.dot(pooled, aw1_ref[...], preferred_element_type=jnp.float32)
        + ab1_ref[...], 0.0)
    s = jax.nn.sigmoid(
        jnp.dot(hsq, aw2_ref[...], preferred_element_type=jnp.float32)
        + ab2_ref[...])                                            # (1, Cp)

    # ---- g_conv[0]: attention scale folded into the BN prologue.
    y = jnp.maximum(a * (s * sg0_ref[...]) + hg0_ref[...], 0.0)
    acc = conv3x3(y, wg0_ref)

    # ---- g_conv[1]
    y = jnp.maximum(acc * sg1_ref[...] + hg1_ref[...], 0.0)
    acc = conv3x3(y, wg1_ref)

    # ---- conv_res + residual add fused into the epilogue (no extra kernel).
    yr = jnp.maximum(x2 * sres_ref[...] + hres_ref[...], 0.0)
    r = jnp.dot(yr.astype(jnp.bfloat16), wres_ref[...],
                preferred_element_type=jnp.float32)
    o_ref[...] = (acc + r).reshape(1, H, W, Cp).astype(o_ref.dtype)


# ----------------------------- param preparation --------------------------- #

def _fold_bn(bn, n):
    """Fold inference BatchNorm into (scale, shift), zero-padded to n channels."""
    scale = bn["gamma"] * jax.lax.rsqrt(bn["var"] + BN_EPS)
    shift = bn["beta"] - bn["mean"] * scale
    pad = n - scale.shape[0]
    scale = jnp.pad(scale, (0, pad), constant_values=1.0)
    shift = jnp.pad(shift, (0, pad))
    return scale.reshape(1, n), shift.reshape(1, n)


def _pad2(w, rows, cols):
    return jnp.pad(w, ((0, rows - w.shape[0]), (0, cols - w.shape[1])))


def _pad_hwio(w, cin, cout):
    return jnp.pad(w, ((0, 0), (0, 0),
                       (0, cin - w.shape[2]), (0, cout - w.shape[3])))


def _rep_spec(shape):
    # weights / BN vectors replicated across the batch grid
    return pl.BlockSpec(shape, lambda n: (0,) * len(shape))


# --------------------------------- forward --------------------------------- #

def up_ad_block_forward(x_nchw, params):
    x = jnp.transpose(x_nchw, (0, 2, 3, 1))                   # NCHW -> NHWC
    N, H, W, Cin = x.shape
    out_ch = params["w_g1"].shape[-1]

    # Fold BN, zero-pad channels to CP, cast MXU operands to bf16 (tiny,
    # one-time weight prep done by XLA outside the kernel).
    s1, h1 = _fold_bn(params["bn1"], Cin)
    s2, h2 = _fold_bn(params["bn2"], CP)
    sg0, hg0 = _fold_bn(params["bn_g0"], CP)
    sg1, hg1 = _fold_bn(params["bn_g1"], CP)
    sr, hr = _fold_bn(params["bn_res"], Cin)

    w1 = _pad2(params["w1_conv"][0, 0], Cin, CP).astype(jnp.bfloat16)
    w2 = _pad2(params["w2_conv"][0, 0], CP, CP).astype(jnp.bfloat16)
    wg0 = _pad_hwio(params["w_g0"], CP, CP).astype(jnp.bfloat16)
    wg1 = _pad_hwio(params["w_g1"], CP, CP).astype(jnp.bfloat16)
    wres = _pad2(params["w_res"][0, 0], Cin, CP).astype(jnp.bfloat16)

    att = params["att"]
    aw1 = _pad2(att["w1"], CP, CP)                            # keep f32 (tiny)
    ab1 = _pad2(att["b1"], 1, CP)
    aw2 = _pad2(att["w2"], CP, CP)
    ab2 = _pad2(att["b2"], 1, CP)

    out = pl.pallas_call(
        _upad_block_kernel,
        out_shape=jax.ShapeDtypeStruct((N, H, W, CP), jnp.float32),
        grid=(N,),
        in_specs=[
            pl.BlockSpec((1, H, W, Cin), lambda n: (n, 0, 0, 0)),   # x
            _rep_spec((1, Cin)), _rep_spec((1, Cin)),               # s1, h1
            _rep_spec((Cin, CP)),                                   # w1
            _rep_spec((1, CP)), _rep_spec((1, CP)),                 # s2, h2
            _rep_spec((CP, CP)),                                    # w2
            _rep_spec((CP, CP)), _rep_spec((1, CP)),                # aw1, ab1
            _rep_spec((CP, CP)), _rep_spec((1, CP)),                # aw2, ab2
            _rep_spec((1, CP)), _rep_spec((1, CP)),                 # sg0, hg0
            _rep_spec((3, 3, CP, CP)),                              # wg0
            _rep_spec((1, CP)), _rep_spec((1, CP)),                 # sg1, hg1
            _rep_spec((3, 3, CP, CP)),                              # wg1
            _rep_spec((1, Cin)), _rep_spec((1, Cin)),               # sres, hres
            _rep_spec((Cin, CP)),                                   # wres
        ],
        out_specs=pl.BlockSpec((1, H, W, CP), lambda n: (n, 0, 0, 0)),
        scratch_shapes=[
            pltpu.VMEM((1, H, W, CP), jnp.float32),        # staging for halo DMA
            pltpu.VMEM((1, H + 2, W + 2, CP), jnp.float32),  # zero-padded 3x3 input
            pltpu.SemaphoreType.DMA((1,)),
        ],
        compiler_params=pltpu.CompilerParams(
            dimension_semantics=("parallel",)),
    )(x, s1, h1, w1, s2, h2, w2, aw1, ab1, aw2, ab2,
      sg0, hg0, wg0, sg1, hg1, wg1, sr, hr, wres)

    # Kernel output is lane-dense (128 channels); drop the zero padding here.
    return jnp.transpose(out[:, :, :, :out_ch], (0, 3, 1, 2))   # back to NCHW


# --------------------------- pure-JAX reference ---------------------------- #

def _ref_conv_block(x, bn, w):
    scale = bn["gamma"] / jnp.sqrt(bn["var"] + BN_EPS)
    shift = bn["beta"] - bn["mean"] * scale
    y = jnp.maximum(x * scale.reshape(1, 1, 1, -1) + shift.reshape(1, 1, 1, -1), 0.0)
    kh, kw = w.shape[0], w.shape[1]
    ph, pw = (kh - 1) // 2, (kw - 1) // 2
    return jax.lax.conv_general_dilated(
        y, w, window_strides=(1, 1), padding=[(ph, ph), (pw, pw)],
        dimension_numbers=("NHWC", "HWIO", "NHWC"))


def _ref_attention(x, p):
    pooled = jnp.mean(x, axis=(1, 2))
    h = jnp.maximum(pooled @ p["w1"] + p["b1"], 0.0)
    s = jax.nn.sigmoid(h @ p["w2"] + p["b2"])
    return x * s[:, None, None, :]


def ref_forward(x_nchw, params):
    x = jnp.transpose(x_nchw, (0, 2, 3, 1))
    res = x
    x = _ref_conv_block(x, params["bn1"], params["w1_conv"])
    x = _ref_conv_block(x, params["bn2"], params["w2_conv"])
    x = _ref_attention(x, params["att"])
    x = _ref_conv_block(x, params["bn_g0"], params["w_g0"])
    x = _ref_conv_block(x, params["bn_g1"], params["w_g1"])
    res = _ref_conv_block(res, params["bn_res"], params["w_res"])
    return jnp.transpose(x + res, (0, 3, 1, 2))


# ------------------------------ param builders ----------------------------- #

def _bn_params(key, c):
    k1, k2, k3, k4 = jax.random.split(key, 4)
    return dict(
        gamma=1.0 + 0.1 * jax.random.normal(k1, (c,), jnp.float32),
        beta=0.1 * jax.random.normal(k2, (c,), jnp.float32),
        mean=0.1 * jax.random.normal(k3, (c,), jnp.float32),
        var=0.5 + jnp.abs(jax.random.normal(k4, (c,), jnp.float32)),
    )


def _conv_w(key, cout, cin, kh, kw):
    # Generate in PyTorch OIHW layout, convert to HWIO.
    w = 0.1 * jax.random.normal(key, (cout, cin, kh, kw), jnp.float32)
    return jnp.transpose(w, (2, 3, 1, 0))


def make_params(key, in_ch, out_ch):
    mid = in_ch if in_ch <= out_ch else out_ch
    cr = mid // 8                       # SelfAttention reduction=8
    ks = jax.random.split(key, 14)
    w1_t = 0.1 * jax.random.normal(ks[4], (cr, mid, 1, 1), jnp.float32)
    w2_t = 0.1 * jax.random.normal(ks[6], (mid, cr, 1, 1), jnp.float32)
    att = dict(
        w1=jnp.transpose(w1_t.reshape(cr, mid), (1, 0)),    # (mid, cr)
        b1=0.1 * jax.random.normal(ks[5], (1, cr), jnp.float32),
        w2=jnp.transpose(w2_t.reshape(mid, cr), (1, 0)),    # (cr, mid)
        b2=0.1 * jax.random.normal(ks[7], (1, mid), jnp.float32),
    )
    return dict(
        bn1=_bn_params(ks[0], in_ch),
        w1_conv=_conv_w(ks[1], in_ch // 4, in_ch, 1, 1),
        bn2=_bn_params(ks[2], in_ch // 4),
        w2_conv=_conv_w(ks[3], mid, in_ch // 4, 1, 1),
        att=att,
        bn_g0=_bn_params(ks[8], mid),
        w_g0=_conv_w(ks[9], out_ch, mid, 3, 3),
        bn_g1=_bn_params(ks[10], out_ch),
        w_g1=_conv_w(ks[11], out_ch, out_ch, 3, 3),
        bn_res=_bn_params(ks[12], in_ch),
        w_res=_conv_w(ks[13], out_ch, in_ch, 1, 1),
    )


# ---------------------------------- main ----------------------------------- #

if __name__ == "__main__":
    in_ch, out_ch = 32, 16             # mid = 16, attention hidden = 2
    N, H, W = 2, 16, 16

    root = jax.random.PRNGKey(0)
    kp, kx = jax.random.split(root)
    params = make_params(kp, in_ch, out_ch)
    x = jax.random.normal(kx, (N, in_ch, H, W), jnp.float32)   # NCHW like PyTorch

    fwd = jax.jit(up_ad_block_forward)
    out = jax.block_until_ready(fwd(x, params))

    ref = jax.block_until_ready(ref_forward(x, params))
    assert out.shape == (N, out_ch, H, W), out.shape
    assert bool(jnp.all(jnp.isfinite(out)))
    assert bool(jnp.allclose(out, ref, rtol=5e-2, atol=5e-2)), (
        "Pallas vs reference mismatch, max abs err = "
        + str(float(jnp.max(jnp.abs(out - ref)))))

    print("KERNEL_OK")
</pallas_src>

<mosaic_0001>
module attributes {stable_mosaic.version = 11 : i64} {
  func.func @_upad_block_kernel(%arg0: i32, %arg1: memref<1x16x16x32xf32, #tpu.memory_space<vmem>>, %arg2: memref<1x32xf32, #tpu.memory_space<vmem>>, %arg3: memref<1x32xf32, #tpu.memory_space<vmem>>, %arg4: memref<32x128xbf16, #tpu.memory_space<vmem>>, %arg5: memref<1x128xf32, #tpu.memory_space<vmem>>, %arg6: memref<1x128xf32, #tpu.memory_space<vmem>>, %arg7: memref<128x128xbf16, #tpu.memory_space<vmem>>, %arg8: memref<128x128xf32, #tpu.memory_space<vmem>>, %arg9: memref<1x128xf32, #tpu.memory_space<vmem>>, %arg10: memref<128x128xf32, #tpu.memory_space<vmem>>, %arg11: memref<1x128xf32, #tpu.memory_space<vmem>>, %arg12: memref<1x128xf32, #tpu.memory_space<vmem>>, %arg13: memref<1x128xf32, #tpu.memory_space<vmem>>, %arg14: memref<3x3x128x128xbf16, #tpu.memory_space<vmem>>, %arg15: memref<1x128xf32, #tpu.memory_space<vmem>>, %arg16: memref<1x128xf32, #tpu.memory_space<vmem>>, %arg17: memref<3x3x128x128xbf16, #tpu.memory_space<vmem>>, %arg18: memref<1x32xf32, #tpu.memory_space<vmem>>, %arg19: memref<1x32xf32, #tpu.memory_space<vmem>>, %arg20: memref<32x128xbf16, #tpu.memory_space<vmem>>, %arg21: memref<1x16x16x128xf32, #tpu.memory_space<vmem>>, %arg22: memref<1x16x16x128xf32, #tpu.memory_space<vmem>>, %arg23: memref<1x18x18x128xf32, #tpu.memory_space<vmem>>, %arg24: memref<1x!tpu.dma_semaphore, #tpu.memory_space<semaphore_mem>>) attributes {dimension_semantics = [#tpu.dimension_semantics<parallel>], iteration_bounds = array<i64: 2>, scalar_prefetch = 0 : i64, scratch_operands = 3 : i64, tpu.core_type = #tpu.core_type<tc>, window_params = [{transform_indices = @transform_0, window_bounds = array<i64: 1, 16, 16, 32>}, {pipeline_mode = #tpu.pipeline_mode<synchronous>, transform_indices = @transform_1, window_bounds = array<i64: 1, 32>}, {pipeline_mode = #tpu.pipeline_mode<synchronous>, transform_indices = @transform_2, window_bounds = array<i64: 1, 32>}, {pipeline_mode = #tpu.pipeline_mode<synchronous>, transform_indices = @transform_3, window_bounds = array<i64: 32, 128>}, {pipeline_mode = #tpu.pipeline_mode<synchronous>, transform_indices = @transform_4, window_bounds = array<i64: 1, 128>}, {pipeline_mode = #tpu.pipeline_mode<synchronous>, transform_indices = @transform_5, window_bounds = array<i64: 1, 128>}, {pipeline_mode = #tpu.pipeline_mode<synchronous>, transform_indices = @transform_6, window_bounds = array<i64: 128, 128>}, {pipeline_mode = #tpu.pipeline_mode<synchronous>, transform_indices = @transform_7, window_bounds = array<i64: 128, 128>}, {pipeline_mode = #tpu.pipeline_mode<synchronous>, transform_indices = @transform_8, window_bounds = array<i64: 1, 128>}, {pipeline_mode = #tpu.pipeline_mode<synchronous>, transform_indices = @transform_9, window_bounds = array<i64: 128, 128>}, {pipeline_mode = #tpu.pipeline_mode<synchronous>, transform_indices = @transform_10, window_bounds = array<i64: 1, 128>}, {pipeline_mode = #tpu.pipeline_mode<synchronous>, transform_indices = @transform_11, window_bounds = array<i64: 1, 128>}, {pipeline_mode = #tpu.pipeline_mode<synchronous>, transform_indices = @transform_12, window_bounds = array<i64: 1, 128>}, {pipeline_mode = #tpu.pipeline_mode<synchronous>, transform_indices = @transform_13, window_bounds = array<i64: 3, 3, 128, 128>}, {pipeline_mode = #tpu.pipeline_mode<synchronous>, transform_indices = @transform_14, window_bounds = array<i64: 1, 128>}, {pipeline_mode = #tpu.pipeline_mode<synchronous>, transform_indices = @transform_15, window_bounds = array<i64: 1, 128>}, {pipeline_mode = #tpu.pipeline_mode<synchronous>, transform_indices = @transform_16, window_bounds = array<i64: 3, 3, 128, 128>}, {pipeline_mode = #tpu.pipeline_mode<synchronous>, transform_indices = @transform_17, window_bounds = array<i64: 1, 32>}, {pipeline_mode = #tpu.pipeline_mode<synchronous>, transform_indices = @transform_18, window_bounds = array<i64: 1, 32>}, {pipeline_mode = #tpu.pipeline_mode<synchronous>, transform_indices = @transform_19, window_bounds = array<i64: 32, 128>}, {transform_indices = @transform_20, window_bounds = array<i64: 1, 16, 16, 128>}]} {
    %c0 = arith.constant 0 : index
    %c0_0 = arith.constant 0 : index
    %c0_1 = arith.constant 0 : index
    %c0_2 = arith.constant 0 : index
    %0 = vector.load %arg1[%c0, %c0_0, %c0_1, %c0_2] : memref<1x16x16x32xf32, #tpu.memory_space<vmem>>, vector<1x16x16x32xf32>
    %1 = vector.shape_cast %0 : vector<1x16x16x32xf32> to vector<256x32xf32>
    %c0_3 = arith.constant 0 : index
    %c0_4 = arith.constant 0 : index
    %2 = vector.load %arg2[%c0_3, %c0_4] : memref<1x32xf32, #tpu.memory_space<vmem>>, vector<1x32xf32>
    %3 = vector.broadcast %2 : vector<1x32xf32> to vector<256x32xf32>
    %4 = arith.mulf %1, %3 : vector<256x32xf32>
    %c0_5 = arith.constant 0 : index
    %c0_6 = arith.constant 0 : index
    %5 = vector.load %arg3[%c0_5, %c0_6] : memref<1x32xf32, #tpu.memory_space<vmem>>, vector<1x32xf32>
    %6 = vector.broadcast %5 : vector<1x32xf32> to vector<256x32xf32>
    %7 = arith.addf %4, %6 : vector<256x32xf32>
    %cst = arith.constant 0.000000e+00 : f32
    %8 = vector.broadcast %cst : f32 to vector<256x32xf32>
    %9 = arith.maximumf %7, %8 : vector<256x32xf32>
    %10 = arith.truncf %9 : vector<256x32xf32> to vector<256x32xbf16>
    %c0_7 = arith.constant 0 : index
    %c0_8 = arith.constant 0 : index
    %11 = vector.load %arg4[%c0_7, %c0_8] : memref<32x128xbf16, #tpu.memory_space<vmem>>, vector<32x128xbf16>
    %cst_9 = arith.constant dense<0.000000e+00> : vector<256x128xf32>
    %12 = tpu.matmul %10, %11, %cst_9 {dimension_numbers = #tpu.dot_dimension_numbers<[1], [0], [0], [1], [0, 0, 1, 1], [], []>} : vector<256x32xbf16>, vector<32x128xbf16>, vector<256x128xf32> -> vector<256x128xf32>
    %c0_10 = arith.constant 0 : index
    %c0_11 = arith.constant 0 : index
    %13 = vector.load %arg5[%c0_10, %c0_11] : memref<1x128xf32, #tpu.memory_space<vmem>>, vector<1x128xf32>
    %14 = vector.broadcast %13 : vector<1x128xf32> to vector<256x128xf32>
    %15 = arith.mulf %12, %14 : vector<256x128xf32>
    %c0_12 = arith.constant 0 : index
    %c0_13 = arith.constant 0 : index
    %16 = vector.load %arg6[%c0_12, %c0_13] : memref<1x128xf32, #tpu.memory_space<vmem>>, vector<1x128xf32>
    %17 = vector.broadcast %16 : vector<1x128xf32> to vector<256x128xf32>
    %18 = arith.addf %15, %17 : vector<256x128xf32>
    %cst_14 = arith.constant 0.000000e+00 : f32
    %19 = vector.broadcast %cst_14 : f32 to vector<256x128xf32>
    %20 = arith.maximumf %18, %19 : vector<256x128xf32>
    %21 = arith.truncf %20 : vector<256x128xf32> to vector<256x128xbf16>
    %c0_15 = arith.constant 0 : index
    %c0_16 = arith.constant 0 : index
    %22 = vector.load %arg7[%c0_15, %c0_16] : memref<128x128xbf16, #tpu.memory_space<vmem>>, vector<128x128xbf16>
    %cst_17 = arith.constant dense<0.000000e+00> : vector<256x128xf32>
    %23 = tpu.matmul %21, %22, %cst_17 {dimension_numbers = #tpu.dot_dimension_numbers<[1], [0], [0], [1], [0, 0, 1, 1], [], []>} : vector<256x128xbf16>, vector<128x128xbf16>, vector<256x128xf32> -> vector<256x128xf32>
    %cst_18 = arith.constant dense<0.000000e+00> : vector<128xf32>
    %24 = vector.multi_reduction <add>, %23, %cst_18 [0] : vector<256x128xf32> to vector<128xf32>
    %25 = vector.shape_cast %24 : vector<128xf32> to vector<1x128xf32>
    %cst_19 = arith.constant 3.906250e-03 : f32
    %26 = vector.broadcast %cst_19 : f32 to vector<1x128xf32>
    %27 = arith.mulf %25, %26 : vector<1x128xf32>
    %c0_20 = arith.constant 0 : index
    %c0_21 = arith.constant 0 : index
    %28 = vector.load %arg8[%c0_20, %c0_21] : memref<128x128xf32, #tpu.memory_space<vmem>>, vector<128x128xf32>
    %cst_22 = arith.constant dense<0.000000e+00> : vector<1x128xf32>
    %29 = tpu.matmul %27, %28, %cst_22 {dimension_numbers = #tpu.dot_dimension_numbers<[1], [0], [0], [1], [0, 0, 1, 1], [], []>} : vector<1x128xf32>, vector<128x128xf32>, vector<1x128xf32> -> vector<1x128xf32>
    %c0_23 = arith.constant 0 : index
    %c0_24 = arith.constant 0 : index
    %30 = vector.load %arg9[%c0_23, %c0_24] : memref<1x128xf32, #tpu.memory_space<vmem>>, vector<1x128xf32>
    %31 = arith.addf %29, %30 : vector<1x128xf32>
    %cst_25 = arith.constant 0.000000e+00 : f32
    %32 = vector.broadcast %cst_25 : f32 to vector<1x128xf32>
    %33 = arith.maximumf %31, %32 : vector<1x128xf32>
    %c0_26 = arith.constant 0 : index
    %c0_27 = arith.constant 0 : index
    %34 = vector.load %arg10[%c0_26, %c0_27] : memref<128x128xf32, #tpu.memory_space<vmem>>, vector<128x128xf32>
    %cst_28 = arith.constant dense<0.000000e+00> : vector<1x128xf32>
    %35 = tpu.matmul %33, %34, %cst_28 {dimension_numbers = #tpu.dot_dimension_numbers<[1], [0], [0], [1], [0, 0, 1, 1], [], []>} : vector<1x128xf32>, vector<128x128xf32>, vector<1x128xf32> -> vector<1x128xf32>
    %c0_29 = arith.constant 0 : index
    %c0_30 = arith.constant 0 : index
    %36 = vector.load %arg11[%c0_29, %c0_30] : memref<1x128xf32, #tpu.memory_space<vmem>>, vector<1x128xf32>
    %37 = arith.addf %35, %36 : vector<1x128xf32>
    %38 = arith.negf %37 : vector<1x128xf32>
    %39 = math.exp %38 : vector<1x128xf32>
    %cst_31 = arith.constant 1.000000e+00 : f32
    %40 = vector.broadcast %cst_31 : f32 to vector<1x128xf32>
    %41 = arith.addf %40, %39 : vector<1x128xf32>
    %42 = arith.divf %40, %41 : vector<1x128xf32>
    %c0_32 = arith.constant 0 : index
    %c0_33 = arith.constant 0 : index
    %43 = vector.load %arg12[%c0_32, %c0_33] : memref<1x128xf32, #tpu.memory_space<vmem>>, vector<1x128xf32>
    %44 = arith.mulf %42, %43 : vector<1x128xf32>
    %45 = vector.broadcast %44 : vector<1x128xf32> to vector<256x128xf32>
    %46 = arith.mulf %23, %45 : vector<256x128xf32>
    %c0_34 = arith.constant 0 : index
    %c0_35 = arith.constant 0 : index
    %47 = vector.load %arg13[%c0_34, %c0_35] : memref<1x128xf32, #tpu.memory_space<vmem>>, vector<1x128xf32>
    %48 = vector.broadcast %47 : vector<1x128xf32> to vector<256x128xf32>
    %49 = arith.addf %46, %48 : vector<256x128xf32>
    %cst_36 = arith.constant 0.000000e+00 : f32
    %50 = vector.broadcast %cst_36 : f32 to vector<256x128xf32>
    %51 = arith.maximumf %49, %50 : vector<256x128xf32>
    %52 = vector.shape_cast %51 : vector<256x128xf32> to vector<1x16x16x128xf32>
    %c0_37 = arith.constant 0 : index
    %c0_38 = arith.constant 0 : index
    %c0_39 = arith.constant 0 : index
    %c0_40 = arith.constant 0 : index
    %53 = vector.load %arg22[%c0_37, %c0_38, %c0_39, %c0_40] : memref<1x16x16x128xf32, #tpu.memory_space<vmem>>, vector<1x16x16x128xf32>
    tpu.vector_store %arg22[%c0_37, %c0_38, %c0_39, %c0_40], %52 {strides = array<i32>} : memref<1x16x16x128xf32, #tpu.memory_space<vmem>>, vector<1x16x16x128xf32>,
    %cst_41 = arith.constant 0.000000e+00 : f32
    %54 = vector.broadcast %cst_41 : f32 to vector<1x18x18x128xf32>
    %c0_42 = arith.constant 0 : index
    %c0_43 = arith.constant 0 : index
    %c0_44 = arith.constant 0 : index
    %c0_45 = arith.constant 0 : index
    %55 = vector.load %arg23[%c0_42, %c0_43, %c0_44, %c0_45] : memref<1x18x18x128xf32, #tpu.memory_space<vmem>>, vector<1x18x18x128xf32>
    tpu.vector_store %arg23[%c0_42, %c0_43, %c0_44, %c0_45], %54 {strides = array<i32>} : memref<1x18x18x128xf32, #tpu.memory_space<vmem>>, vector<1x18x18x128xf32>,
    %c0_i32 = arith.constant 0 : i32
    %c0_i32_46 = arith.constant 0 : i32
    %c1_i32 = arith.constant 1 : i32
    %c1_i32_47 = arith.constant 1 : i32
    %c0_i32_48 = arith.constant 0 : i32
    %56 = tpu.memref_slice %arg23[%c0_i32_46, %c1_i32, %c1_i32_47, %c0_i32_48] : memref<1x18x18x128xf32, #tpu.memory_space<vmem>> -> memref<1x16x16x128xf32, #tpu.memory_space<vmem>>
    %57 = tpu.memref_slice %arg24[%c0_i32] : memref<1x!tpu.dma_semaphore, #tpu.memory_space<semaphore_mem>> -> memref<1x!tpu.dma_semaphore, #tpu.memory_space<semaphore_mem>>
    %58 = tpu.memref_squeeze %57 : memref<1x!tpu.dma_semaphore, #tpu.memory_space<semaphore_mem>> -> memref<!tpu.dma_semaphore, #tpu.memory_space<semaphore_mem>>
    tpu.enqueue_dma source(%arg22 : memref<1x16x16x128xf32, #tpu.memory_space<vmem>>) target(%56 : memref<1x16x16x128xf32, #tpu.memory_space<vmem>>) target_semaphore(%58 : memref<!tpu.dma_semaphore, #tpu.memory_space<semaphore_mem>>)
    %c0_i32_49 = arith.constant 0 : i32
    %c0_i32_50 = arith.constant 0 : i32
    %c1_i32_51 = arith.constant 1 : i32
    %c1_i32_52 = arith.constant 1 : i32
    %c0_i32_53 = arith.constant 0 : i32
    %59 = tpu.memref_slice %arg23[%c0_i32_50, %c1_i32_51, %c1_i32_52, %c0_i32_53] : memref<1x18x18x128xf32, #tpu.memory_space<vmem>> -> memref<1x16x16x128xf32, #tpu.memory_space<vmem>>
    %60 = tpu.memref_slice %arg24[%c0_i32_49] : memref<1x!tpu.dma_semaphore, #tpu.memory_space<semaphore_mem>> -> memref<1x!tpu.dma_semaphore, #tpu.memory_space<semaphore_mem>>
    %61 = tpu.memref_squeeze %60 : memref<1x!tpu.dma_semaphore, #tpu.memory_space<semaphore_mem>> -> memref<!tpu.dma_semaphore, #tpu.memory_space<semaphore_mem>>
    tpu.wait_dma2 semaphore(%61 : memref<!tpu.dma_semaphore, #tpu.memory_space<semaphore_mem>>) src(%arg22 : memref<1x16x16x128xf32, #tpu.memory_space<vmem>>) dst(%59 : memref<1x16x16x128xf32, #tpu.memory_space<vmem>>)
    %cst_54 = arith.constant 0.000000e+00 : f32
    %62 = vector.broadcast %cst_54 : f32 to vector<256x128xf32>
    %c0_55 = arith.constant 0 : index
    %c0_56 = arith.constant 0 : index
    %c0_57 = arith.constant 0 : index
    %c0_58 = arith.constant 0 : index
    %63 = vector.load %arg23[%c0_55, %c0_56, %c0_57, %c0_58] : memref<1x18x18x128xf32, #tpu.memory_space<vmem>>, vector<1x16x16x128xf32>
    %64 = vector.shape_cast %63 : vector<1x16x16x128xf32> to vector<256x128xf32>
    %65 = arith.truncf %64 : vector<256x128xf32> to vector<256x128xbf16>
    %c0_59 = arith.constant 0 : index
    %c0_60 = arith.constant 0 : index
    %c0_61 = arith.constant 0 : index
    %c0_62 = arith.constant 0 : index
    %66 = vector.load %arg14[%c0_59, %c0_60, %c0_61, %c0_62] : memref<3x3x128x128xbf16, #tpu.memory_space<vmem>>, vector<1x1x128x128xbf16>
    %67 = vector.shape_cast %66 : vector<1x1x128x128xbf16> to vector<128x128xbf16>
    %cst_63 = arith.constant dense<0.000000e+00> : vector<256x128xf32>
    %68 = tpu.matmul %65, %67, %cst_63 {dimension_numbers = #tpu.dot_dimension_numbers<[1], [0], [0], [1], [0, 0, 1, 1], [], []>} : vector<256x128xbf16>, vector<128x128xbf16>, vector<256x128xf32> -> vector<256x128xf32>
    %69 = arith.addf %62, %68 : vector<256x128xf32>
    %c0_64 = arith.constant 0 : index
    %c0_65 = arith.constant 0 : index
    %c1 = arith.constant 1 : index
    %c0_66 = arith.constant 0 : index
    %70 = vector.load %arg23[%c0_64, %c0_65, %c1, %c0_66] : memref<1x18x18x128xf32, #tpu.memory_space<vmem>>, vector<1x16x16x128xf32>
    %71 = vector.shape_cast %70 : vector<1x16x16x128xf32> to vector<256x128xf32>
    %72 = arith.truncf %71 : vector<256x128xf32> to vector<256x128xbf16>
    %c0_67 = arith.constant 0 : index
    %c1_68 = arith.constant 1 : index
    %c0_69 = arith.constant 0 : index
    %c0_70 = arith.constant 0 : index
    %73 = vector.load %arg14[%c0_67, %c1_68, %c0_69, %c0_70] : memref<3x3x128x128xbf16, #tpu.memory_space<vmem>>, vector<1x1x128x128xbf16>
    %74 = vector.shape_cast %73 : vector<1x1x128x128xbf16> to vector<128x128xbf16>
    %cst_71 = arith.constant dense<0.000000e+00> : vector<256x128xf32>
    %75 = tpu.matmul %72, %74, %cst_71 {dimension_numbers = #tpu.dot_dimension_numbers<[1], [0], [0], [1], [0, 0, 1, 1], [], []>} : vector<256x128xbf16>, vector<128x128xbf16>, vector<256x128xf32> -> vector<256x128xf32>
    %76 = arith.addf %69, %75 : vector<256x128xf32>
    %c0_72 = arith.constant 0 : index
    %c0_73 = arith.constant 0 : index
    %c2 = arith.constant 2 : index
    %c0_74 = arith.constant 0 : index
    %77 = vector.load %arg23[%c0_72, %c0_73, %c2, %c0_74] : memref<1x18x18x128xf32, #tpu.memory_space<vmem>>, vector<1x16x16x128xf32>
    %78 = vector.shape_cast %77 : vector<1x16x16x128xf32> to vector<256x128xf32>
    %79 = arith.truncf %78 : vector<256x128xf32> to vector<256x128xbf16>
    %c0_75 = arith.constant 0 : index
    %c2_76 = arith.constant 2 : index
    %c0_77 = arith.constant 0 : index
    %c0_78 = arith.constant 0 : index
    %80 = vector.load %arg14[%c0_75, %c2_76, %c0_77, %c0_78] : memref<3x3x128x128xbf16, #tpu.memory_space<vmem>>, vector<1x1x128x128xbf16>
    %81 = vector.shape_cast %80 : vector<1x1x128x128xbf16> to vector<128x128xbf16>
    %cst_79 = arith.constant dense<0.000000e+00> : vector<256x128xf32>
    %82 = tpu.matmul %79, %81, %cst_79 {dimension_numbers = #tpu.dot_dimension_numbers<[1], [0], [0], [1], [0, 0, 1, 1], [], []>} : vector<256x128xbf16>, vector<128x128xbf16>, vector<256x128xf32> -> vector<256x128xf32>
    %83 = arith.addf %76, %82 : vector<256x128xf32>
    %c0_80 = arith.constant 0 : index
    %c1_81 = arith.constant 1 : index
    %c0_82 = arith.constant 0 : index
    %c0_83 = arith.constant 0 : index
    %84 = vector.load %arg23[%c0_80, %c1_81, %c0_82, %c0_83] : memref<1x18x18x128xf32, #tpu.memory_space<vmem>>, vector<1x16x16x128xf32>
    %85 = vector.shape_cast %84 : vector<1x16x16x128xf32> to vector<256x128xf32>
    %86 = arith.truncf %85 : vector<256x128xf32> to vector<256x128xbf16>
    %c1_84 = arith.constant 1 : index
    %c0_85 = arith.constant 0 : index
    %c0_86 = arith.constant 0 : index
    %c0_87 = arith.constant 0 : index
    %87 = vector.load %arg14[%c1_84, %c0_85, %c0_86, %c0_87] : memref<3x3x128x128xbf16, #tpu.memory_space<vmem>>, vector<1x1x128x128xbf16>
    %88 = vector.shape_cast %87 : vector<1x1x128x128xbf16> to vector<128x128xbf16>
    %cst_88 = arith.constant dense<0.000000e+00> : vector<256x128xf32>
    %89 = tpu.matmul %86, %88, %cst_88 {dimension_numbers = #tpu.dot_dimension_numbers<[1], [0], [0], [1], [0, 0, 1, 1], [], []>} : vector<256x128xbf16>, vector<128x128xbf16>, vector<256x128xf32> -> vector<256x128xf32>
    %90 = arith.addf %83, %89 : vector<256x128xf32>
    %c0_89 = arith.constant 0 : index
    %c1_90 = arith.constant 1 : index
    %c1_91 = arith.constant 1 : index
    %c0_92 = arith.constant 0 : index
    %91 = vector.load %arg23[%c0_89, %c1_90, %c1_91, %c0_92] : memref<1x18x18x128xf32, #tpu.memory_space<vmem>>, vector<1x16x16x128xf32>
    %92 = vector.shape_cast %91 : vector<1x16x16x128xf32> to vector<256x128xf32>
    %93 = arith.truncf %92 : vector<256x128xf32> to vector<256x128xbf16>
    %c1_93 = arith.constant 1 : index
    %c1_94 = arith.constant 1 : index
    %c0_95 = arith.constant 0 : index
    %c0_96 = arith.constant 0 : index
    %94 = vector.load %arg14[%c1_93, %c1_94, %c0_95, %c0_96] : memref<3x3x128x128xbf16, #tpu.memory_space<vmem>>, vector<1x1x128x128xbf16>
    %95 = vector.shape_cast %94 : vector<1x1x128x128xbf16> to vector<128x128xbf16>
    %cst_97 = arith.constant dense<0.000000e+00> : vector<256x128xf32>
    %96 = tpu.matmul %93, %95, %cst_97 {dimension_numbers = #tpu.dot_dimension_numbers<[1], [0], [0], [1], [0, 0, 1, 1], [], []>} : vector<256x128xbf16>, vector<128x128xbf16>, vector<256x128xf32> -> vector<256x128xf32>
    %97 = arith.addf %90, %96 : vector<256x128xf32>
    %c0_98 = arith.constant 0 : index
    %c1_99 = arith.constant 1 : index
    %c2_100 = arith.constant 2 : index
    %c0_101 = arith.constant 0 : index
    %98 = vector.load %arg23[%c0_98, %c1_99, %c2_100, %c0_101] : memref<1x18x18x128xf32, #tpu.memory_space<vmem>>, vector<1x16x16x128xf32>
    %99 = vector.shape_cast %98 : vector<1x16x16x128xf32> to vector<256x128xf32>
    %100 = arith.truncf %99 : vector<256x128xf32> to vector<256x128xbf16>
    %c1_102 = arith.constant 1 : index
    %c2_103 = arith.constant 2 : index
    %c0_104 = arith.constant 0 : index
    %c0_105 = arith.constant 0 : index
    %101 = vector.load %arg14[%c1_102, %c2_103, %c0_104, %c0_105] : memref<3x3x128x128xbf16, #tpu.memory_space<vmem>>, vector<1x1x128x128xbf16>
    %102 = vector.shape_cast %101 : vector<1x1x128x128xbf16> to vector<128x128xbf16>
    %cst_106 = arith.constant dense<0.000000e+00> : vector<256x128xf32>
    %103 = tpu.matmul %100, %102, %cst_106 {dimension_numbers = #tpu.dot_dimension_numbers<[1], [0], [0], [1], [0, 0, 1, 1], [], []>} : vector<256x128xbf16>, vector<128x128xbf16>, vector<256x128xf32> -> vector<256x128xf32>
    %104 = arith.addf %97, %103 : vector<256x128xf32>
    %c0_107 = arith.constant 0 : index
    %c2_108 = arith.constant 2 : index
    %c0_109 = arith.constant 0 : index
    %c0_110 = arith.constant 0 : index
    %105 = vector.load %arg23[%c0_107, %c2_108, %c0_109, %c0_110] : memref<1x18x18x128xf32, #tpu.memory_space<vmem>>, vector<1x16x16x128xf32>
    %106 = vector.shape_cast %105 : vector<1x16x16x128xf32> to vector<256x128xf32>
    %107 = arith.truncf %106 : vector<256x128xf32> to vector<256x128xbf16>
    %c2_111 = arith.constant 2 : index
    %c0_112 = arith.constant 0 : index
    %c0_113 = arith.constant 0 : index
    %c0_114 = arith.constant 0 : index
    %108 = vector.load %arg14[%c2_111, %c0_112, %c0_113, %c0_114] : memref<3x3x128x128xbf16, #tpu.memory_space<vmem>>, vector<1x1x128x128xbf16>
    %109 = vector.shape_cast %108 : vector<1x1x128x128xbf16> to vector<128x128xbf16>
    %cst_115 = arith.constant dense<0.000000e+00> : vector<256x128xf32>
    %110 = tpu.matmul %107, %109, %cst_115 {dimension_numbers = #tpu.dot_dimension_numbers<[1], [0], [0], [1], [0, 0, 1, 1], [], []>} : vector<256x128xbf16>, vector<128x128xbf16>, vector<256x128xf32> -> vector<256x128xf32>
    %111 = arith.addf %104, %110 : vector<256x128xf32>
    %c0_116 = arith.constant 0 : index
    %c2_117 = arith.constant 2 : index
    %c1_118 = arith.constant 1 : index
    %c0_119 = arith.constant 0 : index
    %112 = vector.load %arg23[%c0_116, %c2_117, %c1_118, %c0_119] : memref<1x18x18x128xf32, #tpu.memory_space<vmem>>, vector<1x16x16x128xf32>
    %113 = vector.shape_cast %112 : vector<1x16x16x128xf32> to vector<256x128xf32>
    %114 = arith.truncf %113 : vector<256x128xf32> to vector<256x128xbf16>
    %c2_120 = arith.constant 2 : index
    %c1_121 = arith.constant 1 : index
    %c0_122 = arith.constant 0 : index
    %c0_123 = arith.constant 0 : index
    %115 = vector.load %arg14[%c2_120, %c1_121, %c0_122, %c0_123] : memref<3x3x128x128xbf16, #tpu.memory_space<vmem>>, vector<1x1x128x128xbf16>
    %116 = vector.shape_cast %115 : vector<1x1x128x128xbf16> to vector<128x128xbf16>
    %cst_124 = arith.constant dense<0.000000e+00> : vector<256x128xf32>
    %117 = tpu.matmul %114, %116, %cst_124 {dimension_numbers = #tpu.dot_dimension_numbers<[1], [0], [0], [1], [0, 0, 1, 1], [], []>} : vector<256x128xbf16>, vector<128x128xbf16>, vector<256x128xf32> -> vector<256x128xf32>
    %118 = arith.addf %111, %117 : vector<256x128xf32>
    %c0_125 = arith.constant 0 : index
    %c2_126 = arith.constant 2 : index
    %c2_127 = arith.constant 2 : index
    %c0_128 = arith.constant 0 : index
    %119 = vector.load %arg23[%c0_125, %c2_126, %c2_127, %c0_128] : memref<1x18x18x128xf32, #tpu.memory_space<vmem>>, vector<1x16x16x128xf32>
    %120 = vector.shape_cast %119 : vector<1x16x16x128xf32> to vector<256x128xf32>
    %121 = arith.truncf %120 : vector<256x128xf32> to vector<256x128xbf16>
    %c2_129 = arith.constant 2 : index
    %c2_130 = arith.constant 2 : index
    %c0_131 = arith.constant 0 : index
    %c0_132 = arith.constant 0 : index
    %122 = vector.load %arg14[%c2_129, %c2_130, %c0_131, %c0_132] : memref<3x3x128x128xbf16, #tpu.memory_space<vmem>>, vector<1x1x128x128xbf16>
    %123 = vector.shape_cast %122 : vector<1x1x128x128xbf16> to vector<128x128xbf16>
    %cst_133 = arith.constant dense<0.000000e+00> : vector<256x128xf32>
    %124 = tpu.matmul %121, %123, %cst_133 {dimension_numbers = #tpu.dot_dimension_numbers<[1], [0], [0], [1], [0, 0, 1, 1], [], []>} : vector<256x128xbf16>, vector<128x128xbf16>, vector<256x128xf32> -> vector<256x128xf32>
    %125 = arith.addf %118, %124 : vector<256x128xf32>
    %c0_134 = arith.constant 0 : index
    %c0_135 = arith.constant 0 : index
    %126 = vector.load %arg15[%c0_134, %c0_135] : memref<1x128xf32, #tpu.memory_space<vmem>>, vector<1x128xf32>
    %127 = vector.broadcast %126 : vector<1x128xf32> to vector<256x128xf32>
    %128 = arith.mulf %125, %127 : vector<256x128xf32>
    %c0_136 = arith.constant 0 : index
    %c0_137 = arith.constant 0 : index
    %129 = vector.load %arg16[%c0_136, %c0_137] : memref<1x128xf32, #tpu.memory_space<vmem>>, vector<1x128xf32>
    %130 = vector.broadcast %129 : vector<1x128xf32> to vector<256x128xf32>
    %131 = arith.addf %128, %130 : vector<256x128xf32>
    %cst_138 = arith.constant 0.000000e+00 : f32
    %132 = vector.broadcast %cst_138 : f32 to vector<256x128xf32>
    %133 = arith.maximumf %131, %132 : vector<256x128xf32>
    %134 = vector.shape_cast %133 : vector<256x128xf32> to vector<1x16x16x128xf32>
    %c0_139 = arith.constant 0 : index
    %c0_140 = arith.constant 0 : index
    %c0_141 = arith.constant 0 : index
    %c0_142 = arith.constant 0 : index
    %135 = vector.load %arg22[%c0_139, %c0_140, %c0_141, %c0_142] : memref<1x16x16x128xf32, #tpu.memory_space<vmem>>, vector<1x16x16x128xf32>
    tpu.vector_store %arg22[%c0_139, %c0_140, %c0_141, %c0_142], %134 {strides = array<i32>} : memref<1x16x16x128xf32, #tpu.memory_space<vmem>>, vector<1x16x16x128xf32>,
    %cst_143 = arith.constant 0.000000e+00 : f32
    %136 = vector.broadcast %cst_143 : f32 to vector<1x18x18x128xf32>
    %c0_144 = arith.constant 0 : index
    %c0_145 = arith.constant 0 : index
    %c0_146 = arith.constant 0 : index
    %c0_147 = arith.constant 0 : index
    %137 = vector.load %arg23[%c0_144, %c0_145, %c0_146, %c0_147] : memref<1x18x18x128xf32, #tpu.memory_space<vmem>>, vector<1x18x18x128xf32>
    tpu.vector_store %arg23[%c0_144, %c0_145, %c0_146, %c0_147], %136 {strides = array<i32>} : memref<1x18x18x128xf32, #tpu.memory_space<vmem>>, vector<1x18x18x128xf32>,
    %c0_i32_148 = arith.constant 0 : i32
    %c0_i32_149 = arith.constant 0 : i32
    %c1_i32_150 = arith.constant 1 : i32
    %c1_i32_151 = arith.constant 1 : i32
    %c0_i32_152 = arith.constant 0 : i32
    %138 = tpu.memref_slice %arg23[%c0_i32_149, %c1_i32_150, %c1_i32_151, %c0_i32_152] : memref<1x18x18x128xf32, #tpu.memory_space<vmem>> -> memref<1x16x16x128xf32, #tpu.memory_space<vmem>>
    %139 = tpu.memref_slice %arg24[%c0_i32_148] : memref<1x!tpu.dma_semaphore, #tpu.memory_space<semaphore_mem>> -> memref<1x!tpu.dma_semaphore, #tpu.memory_space<semaphore_mem>>
    %140 = tpu.memref_squeeze %139 : memref<1x!tpu.dma_semaphore, #tpu.memory_space<semaphore_mem>> -> memref<!tpu.dma_semaphore, #tpu.memory_space<semaphore_mem>>
    tpu.enqueue_dma source(%arg22 : memref<1x16x16x128xf32, #tpu.memory_space<vmem>>) target(%138 : memref<1x16x16x128xf32, #tpu.memory_space<vmem>>) target_semaphore(%140 : memref<!tpu.dma_semaphore, #tpu.memory_space<semaphore_mem>>)
    %c0_i32_153 = arith.constant 0 : i32
    %c0_i32_154 = arith.constant 0 : i32
    %c1_i32_155 = arith.constant 1 : i32
    %c1_i32_156 = arith.constant 1 : i32
    %c0_i32_157 = arith.constant 0 : i32
    %141 = tpu.memref_slice %arg23[%c0_i32_154, %c1_i32_155, %c1_i32_156, %c0_i32_157] : memref<1x18x18x128xf32, #tpu.memory_space<vmem>> -> memref<1x16x16x128xf32, #tpu.memory_space<vmem>>
    %142 = tpu.memref_slice %arg24[%c0_i32_153] : memref<1x!tpu.dma_semaphore, #tpu.memory_space<semaphore_mem>> -> memref<1x!tpu.dma_semaphore, #tpu.memory_space<semaphore_mem>>
    %143 = tpu.memref_squeeze %142 : memref<1x!tpu.dma_semaphore, #tpu.memory_space<semaphore_mem>> -> memref<!tpu.dma_semaphore, #tpu.memory_space<semaphore_mem>>
    tpu.wait_dma2 semaphore(%143 : memref<!tpu.dma_semaphore, #tpu.memory_space<semaphore_mem>>) src(%arg22 : memref<1x16x16x128xf32, #tpu.memory_space<vmem>>) dst(%141 : memref<1x16x16x128xf32, #tpu.memory_space<vmem>>)
    %cst_158 = arith.constant 0.000000e+00 : f32
    %144 = vector.broadcast %cst_158 : f32 to vector<256x128xf32>
    %c0_159 = arith.constant 0 : index
    %c0_160 = arith.constant 0 : index
    %c0_161 = arith.constant 0 : index
    %c0_162 = arith.constant 0 : index
    %145 = vector.load %arg23[%c0_159, %c0_160, %c0_161, %c0_162] : memref<1x18x18x128xf32, #tpu.memory_space<vmem>>, vector<1x16x16x128xf32>
    %146 = vector.shape_cast %145 : vector<1x16x16x128xf32> to vector<256x128xf32>
    %147 = arith.truncf %146 : vector<256x128xf32> to vector<256x128xbf16>
    %c0_163 = arith.constant 0 : index
    %c0_164 = arith.constant 0 : index
    %c0_165 = arith.constant 0 : index
    %c0_166 = arith.constant 0 : index
    %148 = vector.load %arg17[%c0_163, %c0_164, %c0_165, %c0_166] : memref<3x3x128x128xbf16, #tpu.memory_space<vmem>>, vector<1x1x128x128xbf16>
    %149 = vector.shape_cast %148 : vector<1x1x128x128xbf16> to vector<128x128xbf16>
    %cst_167 = arith.constant dense<0.000000e+00> : vector<256x128xf32>
    %150 = tpu.matmul %147, %149, %cst_167 {dimension_numbers = #tpu.dot_dimension_numbers<[1], [0], [0], [1], [0, 0, 1, 1], [], []>} : vector<256x128xbf16>, vector<128x128xbf16>, vector<256x128xf32> -> vector<256x128xf32>
    %151 = arith.addf %144, %150 : vector<256x128xf32>
    %c0_168 = arith.constant 0 : index
    %c0_169 = arith.constant 0 : index
    %c1_170 = arith.constant 1 : index
    %c0_171 = arith.constant 0 : index
    %152 = vector.load %arg23[%c0_168, %c0_169, %c1_170, %c0_171] : memref<1x18x18x128xf32, #tpu.memory_space<vmem>>, vector<1x16x16x128xf32>
    %153 = vector.shape_cast %152 : vector<1x16x16x128xf32> to vector<256x128xf32>
    %154 = arith.truncf %153 : vector<256x128xf32> to vector<256x128xbf16>
    %c0_172 = arith.constant 0 : index
    %c1_173 = arith.constant 1 : index
    %c0_174 = arith.constant 0 : index
    %c0_175 = arith.constant 0 : index
    %155 = vector.load %arg17[%c0_172, %c1_173, %c0_174, %c0_175] : memref<3x3x128x128xbf16, #tpu.memory_space<vmem>>, vector<1x1x128x128xbf16>
    %156 = vector.shape_cast %155 : vector<1x1x128x128xbf16> to vector<128x128xbf16>
    %cst_176 = arith.constant dense<0.000000e+00> : vector<256x128xf32>
    %157 = tpu.matmul %154, %156, %cst_176 {dimension_numbers = #tpu.dot_dimension_numbers<[1], [0], [0], [1], [0, 0, 1, 1], [], []>} : vector<256x128xbf16>, vector<128x128xbf16>, vector<256x128xf32> -> vector<256x128xf32>
    %158 = arith.addf %151, %157 : vector<256x128xf32>
    %c0_177 = arith.constant 0 : index
    %c0_178 = arith.constant 0 : index
    %c2_179 = arith.constant 2 : index
    %c0_180 = arith.constant 0 : index
    %159 = vector.load %arg23[%c0_177, %c0_178, %c2_179, %c0_180] : memref<1x18x18x128xf32, #tpu.memory_space<vmem>>, vector<1x16x16x128xf32>
    %160 = vector.shape_cast %159 : vector<1x16x16x128xf32> to vector<256x128xf32>
    %161 = arith.truncf %160 : vector<256x128xf32> to vector<256x128xbf16>
    %c0_181 = arith.constant 0 : index
    %c2_182 = arith.constant 2 : index
    %c0_183 = arith.constant 0 : index
    %c0_184 = arith.constant 0 : index
    %162 = vector.load %arg17[%c0_181, %c2_182, %c0_183, %c0_184] : memref<3x3x128x128xbf16, #tpu.memory_space<vmem>>, vector<1x1x128x128xbf16>
    %163 = vector.shape_cast %162 : vector<1x1x128x128xbf16> to vector<128x128xbf16>
    %cst_185 = arith.constant dense<0.000000e+00> : vector<256x128xf32>
    %164 = tpu.matmul %161, %163, %cst_185 {dimension_numbers = #tpu.dot_dimension_numbers<[1], [0], [0], [1], [0, 0, 1, 1], [], []>} : vector<256x128xbf16>, vector<128x128xbf16>, vector<256x128xf32> -> vector<256x128xf32>
    %165 = arith.addf %158, %164 : vector<256x128xf32>
    %c0_186 = arith.constant 0 : index
    %c1_187 = arith.constant 1 : index
    %c0_188 = arith.constant 0 : index
    %c0_189 = arith.constant 0 : index
    %166 = vector.load %arg23[%c0_186, %c1_187, %c0_188, %c0_189] : memref<1x18x18x128xf32, #tpu.memory_space<vmem>>, vector<1x16x16x128xf32>
    %167 = vector.shape_cast %166 : vector<1x16x16x128xf32> to vector<256x128xf32>
    %168 = arith.truncf %167 : vector<256x128xf32> to vector<256x128xbf16>
    %c1_190 = arith.constant 1 : index
    %c0_191 = arith.constant 0 : index
    %c0_192 = arith.constant 0 : index
    %c0_193 = arith.constant 0 : index
    %169 = vector.load %arg17[%c1_190, %c0_191, %c0_192, %c0_193] : memref<3x3x128x128xbf16, #tpu.memory_space<vmem>>, vector<1x1x128x128xbf16>
    %170 = vector.shape_cast %169 : vector<1x1x128x128xbf16> to vector<128x128xbf16>
    %cst_194 = arith.constant dense<0.000000e+00> : vector<256x128xf32>
    %171 = tpu.matmul %168, %170, %cst_194 {dimension_numbers = #tpu.dot_dimension_numbers<[1], [0], [0], [1], [0, 0, 1, 1], [], []>} : vector<256x128xbf16>, vector<128x128xbf16>, vector<256x128xf32> -> vector<256x128xf32>
    %172 = arith.addf %165, %171 : vector<256x128xf32>
    %c0_195 = arith.constant 0 : index
    %c1_196 = arith.constant 1 : index
    %c1_197 = arith.constant 1 : index
    %c0_198 = arith.constant 0 : index
    %173 = vector.load %arg23[%c0_195, %c1_196, %c1_197, %c0_198] : memref<1x18x18x128xf32, #tpu.memory_space<vmem>>, vector<1x16x16x128xf32>
    %174 = vector.shape_cast %173 : vector<1x16x16x128xf32> to vector<256x128xf32>
    %175 = arith.truncf %174 : vector<256x128xf32> to vector<256x128xbf16>
    %c1_199 = arith.constant 1 : index
    %c1_200 = arith.constant 1 : index
    %c0_201 = arith.constant 0 : index
    %c0_202 = arith.constant 0 : index
    %176 = vector.load %arg17[%c1_199, %c1_200, %c0_201, %c0_202] : memref<3x3x128x128xbf16, #tpu.memory_space<vmem>>, vector<1x1x128x128xbf16>
    %177 = vector.shape_cast %176 : vector<1x1x128x128xbf16> to vector<128x128xbf16>
    %cst_203 = arith.constant dense<0.000000e+00> : vector<256x128xf32>
    %178 = tpu.matmul %175, %177, %cst_203 {dimension_numbers = #tpu.dot_dimension_numbers<[1], [0], [0], [1], [0, 0, 1, 1], [], []>} : vector<256x128xbf16>, vector<128x128xbf16>, vector<256x128xf32> -> vector<256x128xf32>
    %179 = arith.addf %172, %178 : vector<256x128xf32>
    %c0_204 = arith.constant 0 : index
    %c1_205 = arith.constant 1 : index
    %c2_206 = arith.constant 2 : index
    %c0_207 = arith.constant 0 : index
    %180 = vector.load %arg23[%c0_204, %c1_205, %c2_206, %c0_207] : memref<1x18x18x128xf32, #tpu.memory_space<vmem>>, vector<1x16x16x128xf32>
    %181 = vector.shape_cast %180 : vector<1x16x16x128xf32> to vector<256x128xf32>
    %182 = arith.truncf %181 : vector<256x128xf32> to vector<256x128xbf16>
    %c1_208 = arith.constant 1 : index
    %c2_209 = arith.constant 2 : index
    %c0_210 = arith.constant 0 : index
    %c0_211 = arith.constant 0 : index
    %183 = vector.load %arg17[%c1_208, %c2_209, %c0_210, %c0_211] : memref<3x3x128x128xbf16, #tpu.memory_space<vmem>>, vector<1x1x128x128xbf16>
    %184 = vector.shape_cast %183 : vector<1x1x128x128xbf16> to vector<128x128xbf16>
    %cst_212 = arith.constant dense<0.000000e+00> : vector<256x128xf32>
    %185 = tpu.matmul %182, %184, %cst_212 {dimension_numbers = #tpu.dot_dimension_numbers<[1], [0], [0], [1], [0, 0, 1, 1], [], []>} : vector<256x128xbf16>, vector<128x128xbf16>, vector<256x128xf32> -> vector<256x128xf32>
    %186 = arith.addf %179, %185 : vector<256x128xf32>
    %c0_213 = arith.constant 0 : index
    %c2_214 = arith.constant 2 : index
    %c0_215 = arith.constant 0 : index
    %c0_216 = arith.constant 0 : index
    %187 = vector.load %arg23[%c0_213, %c2_214, %c0_215, %c0_216] : memref<1x18x18x128xf32, #tpu.memory_space<vmem>>, vector<1x16x16x128xf32>
    %188 = vector.shape_cast %187 : vector<1x16x16x128xf32> to vector<256x128xf32>
    %189 = arith.truncf %188 : vector<256x128xf32> to vector<256x128xbf16>
    %c2_217 = arith.constant 2 : index
    %c0_218 = arith.constant 0 : index
    %c0_219 = arith.constant 0 : index
    %c0_220 = arith.constant 0 : index
    %190 = vector.load %arg17[%c2_217, %c0_218, %c0_219, %c0_220] : memref<3x3x128x128xbf16, #tpu.memory_space<vmem>>, vector<1x1x128x128xbf16>
    %191 = vector.shape_cast %190 : vector<1x1x128x128xbf16> to vector<128x128xbf16>
    %cst_221 = arith.constant dense<0.000000e+00> : vector<256x128xf32>
    %192 = tpu.matmul %189, %191, %cst_221 {dimension_numbers = #tpu.dot_dimension_numbers<[1], [0], [0], [1], [0, 0, 1, 1], [], []>} : vector<256x128xbf16>, vector<128x128xbf16>, vector<256x128xf32> -> vector<256x128xf32>
    %193 = arith.addf %186, %192 : vector<256x128xf32>
    %c0_222 = arith.constant 0 : index
    %c2_223 = arith.constant 2 : index
    %c1_224 = arith.constant 1 : index
    %c0_225 = arith.constant 0 : index
    %194 = vector.load %arg23[%c0_222, %c2_223, %c1_224, %c0_225] : memref<1x18x18x128xf32, #tpu.memory_space<vmem>>, vector<1x16x16x128xf32>
    %195 = vector.shape_cast %194 : vector<1x16x16x128xf32> to vector<256x128xf32>
    %196 = arith.truncf %195 : vector<256x128xf32> to vector<256x128xbf16>
    %c2_226 = arith.constant 2 : index
    %c1_227 = arith.constant 1 : index
    %c0_228 = arith.constant 0 : index
    %c0_229 = arith.constant 0 : index
    %197 = vector.load %arg17[%c2_226, %c1_227, %c0_228, %c0_229] : memref<3x3x128x128xbf16, #tpu.memory_space<vmem>>, vector<1x1x128x128xbf16>
    %198 = vector.shape_cast %197 : vector<1x1x128x128xbf16> to vector<128x128xbf16>
    %cst_230 = arith.constant dense<0.000000e+00> : vector<256x128xf32>
    %199 = tpu.matmul %196, %198, %cst_230 {dimension_numbers = #tpu.dot_dimension_numbers<[1], [0], [0], [1], [0, 0, 1, 1], [], []>} : vector<256x128xbf16>, vector<128x128xbf16>, vector<256x128xf32> -> vector<256x128xf32>
    %200 = arith.addf %193, %199 : vector<256x128xf32>
    %c0_231 = arith.constant 0 : index
    %c2_232 = arith.constant 2 : index
    %c2_233 = arith.constant 2 : index
    %c0_234 = arith.constant 0 : index
    %201 = vector.load %arg23[%c0_231, %c2_232, %c2_233, %c0_234] : memref<1x18x18x128xf32, #tpu.memory_space<vmem>>, vector<1x16x16x128xf32>
    %202 = vector.shape_cast %201 : vector<1x16x16x128xf32> to vector<256x128xf32>
    %203 = arith.truncf %202 : vector<256x128xf32> to vector<256x128xbf16>
    %c2_235 = arith.constant 2 : index
    %c2_236 = arith.constant 2 : index
    %c0_237 = arith.constant 0 : index
    %c0_238 = arith.constant 0 : index
    %204 = vector.load %arg17[%c2_235, %c2_236, %c0_237, %c0_238] : memref<3x3x128x128xbf16, #tpu.memory_space<vmem>>, vector<1x1x128x128xbf16>
    %205 = vector.shape_cast %204 : vector<1x1x128x128xbf16> to vector<128x128xbf16>
    %cst_239 = arith.constant dense<0.000000e+00> : vector<256x128xf32>
    %206 = tpu.matmul %203, %205, %cst_239 {dimension_numbers = #tpu.dot_dimension_numbers<[1], [0], [0], [1], [0, 0, 1, 1], [], []>} : vector<256x128xbf16>, vector<128x128xbf16>, vector<256x128xf32> -> vector<256x128xf32>
    %207 = arith.addf %200, %206 : vector<256x128xf32>
    %c0_240 = arith.constant 0 : index
    %c0_241 = arith.constant 0 : index
    %208 = vector.load %arg18[%c0_240, %c0_241] : memref<1x32xf32, #tpu.memory_space<vmem>>, vector<1x32xf32>
    %209 = vector.broadcast %208 : vector<1x32xf32> to vector<256x32xf32>
    %210 = arith.mulf %1, %209 : vector<256x32xf32>
    %c0_242 = arith.constant 0 : index
    %c0_243 = arith.constant 0 : index
    %211 = vector.load %arg19[%c0_242, %c0_243] : memref<1x32xf32, #tpu.memory_space<vmem>>, vector<1x32xf32>
    %212 = vector.broadcast %211 : vector<1x32xf32> to vector<256x32xf32>
    %213 = arith.addf %210, %212 : vector<256x32xf32>
    %cst_244 = arith.constant 0.000000e+00 : f32
    %214 = vector.broadcast %cst_244 : f32 to vector<256x32xf32>
    %215 = arith.maximumf %213, %214 : vector<256x32xf32>
    %216 = arith.truncf %215 : vector<256x32xf32> to vector<256x32xbf16>
    %c0_245 = arith.constant 0 : index
    %c0_246 = arith.constant 0 : index
    %217 = vector.load %arg20[%c0_245, %c0_246] : memref<32x128xbf16, #tpu.memory_space<vmem>>, vector<32x128xbf16>
    %cst_247 = arith.constant dense<0.000000e+00> : vector<256x128xf32>
    %218 = tpu.matmul %216, %217, %cst_247 {dimension_numbers = #tpu.dot_dimension_numbers<[1], [0], [0], [1], [0, 0, 1, 1], [], []>} : vector<256x32xbf16>, vector<32x128xbf16>, vector<256x128xf32> -> vector<256x128xf32>
    %219 = arith.addf %207, %218 : vector<256x128xf32>
    %220 = vector.shape_cast %219 : vector<256x128xf32> to vector<1x16x16x128xf32>
    %c0_248 = arith.constant 0 : index
    %c0_249 = arith.constant 0 : index
    %c0_250 = arith.constant 0 : index
    %c0_251 = arith.constant 0 : index
    %221 = vector.load %arg21[%c0_248, %c0_249, %c0_250, %c0_251] : memref<1x16x16x128xf32, #tpu.memory_space<vmem>>, vector<1x16x16x128xf32>
    tpu.vector_store %arg21[%c0_248, %c0_249, %c0_250, %c0_251], %220 {strides = array<i32>} : memref<1x16x16x128xf32, #tpu.memory_space<vmem>>, vector<1x16x16x128xf32>,
    return
  }
  func.func @transform_0(%arg0: i32) -> (i32, i32, i32, i32) {
    %c0_i32 = arith.constant 0 : i32
    %c0_i32_0 = arith.constant 0 : i32
    %c0_i32_1 = arith.constant 0 : i32
    %c0_i32_2 = arith.constant 0 : i32
    return %arg0, %c0_i32, %c0_i32_0, %c0_i32_1 : i32, i32, i32, i32
  }
  func.func @transform_1(%arg0: i32) -> (i32, i32) {
    %c0_i32 = arith.constant 0 : i32
    %c0_i32_0 = arith.constant 0 : i32
    %c0_i32_1 = arith.constant 0 : i32
    return %c0_i32, %c0_i32_0 : i32, i32
  }
  func.func @transform_2(%arg0: i32) -> (i32, i32) {
    %c0_i32 = arith.constant 0 : i32
    %c0_i32_0 = arith.constant 0 : i32
    %c0_i32_1 = arith.constant 0 : i32
    return %c0_i32, %c0_i32_0 : i32, i32
  }
  func.func @transform_3(%arg0: i32) -> (i32, i32) {
    %c0_i32 = arith.constant 0 : i32
    %c0_i32_0 = arith.constant 0 : i32
    %c0_i32_1 = arith.constant 0 : i32
    return %c0_i32, %c0_i32_0 : i32, i32
  }
  func.func @transform_4(%arg0: i32) -> (i32, i32) {
    %c0_i32 = arith.constant 0 : i32
    %c0_i32_0 = arith.constant 0 : i32
    %c0_i32_1 = arith.constant 0 : i32
    return %c0_i32, %c0_i32_0 : i32, i32
  }
  func.func @transform_5(%arg0: i32) -> (i32, i32) {
    %c0_i32 = arith.constant 0 : i32
    %c0_i32_0 = arith.constant 0 : i32
    %c0_i32_1 = arith.constant 0 : i32
    return %c0_i32, %c0_i32_0 : i32, i32
  }
  func.func @transform_6(%arg0: i32) -> (i32, i32) {
    %c0_i32 = arith.constant 0 : i32
    %c0_i32_0 = arith.constant 0 : i32
    %c0_i32_1 = arith.constant 0 : i32
    return %c0_i32, %c0_i32_0 : i32, i32
  }
  func.func @transform_7(%arg0: i32) -> (i32, i32) {
    %c0_i32 = arith.constant 0 : i32
    %c0_i32_0 = arith.constant 0 : i32
    %c0_i32_1 = arith.constant 0 : i32
    return %c0_i32, %c0_i32_0 : i32, i32
  }
  func.func @transform_8(%arg0: i32) -> (i32, i32) {
    %c0_i32 = arith.constant 0 : i32
    %c0_i32_0 = arith.constant 0 : i32
    %c0_i32_1 = arith.constant 0 : i32
    return %c0_i32, %c0_i32_0 : i32, i32
  }
  func.func @transform_9(%arg0: i32) -> (i32, i32) {
    %c0_i32 = arith.constant 0 : i32
    %c0_i32_0 = arith.constant 0 : i32
    %c0_i32_1 = arith.constant 0 : i32
    return %c0_i32, %c0_i32_0 : i32, i32
  }
  func.func @transform_10(%arg0: i32) -> (i32, i32) {
    %c0_i32 = arith.constant 0 : i32
    %c0_i32_0 = arith.constant 0 : i32
    %c0_i32_1 = arith.constant 0 : i32
    return %c0_i32, %c0_i32_0 : i32, i32
  }
  func.func @transform_11(%arg0: i32) -> (i32, i32) {
    %c0_i32 = arith.constant 0 : i32
    %c0_i32_0 = arith.constant 0 : i32
    %c0_i32_1 = arith.constant 0 : i32
    return %c0_i32, %c0_i32_0 : i32, i32
  }
  func.func @transform_12(%arg0: i32) -> (i32, i32) {
    %c0_i32 = arith.constant 0 : i32
    %c0_i32_0 = arith.constant 0 : i32
    %c0_i32_1 = arith.constant 0 : i32
    return %c0_i32, %c0_i32_0 : i32, i32
  }
  func.func @transform_13(%arg0: i32) -> (i32, i32, i32, i32) {
    %c0_i32 = arith.constant 0 : i32
    %c0_i32_0 = arith.constant 0 : i32
    %c0_i32_1 = arith.constant 0 : i32
    %c0_i32_2 = arith.constant 0 : i32
    %c0_i32_3 = arith.constant 0 : i32
    return %c0_i32, %c0_i32_0, %c0_i32_1, %c0_i32_2 : i32, i32, i32, i32
  }
  func.func @transform_14(%arg0: i32) -> (i32, i32) {
    %c0_i32 = arith.constant 0 : i32
    %c0_i32_0 = arith.constant 0 : i32
    %c0_i32_1 = arith.constant 0 : i32
    return %c0_i32, %c0_i32_0 : i32, i32
  }
  func.func @transform_15(%arg0: i32) -> (i32, i32) {
    %c0_i32 = arith.constant 0 : i32
    %c0_i32_0 = arith.constant 0 : i32
    %c0_i32_1 = arith.constant 0 : i32
    return %c0_i32, %c0_i32_0 : i32, i32
  }
  func.func @transform_16(%arg0: i32) -> (i32, i32, i32, i32) {
    %c0_i32 = arith.constant 0 : i32
    %c0_i32_0 = arith.constant 0 : i32
    %c0_i32_1 = arith.constant 0 : i32
    %c0_i32_2 = arith.constant 0 : i32
    %c0_i32_3 = arith.constant 0 : i32
    return %c0_i32, %c0_i32_0, %c0_i32_1, %c0_i32_2 : i32, i32, i32, i32
  }
  func.func @transform_17(%arg0: i32) -> (i32, i32) {
    %c0_i32 = arith.constant 0 : i32
    %c0_i32_0 = arith.constant 0 : i32
    %c0_i32_1 = arith.constant 0 : i32
    return %c0_i32, %c0_i32_0 : i32, i32
  }
  func.func @transform_18(%arg0: i32) -> (i32, i32) {
    %c0_i32 = arith.constant 0 : i32
    %c0_i32_0 = arith.constant 0 : i32
    %c0_i32_1 = arith.constant 0 : i32
    return %c0_i32, %c0_i32_0 : i32, i32
  }
  func.func @transform_19(%arg0: i32) -> (i32, i32) {
    %c0_i32 = arith.constant 0 : i32
    %c0_i32_0 = arith.constant 0 : i32
    %c0_i32_1 = arith.constant 0 : i32
    return %c0_i32, %c0_i32_0 : i32, i32
  }
  func.func @transform_20(%arg0: i32) -> (i32, i32, i32, i32) {
    %c0_i32 = arith.constant 0 : i32
    %c0_i32_0 = arith.constant 0 : i32
    %c0_i32_1 = arith.constant 0 : i32
    %c0_i32_2 = arith.constant 0 : i32
    return %arg0, %c0_i32, %c0_i32_0, %c0_i32_1 : i32, i32, i32, i32
  }
}

</mosaic_0001>

<bundles_post_ra>
// kernel: up_ad_block_forward.1
= control target key start
LH: loop header
LB: loop body
LE: loop exit
PB: predicated region body
PF: predicated region fallthrough
CT: control target
= control target key end

     0   :  { %s13218_s0 = inlined_call_operand.vmem [shape: f32[2,16,16,32], index: 0, kind: input, shape index: {}]   ;;  %s13219_s1 = inlined_call_operand.vmem [shape: f32[1,32], index: 1, kind: input, shape index: {}]   ;;  %s13220_s2 = inlined_call_operand.vmem [shape: f32[1,32], index: 2, kind: input, shape index: {}]   ;;  %s13221_s3 = inlined_call_operand.vmem [shape: bf16[32,128], index: 3, kind: input, shape index: {}]   ;;  %s13222_s4 = inlined_call_operand.vmem [shape: f32[1,128], index: 4, kind: input, shape index: {}]   ;;  %s13223_s5 = inlined_call_operand.vmem [shape: f32[1,128], index: 5, kind: input, shape index: {}]   ;;  %s13224_s6 = inlined_call_operand.vmem [shape: bf16[128,128], index: 6, kind: input, shape index: {}]   ;;  %s13225_s7 = inlined_call_operand.vmem [shape: f32[128,128], index: 7, kind: input, shape index: {}]   ;;  %s13226_s8 = inlined_call_operand.vmem [shape: f32[1,128], index: 8, kind: input, shape index: {}]   ;;  %s13227_s9 = inlined_call_operand.vmem [shape: f32[128,128], index: 9, kind: input, shape index: {}]   ;;  %s13228_s10 = inlined_call_operand.vmem [shape: f32[1,128], index: 10, kind: input, shape index: {}]   ;;  %s13229_s11 = inlined_call_operand.vmem [shape: f32[1,128], index: 11, kind: input, shape index: {}]   ;;  %s13230_s12 = inlined_call_operand.vmem [shape: f32[1,128], index: 12, kind: input, shape index: {}]   ;;  %s13231_s13 = inlined_call_operand.vmem [shape: bf16[3,3,128,128], index: 13, kind: input, shape index: {}]   ;;  %s13232_s14 = inlined_call_operand.vmem [shape: f32[1,128], index: 14, kind: input, shape index: {}]   ;;  %s13233_s15 = inlined_call_operand.vmem [shape: f32[1,128], index: 15, kind: input, shape index: {}]   ;;  %s13234_s16 = inlined_call_operand.vmem [shape: bf16[3,3,128,128], index: 16, kind: input, shape index: {}]   ;;  %s13235_s17 = inlined_call_operand.vmem [shape: f32[1,32], index: 17, kind: input, shape index: {}]   ;;  %s13236_s18 = inlined_call_operand.vmem [shape: f32[1,32], index: 18, kind: input, shape index: {}]   ;;  %s13237_s19 = inlined_call_operand.vmem [shape: bf16[32,128], index: 19, kind: input, shape index: {}]   ;;  %s13238_s20 = inlined_call_operand.vmem [shape: f32[2,16,16,128], index: 20, kind: output, shape index: {}]  }
   0x1   :  { %13275 = sst [smem:[#allocation48_spill]] %s13218_s0 }
   0x2   :  { %13276 = sst [smem:[#allocation49_spill]] %s13219_s1  ;;  %s11072_s1 = smov 0  }
   0x3   :  { %13277 = sst [smem:[#allocation50_spill]] %s13220_s2 }
   0x4   :  { %13278 = sst [smem:[#allocation51_spill]] %s13221_s3 }
   0x5   :  { %13279 = sst [smem:[#allocation52_spill]] %s13222_s4 }
   0x6 LB: > { %s8124_s22 = sadd.s32 4294967295, %s10962_s1   ;;  %p8128_p0 = scmp.ge.s32.totalorder %s10962_s1, 1  ;;  %s10962_s1 = sphi %s11072_s1, %s30_s1  }
   0x7   : > { %p562_p1 = scmp.lt.s32.totalorder %s10962_s1, 3 }
   0x9   : > { %p563_p2 = pnand %p8128_p0, %p562_p1 }
   0xb   : > { %566 = sbr.rel (%p563_p2) target bundleno = 2715 (0xa9b), region = 100 }
  0x12   : > { %s13280_s2 = sld [smem:[#allocation51_spill]]  ;;  %p620_p3 = scmp.lt.s32.totalorder %s8124_s22, 1  ;;  %v10793_v3 = vld [vmem:[%s13224_s6] sm:$0xff]   ;;  %v10794_v5 = vld [vmem:[%s13224_s6 + $0x8] sm:$0xff]   ;;  %v10795_v6 = vld [vmem:[%s13224_s6 + $0x10] sm:$0xff]   ;;  %vm805_vm0 = vcmask 261120  }
  0x13   : > { %s13281_s28 = sld [smem:[#allocation49_spill]]  ;;  %s13282_s23 = sld [smem:[#allocation50_spill]]  ;;  %9154 = vmatprep.subr.bf16.mxu1 %v10793_v3  ;;  %v10796_v58 = vld [vmem:[%s13224_s6 + $0x18] sm:$0xff]   ;;  %v10797_v59 = vld [vmem:[%s13224_s6 + $0x20] sm:$0xff]   ;;  %vm10965_vm1 = vmmov 0  }
  0x14   : > { %s13367_s22 = smov (!%p620_p3, %s8124_s22), 1  ;;  %s13283_s27 = sld [smem:[#allocation48_spill]]  ;;  %9155 = vmatpush3.bf16.msra.mxu1 %v10793_v3 }
  0x15   : > { %s8590_s30 = sshll.u32 %s13367_s22, 8  ;;  %9156 = vmatprep.subr.bf16.mxu1 %v10794_v5 }
  0x16   : > { %s11110_s22 = scalar_lea.vmem %s13238_s20, %s8590_s30 }
  0x18   : > { %v10791_v0 = vld [vmem:[%s13280_s2] sm:$0xff]   ;;  %v10792_v1 = vld [vmem:[%s13280_s2 + $0x8] sm:$0xff]   ;;  %9157 = vmatpush3.bf16.msra.mxu1 %v10794_v5 }
  0x19   : > { %9118 = vmatprep.subr.bf16.mxu0 %v10791_v0  ;;  %v11089_v2 = vld [vmem:[%s13281_s28] ss:$0 sm:$0xff]  ;;  %9158 = vmatprep.subr.bf16.mxu1 %v10795_v6 }
  0x1a   : > { %9119 = vmatpush3.bf16.msra.mxu0 %v10791_v0  ;;  %v11097_v4 = vld [vmem:[%s13282_s23] ss:$0 sm:$0xff]  ;;  %s11105_s28 = scalar_lea.vmem %s13283_s27, %s8590_s30  ;;  %s13316_s30 = sld [smem:[#allocation52_spill]] }
  0x1b   : > { %9120 = vmatprep.subr.bf16.mxu0 %v10792_v1  ;;  %v11116_v7 = vld [vmem:[%s11105_s28] sm:$0xff]  ;;  %v11119_v8 = vld [vmem:[%s11105_s28 + $0x8] sm:$0xff]  ;;  %v11122_v9 = vld [vmem:[%s11105_s28 + $0x10] sm:$0xff] }
  0x1c   : > { %13284 = vst [vmem:[#allocation9_spill] sm:$0xff] %v11116_v7  ;;  %13285 = vst [vmem:[#allocation10_spill] sm:$0xff] %v11119_v8  ;;  %v670_v10 = vmul.f32 %v11089_v2, %v11116_v7  ;;  %v671_v11 = vmul.f32 %v11089_v2, %v11119_v8  ;;  %v11129_v12 = vld [vmem:[%s11105_s28 + $0x18] sm:$0xff]  ;;  %v672_v13 = vmul.f32 %v11089_v2, %v11122_v9  ;;  %v11134_v14 = vld [vmem:[%s11105_s28 + $0x20] sm:$0xff]  ;;  %9159 = vmatpush3.bf16.msra.mxu1 %v10795_v6 }
  0x1d   : > { %13286 = vst [vmem:[#allocation11_spill] sm:$0xff] %v11122_v9  ;;  %13287 = vst [vmem:[#allocation12_spill] sm:$0xff] %v11129_v12  ;;  %v11137_v15 = vld [vmem:[%s11105_s28 + $0x28] sm:$0xff]  ;;  %v673_v16 = vmul.f32 %v11089_v2, %v11129_v12  ;;  %v674_v17 = vmul.f32 %v11089_v2, %v11134_v14  ;;  %v11146_v19 = vld [vmem:[%s11105_s28 + $0x30] sm:$0xff]  ;;  %9160 = vmatprep.subr.bf16.mxu1 %v10796_v58 }
  0x1e   : > { %9121 = vmatpush3.bf16.msra.mxu0 %v10792_v1  ;;  %13288 = vst [vmem:[#allocation13_spill] sm:$0xff] %v11134_v14  ;;  %13289 = vst [vmem:[#allocation14_spill] sm:$0xff] %v11137_v15  ;;  %v675_v18 = vmul.f32 %v11089_v2, %v11137_v15  ;;  %v11149_v20 = vld [vmem:[%s11105_s28 + $0x38] sm:$0xff]  ;;  %v709_v21 = vadd.f32 %v11097_v4, %v670_v10  ;;  %v710_v22 = vadd.f32 %v11097_v4, %v671_v11  ;;  %v11162_v29 = vld [vmem:[%s11105_s28 + $0x40] sm:$0xff] }
  0x1f   : > { %13290 = vst [vmem:[#allocation15_spill] sm:$0xff] %v11146_v19  ;;  %13291 = vst [vmem:[#allocation16_spill] sm:$0xff] %v11149_v20  ;;  %v711_v23 = vadd.f32 %v11097_v4, %v672_v13  ;;  %v676_v24 = vmul.f32 %v11089_v2, %v11146_v19  ;;  %v712_v25 = vadd.f32 %v11097_v4, %v673_v16  ;;  %v11165_v30 = vld [vmem:[%s11105_s28 + $0x48] sm:$0xff]  ;;  %v11174_v42 = vld [vmem:[%s11105_s28 + $0x50] sm:$0xff] }
  0x20   : > { %v713_v26 = vadd.f32 %v11097_v4, %v674_v17  ;;  %v714_v27 = vadd.f32 %v11097_v4, %v675_v18  ;;  %v677_v28 = vmul.f32 %v11089_v2, %v11149_v20  ;;  %13292 = vst [vmem:[#allocation17_spill] sm:$0xff] %v11162_v29  ;;  %13293 = vst [vmem:[#allocation18_spill] sm:$0xff] %v11165_v30  ;;  %v741_v31 = vmax.f32 %v709_v21, 0.0  ;;  %v11177_v43 = vld [vmem:[%s11105_s28 + $0x58] sm:$0xff]  ;;  %v11180_v46 = vld [vmem:[%s11105_s28 + $0x60] sm:$0xff] }
  0x21   : > { %v742_v32 = vmax.f32 %v710_v22, 0.0  ;;  %v743_v33 = vmax.f32 %v711_v23, 0.0  ;;  %v715_v34 = vadd.f32 %v11097_v4, %v676_v24  ;;  %v744_v35 = vmax.f32 %v712_v25, 0.0  ;;  %13294 = vst [vmem:[#allocation19_spill] sm:$0xff] %v11174_v42  ;;  %13295 = vst [vmem:[#allocation20_spill] sm:$0xff] %v11177_v43  ;;  %v11183_v47 = vld [vmem:[%s11105_s28 + $0x68] sm:$0xff]  ;;  %9161 = vmatpush3.bf16.msra.mxu1 %v10796_v58 }
  0x22   : > { %v745_v36 = vmax.f32 %v713_v26, 0.0  ;;  %v746_v37 = vmax.f32 %v714_v27, 0.0  ;;  %v716_v38 = vadd.f32 %v11097_v4, %v677_v28  ;;  %v678_v40 = vmul.f32 %v11089_v2, %v11162_v29  ;;  %13296 = vst [vmem:[#allocation21_spill] sm:$0xff] %v11180_v46  ;;  %13297 = vst [vmem:[#allocation22_spill] sm:$0xff] %v11183_v47  ;;  %v11209_v3 = vld [vmem:[%s11105_s28 + $0x70] sm:$0xff]  ;;  %v11212_v5 = vld [vmem:[%s11105_s28 + $0x78] sm:$0xff]  ;;  %9162 = vmatprep.subr.bf16.mxu1 %v10797_v59 }
  0x23   : > { %v773_v39 = vpack.c.bf16 %v742_v32, %v741_v31  ;;  %v679_v41 = vmul.f32 %v11089_v2, %v11165_v30  ;;  %v774_v44 = vpack.c.bf16 %v744_v35, %v743_v33  ;;  %v747_v50 = vmax.f32 %v715_v34, 0.0  ;;  %13298 = vst [vmem:[#allocation23_spill] sm:$0xff] %v11209_v3  ;;  %13299 = vst [vmem:[#allocation24_spill] sm:$0xff] %v11212_v5  ;;  %v11215_v6 = vld [vmem:[%s11105_s28 + $0x80] sm:$0xff]  ;;  %v11218_v10 = vld [vmem:[%s11105_s28 + $0x88] sm:$0xff] }
  0x24   : > { %v775_v45 = vpack.c.bf16 %v746_v37, %v745_v36  ;;  %v717_v48 = vadd.f32 %v11097_v4, %v678_v40  ;;  %v748_v51 = vmax.f32 %v716_v38, 0.0  ;;  %v680_v52 = vmul.f32 %v11089_v2, %v11174_v42  ;;  %13300 = vst [vmem:[#allocation25_spill] sm:$0xff] %v11215_v6  ;;  %13301 = vst [vmem:[#allocation26_spill] sm:$0xff] %v11218_v10  ;;  %v11235_v32 = vld [vmem:[%s11105_s28 + $0x90] sm:$0xff]  ;;  %v11238_v33 = vld [vmem:[%s11105_s28 + $0x98] sm:$0xff] }
  0x25   : > { %9122 = vmatprep.mubr.msk.bf16.mxu0 %vm805_vm0, %v773_v39  ;;  %v718_v49 = vadd.f32 %v11097_v4, %v679_v41  ;;  %v681_v53 = vmul.f32 %v11089_v2, %v11177_v43  ;;  %v682_v56 = vmul.f32 %v11089_v2, %v11180_v46  ;;  %v683_v57 = vmul.f32 %v11089_v2, %v11183_v47  ;;  %v11241_v34 = vld [vmem:[%s11105_s28 + $0xa0] sm:$0xff]  ;;  %v11244_v35 = vld [vmem:[%s11105_s28 + $0xa8] sm:$0xff] }
  0x26   : > { %9123 = vmatmul.mubr.msk.bf16.vlgmr.msra.gmra.mrb[0].mxu0 %vm805_vm0, %v774_v44  ;;  %v749_v54 = vmax.f32 %v717_v48, 0.0  ;;  %v776_v60 = vpack.c.bf16 %v748_v51, %v747_v50  ;;  %v719_v61 = vadd.f32 %v11097_v4, %v680_v52  ;;  %v684_v16 = vmul.f32 %v11089_v2, %v11209_v3  ;;  %9163 = vmatpush3.bf16.msra.mxu1 %v10797_v59 }
  0x27   : > { %9126 = vmatprep.mubr.msk.bf16.mxu0 %vm805_vm0, %v775_v45  ;;  %v750_v55 = vmax.f32 %v718_v49, 0.0  ;;  %v720_v62 = vadd.f32 %v11097_v4, %v681_v53  ;;  %v721_v0 = vadd.f32 %v11097_v4, %v682_v56  ;;  %v722_v1 = vadd.f32 %v11097_v4, %v683_v57  ;;  %13302 = vst [vmem:[#allocation27_spill] sm:$0xff] %v11235_v32  ;;  %v11267_v56 = vld [vmem:[%s11105_s28 + $0xc0] sm:$0xff]  ;;  %v11270_v57 = vld [vmem:[%s11105_s28 + $0xc8] sm:$0xff] }
  0x28   : > { %v751_v11 = vmax.f32 %v719_v61, 0.0  ;;  %v685_v17 = vmul.f32 %v11089_v2, %v11212_v5  ;;  %v686_v22 = vmul.f32 %v11089_v2, %v11215_v6  ;;  %v687_v23 = vmul.f32 %v11089_v2, %v11218_v10  ;;  %13303 = vst [vmem:[#allocation28_spill] sm:$0xff] %v11238_v33  ;;  %13304 = vst [vmem:[#allocation29_spill] sm:$0xff] %v11241_v34 }
  0x29   : > { %v777_v63 = vpack.c.bf16 %v750_v55, %v749_v54  ;;  %v752_v13 = vmax.f32 %v720_v62, 0.0  ;;  %v753_v18 = vmax.f32 %v721_v0, 0.0  ;;  %v754_v21 = vmax.f32 %v722_v1, 0.0  ;;  %13305 = vst [vmem:[#allocation30_spill] sm:$0xff] %v11244_v35  ;;  %v11261_v54 = vld [vmem:[%s11105_s28 + $0xb0] sm:$0xff]  ;;  %v11264_v55 = vld [vmem:[%s11105_s28 + $0xb8] sm:$0xff] }
  0x2a   : > { %v723_v25 = vadd.f32 %v11097_v4, %v684_v16  ;;  %v724_v26 = vadd.f32 %v11097_v4, %v685_v17  ;;  %v725_v28 = vadd.f32 %v11097_v4, %v686_v22  ;;  %v726_v31 = vadd.f32 %v11097_v4, %v687_v23  ;;  %13306 = vst [vmem:[#allocation31_spill] sm:$0xff] %v11261_v54  ;;  %v11287_v22 = vld [vmem:[%s11105_s28 + $0xd0] sm:$0xff]  ;;  %v11290_v23 = vld [vmem:[%s11105_s28 + $0xd8] sm:$0xff] }
  0x2b   : > { %v778_v24 = vpack.c.bf16 %v752_v13, %v751_v11  ;;  %v779_v27 = vpack.c.bf16 %v754_v21, %v753_v18  ;;  %v688_v38 = vmul.f32 %v11089_v2, %v11235_v32  ;;  %v689_v39 = vmul.f32 %v11089_v2, %v11238_v33  ;;  %13307 = vst [vmem:[#allocation32_spill] sm:$0xff] %v11264_v55 }
  0x2c   : > { %v755_v36 = vmax.f32 %v723_v25, 0.0  ;;  %v756_v37 = vmax.f32 %v724_v26, 0.0  ;;  %v757_v40 = vmax.f32 %v725_v28, 0.0  ;;  %v758_v41 = vmax.f32 %v726_v31, 0.0  ;;  %13308 = vst [vmem:[#allocation33_spill] sm:$0xff] %v11267_v56  ;;  %13309 = vst [vmem:[#allocation34_spill] sm:$0xff] %v11270_v57 }
  0x2d   : > { %v690_v44 = vmul.f32 %v11089_v2, %v11241_v34  ;;  %v691_v45 = vmul.f32 %v11089_v2, %v11244_v35  ;;  %v727_v49 = vadd.f32 %v11097_v4, %v688_v38  ;;  %v728_v50 = vadd.f32 %v11097_v4, %v689_v39  ;;  %13310 = vst [vmem:[#allocation35_spill] sm:$0xff] %v11287_v22  ;;  %v11296_v25 = vld [vmem:[%s11105_s28 + $0xe8] sm:$0xff] }
  0x2e   : > { %9127 = vmatmul.mubr.msk.bf16.gmra.mrb[4].mxu0 %vm805_vm0, %v776_v60  ;;  %v780_v48 = vpack.c.bf16 %v756_v37, %v755_v36  ;;  %v781_v51 = vpack.c.bf16 %v758_v41, %v757_v40  ;;  %v692_v60 = vmul.f32 %v11089_v2, %v11261_v54  ;;  %v693_v61 = vmul.f32 %v11089_v2, %v11264_v55 }
  0x2f   : > { %9130 = vmatprep.mubr.msk.bf16.mxu0 %vm805_vm0, %v777_v63  ;;  %v729_v52 = vadd.f32 %v11097_v4, %v690_v44  ;;  %v730_v53 = vadd.f32 %v11097_v4, %v691_v45  ;;  %v759_v58 = vmax.f32 %v727_v49, 0.0  ;;  %v760_v59 = vmax.f32 %v728_v50, 0.0  ;;  %13311 = vst [vmem:[#allocation36_spill] sm:$0xff] %v11290_v23  ;;  %13313 = vst [vmem:[#allocation38_spill] sm:$0xff] %v11296_v25  ;;  %v11313_v50 = vld [vmem:[%s11105_s28 + $0xf0] sm:$0xff] }
  0x30   : > { %v694_v0 = vmul.f32 %v11089_v2, %v11267_v56  ;;  %v695_v1 = vmul.f32 %v11089_v2, %v11270_v57  ;;  %v731_v13 = vadd.f32 %v11097_v4, %v692_v60  ;;  %v732_v16 = vadd.f32 %v11097_v4, %v693_v61  ;;  %13314 = vst [vmem:[#allocation39_spill] sm:$0xff] %v11313_v50 }
  0x31   : > { %v761_v62 = vmax.f32 %v729_v52, 0.0  ;;  %v762_v63 = vmax.f32 %v730_v53, 0.0  ;;  %v782_v11 = vpack.c.bf16 %v760_v59, %v759_v58  ;;  %v696_v28 = vmul.f32 %v11089_v2, %v11287_v22 }
  0x32   : > { %v733_v18 = vadd.f32 %v11097_v4, %v694_v0  ;;  %v734_v21 = vadd.f32 %v11097_v4, %v695_v1  ;;  %v763_v26 = vmax.f32 %v731_v13, 0.0  ;;  %v697_v31 = vmul.f32 %v11089_v2, %v11290_v23 }
  0x33   : > { %v783_v17 = vpack.c.bf16 %v762_v63, %v761_v62  ;;  %v699_v39 = vmul.f32 %v11089_v2, %v11296_v25  ;;  %v735_v41 = vadd.f32 %v11097_v4, %v696_v28  ;;  %v700_v58 = vmul.f32 %v11089_v2, %v11313_v50 }
  0x34   : > { %v765_v36 = vmax.f32 %v733_v18, 0.0  ;;  %v766_v37 = vmax.f32 %v734_v21, 0.0  ;;  %v736_v44 = vadd.f32 %v11097_v4, %v697_v31  ;;  %v11341_v18 = vld [vmem:[%s13316_s30] ss:$0 sm:$0xff] }
  0x35   : > { %v738_v49 = vadd.f32 %v11097_v4, %v699_v39  ;;  %v767_v52 = vmax.f32 %v735_v41, 0.0  ;;  %v739_v63 = vadd.f32 %v11097_v4, %v700_v58 }
  0x36   : > { %9131 = vmatmul.mubr.msk.bf16.gmra.mrb[8].mxu0 %vm805_vm0, %v778_v24  ;;  %v11293_v24 = vld [vmem:[%s11105_s28 + $0xe0] sm:$0xff]  ;;  %v785_v45 = vpack.c.bf16 %v766_v37, %v765_v36  ;;  %v768_v53 = vmax.f32 %v736_v44, 0.0 }
  0x37   : > { %9134 = vmatprep.mubr.msk.bf16.mxu0 %vm805_vm0, %v779_v27  ;;  %13312 = vst [vmem:[#allocation37_spill] sm:$0xff] %v11293_v24  ;;  %v764_v27 = vmax.f32 %v732_v16, 0.0  ;;  %v698_v38 = vmul.f32 %v11089_v2, %v11293_v24  ;;  %v770_v61 = vmax.f32 %v738_v49, 0.0 }
  0x38   : > { %v786_v62 = vpack.c.bf16 %v768_v53, %v767_v52 }
  0x39   : > { %v784_v40 = vpack.c.bf16 %v764_v27, %v763_v26  ;;  %v11346_v26 = vld [vmem:[%s13223_s5] ss:$0 sm:$0xff] }
  0x3e   : > { %9135 = vmatmul.mubr.msk.bf16.gmra.mrb[12].mxu0 %vm805_vm0, %v780_v48  ;;  %v737_v48 = vadd.f32 %v11097_v4, %v698_v38 }
  0x3f   : > { %9138 = vmatprep.mubr.msk.bf16.mxu0 %vm805_vm0, %v781_v51  ;;  %v11316_v51 = vld [vmem:[%s11105_s28 + $0xf8] sm:$0xff] }
  0x40   : > { %13315 = vst [vmem:[#allocation40_spill] sm:$0xff] %v11316_v51  ;;  %v701_v59 = vmul.f32 %v11089_v2, %v11316_v51  ;;  %v769_v60 = vmax.f32 %v737_v48, 0.0  ;;  %v10798_v2 = vld [vmem:[%s13224_s6 + $0x28] sm:$0xff]  }
  0x41   : > { %9164 = vmatprep.subr.bf16.mxu1 %v10798_v2 }
  0x42   : > { %v740_v0 = vadd.f32 %v11097_v4, %v701_v59  ;;  %v787_v1 = vpack.c.bf16 %v770_v61, %v769_v60  ;;  %9165 = vmatpush3.bf16.msra.mxu1 %v10798_v2  ;;  %v10799_v4 = vld [vmem:[%s13224_s6 + $0x30] sm:$0xff]  }
  0x43   : > { %9166 = vmatprep.subr.bf16.mxu1 %v10799_v4 }
  0x44   : > { %v772_v13 = vmax.f32 %v740_v0, 0.0 }
  0x46   : > { %9139 = vmatmul.mubr.msk.bf16.gmra.mrb[16].mxu0 %vm805_vm0, %v782_v11  ;;  %v771_v11 = vmax.f32 %v739_v63, 0.0  ;;  %9167 = vmatpush3.bf16.msra.mxu1 %v10799_v4 }
  0x47   : > { %9142 = vmatprep.mubr.msk.bf16.mxu0 %vm805_vm0, %v783_v17  ;;  %v10800_v17 = vld [vmem:[%s13224_s6 + $0x38] sm:$0xff]  }
  0x48   : > { %v788_v16 = vpack.c.bf16 %v772_v13, %v771_v11  ;;  %9168 = vmatprep.subr.bf16.mxu1 %v10800_v17 }
  0x4a   : > { %9169 = vmatpush3.bf16.msra.mxu1 %v10800_v17 }
  0x4e   : > { %9143 = vmatmul.mubr.msk.bf16.gmra.mrb[20].mxu0 %vm805_vm0, %v784_v40 }
  0x4f   : > { %9146 = vmatprep.mubr.msk.bf16.mxu0 %vm805_vm0, %v785_v45 }
  0x56   : > { %9147 = vmatmul.mubr.msk.bf16.gmra.mrb[24].mxu0 %vm805_vm0, %v786_v62 }
  0x57   : > { %9150 = vmatprep.mubr.msk.bf16.mxu0 %vm805_vm0, %v787_v1 }
  0x5e   : > { %9151 = vmatmul.mubr.msk.bf16.gmra.mrb[28].mxu0 %vm805_vm0, %v788_v16 }
  0xf9   : > { %v9124_v21 = vpop.f32.mrb[0].mxu0 }
  0xfa   : > { %v1024_v27 = vmul.f32 %v9124_v21, %v11341_v18  ;;  %v888_v28 = vpop.f32.mrb[1].mxu0 }
  0xfb   : > { %v1022_v31 = vmul.f32 %v11341_v18, %v888_v28  ;;  %v9125_v36 = vpop.f32.mrb[2].mxu0 }
  0xfc   : > { %v1063_v37 = vadd.f32 %v11346_v26, %v1024_v27  ;;  %v1025_v38 = vmul.f32 %v9125_v36, %v11341_v18  ;;  %v891_v39 = vpop.f32.mrb[3].mxu0 }
  0xfd   : > { %v1023_v40 = vmul.f32 %v11341_v18, %v891_v39  ;;  %v1061_v41 = vadd.f32 %v11346_v26, %v1022_v31 }
  0xfe   : > { %v1064_v44 = vadd.f32 %v11346_v26, %v1025_v38  ;;  %v1095_v48 = vmax.f32 %v1063_v37, 0.0 }
  0xff   : > { %v1062_v45 = vadd.f32 %v11346_v26, %v1023_v40  ;;  %v1093_v53 = vmax.f32 %v1061_v41, 0.0 }
 0x100   : > { %v1096_v49 = vmax.f32 %v1064_v44, 0.0 }
 0x101   : > { %v9128_v52 = vpop.f32.mrb[4].mxu0  ;;  %v1094_v58 = vmax.f32 %v1062_v45, 0.0 }
 0x102   : > { %v1028_v59 = vmul.f32 %v9128_v52, %v11341_v18  ;;  %v904_v60 = vpop.f32.mrb[5].mxu0  ;;  %v1126_v61 = vpack.c.bf16 %v1096_v49, %v1095_v48 }
 0x103   : > { %v1026_v62 = vmul.f32 %v11341_v18, %v904_v60  ;;  %v9129_v63 = vpop.f32.mrb[6].mxu0  ;;  %v1125_v0 = vpack.c.bf16 %v1094_v58, %v1093_v53 }
 0x104   : > { %v1067_v1 = vadd.f32 %v11346_v26, %v1028_v59  ;;  %v1029_v11 = vmul.f32 %v9129_v63, %v11341_v18  ;;  %v907_v13 = vpop.f32.mrb[7].mxu0 }
 0x105   : > { %v1065_v16 = vadd.f32 %v11346_v26, %v1026_v62  ;;  %v1027_v2 = vmul.f32 %v11341_v18, %v907_v13  ;;  %9170 = vmatprep.mubr.bf16.mxu1 %v1125_v0 }
 0x106   : > { %v1068_v4 = vadd.f32 %v11346_v26, %v1029_v11  ;;  %9171 = vmatmul.mubr.bf16.vlgmr.msra.gmra.mrb[0].mxu1 %v1126_v61  ;;  %v1099_v21 = vmax.f32 %v1067_v1, 0.0 }
 0x107   : > { %v1066_v17 = vadd.f32 %v11346_v26, %v1027_v2  ;;  %v1097_v28 = vmax.f32 %v1065_v16, 0.0 }
 0x108   : > { %v1100_v27 = vmax.f32 %v1068_v4, 0.0 }
 0x109   : > { %v1098_v31 = vmax.f32 %v1066_v17, 0.0  ;;  %v9132_v36 = vpop.f32.mrb[8].mxu0 }
 0x10a   : > { %v1032_v37 = vmul.f32 %v9132_v36, %v11341_v18  ;;  %v920_v38 = vpop.f32.mrb[9].mxu0  ;;  %v1128_v39 = vpack.c.bf16 %v1100_v27, %v1099_v21 }
 0x10b   : > { %v1030_v40 = vmul.f32 %v11341_v18, %v920_v38  ;;  %v9133_v41 = vpop.f32.mrb[10].mxu0  ;;  %v1127_v44 = vpack.c.bf16 %v1098_v31, %v1097_v28 }
 0x10c   : > { %v1071_v45 = vadd.f32 %v11346_v26, %v1032_v37  ;;  %v1033_v48 = vmul.f32 %v9133_v41, %v11341_v18  ;;  %v923_v49 = vpop.f32.mrb[11].mxu0 }
 0x10d   : > { %v1069_v52 = vadd.f32 %v11346_v26, %v1030_v40  ;;  %v1031_v53 = vmul.f32 %v11341_v18, %v923_v49  ;;  %9174 = vmatprep.mubr.bf16.mxu1 %v1127_v44 }
 0x10e   : > { %v1072_v58 = vadd.f32 %v11346_v26, %v1033_v48  ;;  %9175 = vmatmul.mubr.bf16.gmra.mrb[4].mxu1 %v1128_v39  ;;  %v1103_v60 = vmax.f32 %v1071_v45, 0.0 }
 0x10f   : > { %v1070_v59 = vadd.f32 %v11346_v26, %v1031_v53  ;;  %v1101_v62 = vmax.f32 %v1069_v52, 0.0 }
 0x110   : > { %v1104_v61 = vmax.f32 %v1072_v58, 0.0 }
 0x111   : > { %v1102_v63 = vmax.f32 %v1070_v59, 0.0  ;;  %v9136_v0 = vpop.f32.mrb[12].mxu0 }
 0x112   : > { %v1036_v1 = vmul.f32 %v9136_v0, %v11341_v18  ;;  %v936_v11 = vpop.f32.mrb[13].mxu0  ;;  %v1130_v13 = vpack.c.bf16 %v1104_v61, %v1103_v60 }
 0x113   : > { %v1034_v16 = vmul.f32 %v11341_v18, %v936_v11  ;;  %v9137_v2 = vpop.f32.mrb[14].mxu0  ;;  %v1129_v4 = vpack.c.bf16 %v1102_v63, %v1101_v62 }
 0x114   : > { %v1075_v17 = vadd.f32 %v11346_v26, %v1036_v1  ;;  %v1037_v21 = vmul.f32 %v9137_v2, %v11341_v18  ;;  %v939_v27 = vpop.f32.mrb[15].mxu0 }
 0x115   : > { %v1073_v28 = vadd.f32 %v11346_v26, %v1034_v16  ;;  %v1035_v31 = vmul.f32 %v11341_v18, %v939_v27  ;;  %9178 = vmatprep.mubr.bf16.mxu1 %v1129_v4 }
 0x116   : > { %v1076_v36 = vadd.f32 %v11346_v26, %v1037_v21  ;;  %9179 = vmatmul.mubr.bf16.gmra.mrb[8].mxu1 %v1130_v13  ;;  %v1107_v38 = vmax.f32 %v1075_v17, 0.0 }
 0x117   : > { %v1074_v37 = vadd.f32 %v11346_v26, %v1035_v31  ;;  %v1105_v40 = vmax.f32 %v1073_v28, 0.0 }
 0x118   : > { %v1108_v39 = vmax.f32 %v1076_v36, 0.0 }
 0x119   : > { %v1106_v41 = vmax.f32 %v1074_v37, 0.0  ;;  %v9140_v44 = vpop.f32.mrb[16].mxu0 }
 0x11a   : > { %v1040_v45 = vmul.f32 %v9140_v44, %v11341_v18  ;;  %v952_v48 = vpop.f32.mrb[17].mxu0  ;;  %v1132_v49 = vpack.c.bf16 %v1108_v39, %v1107_v38 }
 0x11b   : > { %v1038_v52 = vmul.f32 %v11341_v18, %v952_v48  ;;  %v9141_v53 = vpop.f32.mrb[18].mxu0  ;;  %v1131_v58 = vpack.c.bf16 %v1106_v41, %v1105_v40 }
 0x11c   : > { %v1079_v59 = vadd.f32 %v11346_v26, %v1040_v45  ;;  %v1041_v60 = vmul.f32 %v9141_v53, %v11341_v18  ;;  %v955_v61 = vpop.f32.mrb[19].mxu0 }
 0x11d   : > { %v1077_v62 = vadd.f32 %v11346_v26, %v1038_v52  ;;  %v1039_v63 = vmul.f32 %v11341_v18, %v955_v61  ;;  %9182 = vmatprep.mubr.bf16.mxu1 %v1131_v58 }
 0x11e   : > { %v1080_v0 = vadd.f32 %v11346_v26, %v1041_v60  ;;  %9183 = vmatmul.mubr.bf16.gmra.mrb[12].mxu1 %v1132_v49  ;;  %v1111_v11 = vmax.f32 %v1079_v59, 0.0 }
 0x11f   : > { %v1078_v1 = vadd.f32 %v11346_v26, %v1039_v63  ;;  %v1109_v16 = vmax.f32 %v1077_v62, 0.0 }
 0x120   : > { %v1112_v13 = vmax.f32 %v1080_v0, 0.0 }
 0x121   : > { %v1110_v2 = vmax.f32 %v1078_v1, 0.0  ;;  %v9144_v4 = vpop.f32.mrb[20].mxu0 }
 0x122   : > { %v1044_v17 = vmul.f32 %v9144_v4, %v11341_v18  ;;  %v968_v21 = vpop.f32.mrb[21].mxu0  ;;  %v1134_v27 = vpack.c.bf16 %v1112_v13, %v1111_v11 }
 0x123   : > { %v1042_v28 = vmul.f32 %v11341_v18, %v968_v21  ;;  %v9145_v31 = vpop.f32.mrb[22].mxu0  ;;  %v1133_v36 = vpack.c.bf16 %v1110_v2, %v1109_v16 }
 0x124   : > { %v1083_v37 = vadd.f32 %v11346_v26, %v1044_v17  ;;  %v1045_v38 = vmul.f32 %v9145_v31, %v11341_v18  ;;  %v971_v39 = vpop.f32.mrb[23].mxu0 }
 0x125   : > { %v1081_v40 = vadd.f32 %v11346_v26, %v1042_v28  ;;  %v1043_v41 = vmul.f32 %v11341_v18, %v971_v39  ;;  %9186 = vmatprep.mubr.bf16.mxu1 %v1133_v36 }
 0x126   : > { %v1084_v44 = vadd.f32 %v11346_v26, %v1045_v38  ;;  %9187 = vmatmul.mubr.bf16.gmra.mrb[16].mxu1 %v1134_v27  ;;  %v1115_v48 = vmax.f32 %v1083_v37, 0.0 }
 0x127   : > { %v1082_v45 = vadd.f32 %v11346_v26, %v1043_v41  ;;  %v1113_v52 = vmax.f32 %v1081_v40, 0.0 }
 0x128   : > { %v1116_v49 = vmax.f32 %v1084_v44, 0.0 }
 0x129   : > { %v1114_v53 = vmax.f32 %v1082_v45, 0.0  ;;  %v9148_v58 = vpop.f32.mrb[24].mxu0 }
 0x12a   : > { %v1048_v59 = vmul.f32 %v9148_v58, %v11341_v18  ;;  %v984_v60 = vpop.f32.mrb[25].mxu0  ;;  %v1136_v61 = vpack.c.bf16 %v1116_v49, %v1115_v48 }
 0x12b   : > { %v1046_v62 = vmul.f32 %v11341_v18, %v984_v60  ;;  %v9149_v63 = vpop.f32.mrb[26].mxu0  ;;  %v1135_v0 = vpack.c.bf16 %v1114_v53, %v1113_v52 }
 0x12c   : > { %v1087_v1 = vadd.f32 %v11346_v26, %v1048_v59  ;;  %v1049_v11 = vmul.f32 %v9149_v63, %v11341_v18  ;;  %v987_v13 = vpop.f32.mrb[27].mxu0 }
 0x12d   : > { %v1085_v16 = vadd.f32 %v11346_v26, %v1046_v62  ;;  %v1047_v2 = vmul.f32 %v11341_v18, %v987_v13  ;;  %9190 = vmatprep.mubr.bf16.mxu1 %v1135_v0 }
 0x12e   : > { %v1088_v4 = vadd.f32 %v11346_v26, %v1049_v11  ;;  %9191 = vmatmul.mubr.bf16.gmra.mrb[20].mxu1 %v1136_v61  ;;  %v1119_v21 = vmax.f32 %v1087_v1, 0.0  ;;  %v10964_v11 = vmov 0.0|0.0  }
 0x12f   : > { %v1086_v17 = vadd.f32 %v11346_v26, %v1047_v2  ;;  %v1117_v28 = vmax.f32 %v1085_v16, 0.0  ;;  %10172 = vmatprep.subr.bf16.mxu0 %v10964_v11  ;;  %10196 = vmatprep.subr.bf16.mxu1 %v10964_v11  ;;  %v1406_v16 = vld [vmem:[%s13225_s7 + $0x10] sm:$0xff]  ;;  %v1407_v2 = vld [vmem:[%s13225_s7 + $0x18] sm:$0xff] }
 0x130   : > { %v1120_v27 = vmax.f32 %v1088_v4, 0.0  ;;  %v10176_v4 = vpack.c.bf16 %v1407_v2, %v1406_v16  ;;  %v1498_v16 = vld [vmem:[%s13227_s9 + $0x30] sm:$0xff]  ;;  %v1499_v2 = vld [vmem:[%s13227_s9 + $0x38] sm:$0xff] }
 0x131   : > { %v1118_v31 = vmax.f32 %v1086_v17, 0.0  ;;  %v9152_v36 = vpop.f32.mrb[28].mxu0  ;;  %v1408_v17 = vld [vmem:[%s13225_s7 + $0x20] sm:$0xff] }
 0x132   : > { %v1052_v37 = vmul.f32 %v9152_v36, %v11341_v18  ;;  %v1000_v38 = vpop.f32.mrb[29].mxu0  ;;  %v1138_v39 = vpack.c.bf16 %v1120_v27, %v1119_v21  ;;  %v1409_v21 = vld [vmem:[%s13225_s7 + $0x28] sm:$0xff] }
 0x133   : > { %v1050_v40 = vmul.f32 %v11341_v18, %v1000_v38  ;;  %v9153_v41 = vpop.f32.mrb[30].mxu0  ;;  %v1137_v44 = vpack.c.bf16 %v1118_v31, %v1117_v28  ;;  %v10179_v27 = vpack.c.bf16 %v1409_v21, %v1408_v17  ;;  %v1410_v28 = vld [vmem:[%s13225_s7 + $0x30] sm:$0xff]  ;;  %v1411_v31 = vld [vmem:[%s13225_s7 + $0x38] sm:$0xff]  ;;  %v1413_v38 = vld [vmem:[%s13225_s7 + $0x48] sm:$0xff] }
 0x134   : > { %v1091_v45 = vadd.f32 %v11346_v26, %v1052_v37  ;;  %v1053_v48 = vmul.f32 %v9153_v41, %v11341_v18  ;;  %v1003_v49 = vpop.f32.mrb[31].mxu0  ;;  %v10182_v36 = vpack.c.bf16 %v1411_v31, %v1410_v28  ;;  %v1412_v37 = vld [vmem:[%s13225_s7 + $0x40] sm:$0xff]  ;;  %v1415_v41 = vld [vmem:[%s13225_s7 + $0x58] sm:$0xff]  ;;  %v1501_v21 = vld [vmem:[%s13227_s9 + $0x48] sm:$0xff] }
 0x135   : > { %v1089_v52 = vadd.f32 %v11346_v26, %v1050_v40  ;;  %v1051_v53 = vmul.f32 %v11341_v18, %v1003_v49  ;;  %9194 = vmatprep.mubr.bf16.mxu1 %v1137_v44  ;;  %v1404_v18 = vld [vmem:[%s13225_s7] sm:$0xff]  ;;  %v1414_v40 = vld [vmem:[%s13225_s7 + $0x50] sm:$0xff]  ;;  %v1503_v31 = vld [vmem:[%s13227_s9 + $0x58] sm:$0xff] }
 0x136   : > { %v1092_v58 = vadd.f32 %v11346_v26, %v1053_v48  ;;  %9195 = vmatmul.mubr.bf16.gmra.mrb[24].mxu1 %v1138_v39  ;;  %v1123_v60 = vmax.f32 %v1091_v45, 0.0  ;;  %v10185_v39 = vpack.c.bf16 %v1413_v38, %v1412_v37  ;;  %v10188_v44 = vpack.c.bf16 %v1415_v41, %v1414_v40  ;;  %v1416_v45 = vld [vmem:[%s13225_s7 + $0x60] sm:$0xff]  ;;  %v1417_v48 = vld [vmem:[%s13225_s7 + $0x68] sm:$0xff]  ;;  %v1502_v28 = vld [vmem:[%s13227_s9 + $0x50] sm:$0xff] }
 0x137   : > { %v1090_v59 = vadd.f32 %v11346_v26, %v1051_v53  ;;  %v1121_v62 = vmax.f32 %v1089_v52, 0.0  ;;  %v1405_v26 = vld [vmem:[%s13225_s7 + $0x8] sm:$0xff]  ;;  %v10191_v49 = vpack.c.bf16 %v1417_v48, %v1416_v45  ;;  %v1418_v52 = vld [vmem:[%s13225_s7 + $0x70] sm:$0xff]  ;;  %v1419_v53 = vld [vmem:[%s13225_s7 + $0x78] sm:$0xff] }
 0x138   : > { %v1124_v61 = vmax.f32 %v1092_v58, 0.0  ;;  %v10173_v13 = vpack.c.bf16 %v1405_v26, %v1404_v18  ;;  %v10194_v58 = vpack.c.bf16 %v1419_v53, %v1418_v52  ;;  %v1496_v18 = vld [vmem:[%s13227_s9 + $0x20] sm:$0xff]  ;;  %v1497_v26 = vld [vmem:[%s13227_s9 + $0x28] sm:$0xff]  ;;  %v1506_v40 = vld [vmem:[%s13227_s9 + $0x70] sm:$0xff] }
 0x139   : > { %v1122_v63 = vmax.f32 %v1090_v59, 0.0  ;;  %v13240_v59 = vmov 0.0   ;;  %v1500_v17 = vld [vmem:[%s13227_s9 + $0x40] sm:$0xff]  ;;  %v1505_v38 = vld [vmem:[%s13227_s9 + $0x68] sm:$0xff]  ;;  %v1507_v41 = vld [vmem:[%s13227_s9 + $0x78] sm:$0xff] }
 0x13a   : > { %v1140_v0 = vpack.c.bf16 %v1124_v61, %v1123_v60  ;;  %10174 = vmatpush3.bf16.msra.mxu0 %v10173_v13  ;;  %9234 = vmatprep.mubr.msk.f32.mxu0 %vm10965_vm1, %v13240_v59  ;;  %1726 = vst [vmem:[#allocation3] sm:$0xff] %v13240_v59  ;;  %1727 = vst [vmem:[#allocation3 + $0x8] sm:$0xff] %v13240_v59  ;;  %v1492_v60 = vld [vmem:[%s13227_s9] sm:$0xff]  ;;  %v1493_v61 = vld [vmem:[%s13227_s9 + $0x8] sm:$0xff]  ;;  %v10203_v13 = vpack.c.bf16 %v1497_v26, %v1496_v18 }
 0x13b   : > { %v1139_v1 = vpack.c.bf16 %v1122_v63, %v1121_v62  ;;  %10175 = vmatprep.subr.bf16.mxu0 %v10964_v11  ;;  %1728 = vst [vmem:[#allocation3 + $0x10] sm:$0x3] %v13240_v59  ;;  %1729 = vst [vmem:[#allocation3 + $0x18] sm:$0xff] %v13240_v59  ;;  %v1494_v62 = vld [vmem:[%s13227_s9 + $0x10] sm:$0xff]  ;;  %v10197_v63 = vpack.c.bf16 %v1493_v61, %v1492_v60  ;;  %v1504_v37 = vld [vmem:[%s13227_s9 + $0x60] sm:$0xff] }
 0x13c   : > { %1730 = vst [vmem:[#allocation3 + $0x20] sm:$0xff] %v13240_v59  ;;  %1731 = vst [vmem:[#allocation3 + $0x28] sm:$0x3] %v13240_v59 }
 0x13d   : > { %9198 = vmatprep.mubr.bf16.mxu1 %v1139_v1  ;;  %1732 = vst [vmem:[#allocation3 + $0x30] sm:$0xff] %v13240_v59  ;;  %1733 = vst [vmem:[#allocation3 + $0x38] sm:$0xff] %v13240_v59  ;;  %10198 = vmatpush3.bf16.msra.mxu1 %v10197_v63 }
 0x13e   : > { %9199 = vmatmul.mubr.bf16.gmra.mrb[28].mxu1 %v1140_v0  ;;  %10177 = vmatpush3.bf16.msra.mxu0 %v10176_v4  ;;  %1734 = vst [vmem:[#allocation3 + $0x40] sm:$0x3] %v13240_v59  ;;  %1735 = vst [vmem:[#allocation3 + $0x48] sm:$0xff] %v13240_v59  ;;  %v1495_v0 = vld [vmem:[%s13227_s9 + $0x18] sm:$0xff]  ;;  %v10206_v4 = vpack.c.bf16 %v1499_v2, %v1498_v16 }
 0x13f   : > { %10178 = vmatprep.subr.bf16.mxu0 %v10964_v11  ;;  %1736 = vst [vmem:[#allocation3 + $0x50] sm:$0xff] %v13240_v59  ;;  %1737 = vst [vmem:[#allocation3 + $0x58] sm:$0x3] %v13240_v59  ;;  %9269 = vmatprep.mubr.msk.f32.mxu1 %vm10965_vm1, %v13240_v59  ;;  %v10200_v1 = vpack.c.bf16 %v1495_v0, %v1494_v62 }
 0x140   : > { %1738 = vst [vmem:[#allocation3 + $0x60] sm:$0xff] %v13240_v59  ;;  %1739 = vst [vmem:[#allocation3 + $0x68] sm:$0xff] %v13240_v59  ;;  %10199 = vmatprep.subr.bf16.mxu1 %v10964_v11 }
 0x141   : > { %1740 = vst [vmem:[#allocation3 + $0x70] sm:$0x3] %v13240_v59  ;;  %1741 = vst [vmem:[#allocation3 + $0x78] sm:$0xff] %v13240_v59  ;;  %10201 = vmatpush3.bf16.msra.mxu1 %v10200_v1 }
 0x142   : > { %10180 = vmatpush3.bf16.msra.mxu0 %v10179_v27  ;;  %1742 = vst [vmem:[#allocation3 + $0x80] sm:$0xff] %v13240_v59  ;;  %1743 = vst [vmem:[#allocation3 + $0x88] sm:$0x3] %v13240_v59  ;;  %10202 = vmatprep.subr.bf16.mxu1 %v10964_v11  ;;  %v10209_v27 = vpack.c.bf16 %v1501_v21, %v1500_v17 }
 0x143   : > { %10181 = vmatprep.subr.bf16.mxu0 %v10964_v11  ;;  %1744 = vst [vmem:[#allocation3 + $0x90] sm:$0xff] %v13240_v59  ;;  %1745 = vst [vmem:[#allocation3 + $0x98] sm:$0xff] %v13240_v59 }
 0x144   : > { %1746 = vst [vmem:[#allocation3 + $0xa0] sm:$0x3] %v13240_v59  ;;  %1747 = vst [vmem:[#allocation3 + $0xa8] sm:$0xff] %v13240_v59 }
 0x145   : > { %1748 = vst [vmem:[#allocation3 + $0xb0] sm:$0xff] %v13240_v59  ;;  %1749 = vst [vmem:[#allocation3 + $0xb8] sm:$0x3] %v13240_v59  ;;  %10204 = vmatpush3.bf16.msra.mxu1 %v10203_v13 }
 0x146   : > { %10183 = vmatpush3.bf16.msra.mxu0 %v10182_v36  ;;  %1750 = vst [vmem:[#allocation3 + $0xc0] sm:$0xff] %v13240_v59  ;;  %1751 = vst [vmem:[#allocation3 + $0xc8] sm:$0xff] %v13240_v59  ;;  %10205 = vmatprep.subr.bf16.mxu1 %v10964_v11  ;;  %v10212_v36 = vpack.c.bf16 %v1503_v31, %v1502_v28 }
 0x147   : > { %10184 = vmatprep.subr.bf16.mxu0 %v10964_v11  ;;  %1752 = vst [vmem:[#allocation3 + $0xd0] sm:$0x3] %v13240_v59  ;;  %1753 = vst [vmem:[#allocation3 + $0xd8] sm:$0xff] %v13240_v59 }
 0x148   : > { %1754 = vst [vmem:[#allocation3 + $0xe0] sm:$0xff] %v13240_v59  ;;  %1755 = vst [vmem:[#allocation3 + $0xe8] sm:$0x3] %v13240_v59 }
 0x149   : > { %1756 = vst [vmem:[#allocation3 + $0xf0] sm:$0xff] %v13240_v59  ;;  %1757 = vst [vmem:[#allocation3 + $0xf8] sm:$0xff] %v13240_v59  ;;  %10207 = vmatpush3.bf16.msra.mxu1 %v10206_v4 }
 0x14a   : > { %10186 = vmatpush3.bf16.msra.mxu0 %v10185_v39  ;;  %1758 = vst [vmem:[#allocation3 + $0x100] sm:$0x3] %v13240_v59  ;;  %1759 = vst [vmem:[#allocation3 + $0x108] sm:$0xff] %v13240_v59  ;;  %10208 = vmatprep.subr.bf16.mxu1 %v10964_v11  ;;  %v10215_v39 = vpack.c.bf16 %v1505_v38, %v1504_v37 }
 0x14b   : > { %10187 = vmatprep.subr.bf16.mxu0 %v10964_v11  ;;  %1760 = vst [vmem:[#allocation3 + $0x110] sm:$0xff] %v13240_v59  ;;  %1761 = vst [vmem:[#allocation3 + $0x118] sm:$0x3] %v13240_v59 }
 0x14c   : > { %1762 = vst [vmem:[#allocation3 + $0x120] sm:$0xff] %v13240_v59  ;;  %1763 = vst [vmem:[#allocation3 + $0x128] sm:$0xff] %v13240_v59 }
 0x14d   : > { %1764 = vst [vmem:[#allocation3 + $0x130] sm:$0x3] %v13240_v59  ;;  %1765 = vst [vmem:[#allocation3 + $0x138] sm:$0xff] %v13240_v59  ;;  %10210 = vmatpush3.bf16.msra.mxu1 %v10209_v27 }
 0x14e   : > { %10189 = vmatpush3.bf16.msra.mxu0 %v10188_v44  ;;  %1766 = vst [vmem:[#allocation3 + $0x140] sm:$0xff] %v13240_v59  ;;  %1767 = vst [vmem:[#allocation3 + $0x148] sm:$0x3] %v13240_v59  ;;  %10211 = vmatprep.subr.bf16.mxu1 %v10964_v11  ;;  %v10218_v44 = vpack.c.bf16 %v1507_v41, %v1506_v40 }
 0x14f   : > { %10190 = vmatprep.subr.bf16.mxu0 %v10964_v11  ;;  %1768 = vst [vmem:[#allocation3 + $0x150] sm:$0xff] %v13240_v59  ;;  %1769 = vst [vmem:[#allocation3 + $0x158] sm:$0xff] %v13240_v59 }
 0x150   : > { %1770 = vst [vmem:[#allocation3 + $0x160] sm:$0x3] %v13240_v59  ;;  %1771 = vst [vmem:[#allocation3 + $0x168] sm:$0xff] %v13240_v59 }
 0x151   : > { %1772 = vst [vmem:[#allocation3 + $0x170] sm:$0xff] %v13240_v59  ;;  %1773 = vst [vmem:[#allocation3 + $0x178] sm:$0x3] %v13240_v59  ;;  %10213 = vmatpush3.bf16.msra.mxu1 %v10212_v36 }
 0x152   : > { %10192 = vmatpush3.bf16.msra.mxu0 %v10191_v49  ;;  %1774 = vst [vmem:[#allocation3 + $0x180] sm:$0xff] %v13240_v59  ;;  %1775 = vst [vmem:[#allocation3 + $0x188] sm:$0xff] %v13240_v59  ;;  %10214 = vmatprep.subr.bf16.mxu1 %v10964_v11 }
 0x153   : > { %10193 = vmatprep.subr.bf16.mxu0 %v10964_v11  ;;  %1776 = vst [vmem:[#allocation3 + $0x190] sm:$0x3] %v13240_v59  ;;  %1777 = vst [vmem:[#allocation3 + $0x198] sm:$0xff] %v13240_v59 }
 0x154   : > { %1778 = vst [vmem:[#allocation3 + $0x1a0] sm:$0xff] %v13240_v59  ;;  %1779 = vst [vmem:[#allocation3 + $0x1a8] sm:$0x3] %v13240_v59 }
 0x155   : > { %10216 = vmatpush3.bf16.msra.mxu1 %v10215_v39 }
 0x156   : > { %10195 = vmatpush3.bf16.msra.mxu0 %v10194_v58  ;;  %10217 = vmatprep.subr.bf16.mxu1 %v10964_v11 }
 0x159   : > { %10219 = vmatpush3.bf16.msra.mxu1 %v10218_v44 }
 0x1d9   : > { %v11582_v45 = vpop.f32.mrb[0].mxu1 }
 0x1da   : > { %v11584_v48 = vpop.f32.mrb[1].mxu1 }
 0x1db   : > { %v11586_v49 = vpop.f32.mrb[2].mxu1 }
 0x1dc   : > { %v11588_v52 = vpop.f32.mrb[3].mxu1 }
 0x1dd   : > { %v1366_v53 = vadd.f32 %v11588_v52, %v11584_v48 }
 0x1df   : > { %v1367_v58 = vadd.f32 %v11582_v45, %v1366_v53 }
 0x1e1   : > { %v11593_v60 = vpop.f32.mrb[4].mxu1  ;;  %v1368_v61 = vadd.f32 %v11586_v49, %v1367_v58 }
 0x1e2   : > { %v11596_v62 = vpop.f32.mrb[5].mxu1 }
 0x1e3   : > { %v1369_v11 = vadd.f32 %v1368_v61, %v11596_v62  ;;  %v11599_v63 = vpop.f32.mrb[6].mxu1 }
 0x1e4   : > { %v11601_v0 = vpop.f32.mrb[7].mxu1 }
 0x1e5   : > { %v1370_v1 = vadd.f32 %v1369_v11, %v11601_v0 }
 0x1e7   : > { %v1371_v18 = vadd.f32 %v11593_v60, %v1370_v1 }
 0x1e9   : > { %v11605_v26 = vpop.f32.mrb[8].mxu1  ;;  %v1372_v13 = vadd.f32 %v11599_v63, %v1371_v18 }
 0x1ea   : > { %v11608_v16 = vpop.f32.mrb[9].mxu1 }
 0x1eb   : > { %v1373_v2 = vadd.f32 %v1372_v13, %v11608_v16  ;;  %v11611_v4 = vpop.f32.mrb[10].mxu1 }
 0x1ec   : > { %v11613_v17 = vpop.f32.mrb[11].mxu1 }
 0x1ed   : > { %v1374_v21 = vadd.f32 %v1373_v2, %v11613_v17 }
 0x1ef   : > { %v1375_v27 = vadd.f32 %v11605_v26, %v1374_v21 }
 0x1f1   : > { %v11617_v28 = vpop.f32.mrb[12].mxu1  ;;  %v1376_v31 = vadd.f32 %v11611_v4, %v1375_v27 }
 0x1f2   : > { %v11620_v36 = vpop.f32.mrb[13].mxu1 }
 0x1f3   : > { %v1377_v37 = vadd.f32 %v1376_v31, %v11620_v36  ;;  %v11623_v38 = vpop.f32.mrb[14].mxu1 }
 0x1f4   : > { %v11625_v39 = vpop.f32.mrb[15].mxu1 }
 0x1f5   : > { %v1378_v40 = vadd.f32 %v1377_v37, %v11625_v39 }
 0x1f7   : > { %v1379_v41 = vadd.f32 %v11617_v28, %v1378_v40 }
 0x1f9   : > { %v11629_v44 = vpop.f32.mrb[16].mxu1  ;;  %v1380_v53 = vadd.f32 %v11623_v38, %v1379_v41 }
 0x1fa   : > { %v11632_v58 = vpop.f32.mrb[17].mxu1 }
 0x1fb   : > { %v1381_v61 = vadd.f32 %v1380_v53, %v11632_v58  ;;  %v11635_v11 = vpop.f32.mrb[18].mxu1 }
 0x1fc   : > { %v11637_v1 = vpop.f32.mrb[19].mxu1 }
 0x1fd   : > { %v1382_v18 = vadd.f32 %v1381_v61, %v11637_v1 }
 0x1ff   : > { %v1383_v13 = vadd.f32 %v11629_v44, %v1382_v18 }
 0x201   : > { %v11641_v2 = vpop.f32.mrb[20].mxu1  ;;  %v1384_v21 = vadd.f32 %v11635_v11, %v1383_v13 }
 0x202   : > { %v11644_v27 = vpop.f32.mrb[21].mxu1 }
 0x203   : > { %v1385_v31 = vadd.f32 %v1384_v21, %v11644_v27  ;;  %v11647_v37 = vpop.f32.mrb[22].mxu1 }
 0x204   : > { %v11649_v40 = vpop.f32.mrb[23].mxu1 }
 0x205   : > { %v1386_v41 = vadd.f32 %v1385_v31, %v11649_v40 }
 0x207   : > { %v1387_v53 = vadd.f32 %v11641_v2, %v1386_v41 }
 0x209   : > { %v11653_v59 = vpop.f32.mrb[24].mxu1  ;;  %v1388_v61 = vadd.f32 %v11647_v37, %v1387_v53 }
 0x20a   : > { %v11656_v18 = vpop.f32.mrb[25].mxu1 }
 0x20b   : > { %v1389_v13 = vadd.f32 %v1388_v61, %v11656_v18  ;;  %v11659_v51 = vpop.f32.mrb[26].mxu1 }
 0x20c   : > { %v11661_v50 = vpop.f32.mrb[27].mxu1 }
 0x20d   : > { %v1390_v21 = vadd.f32 %v1389_v13, %v11661_v50 }
 0x20f   : > { %v1391_v25 = vadd.f32 %v11653_v59, %v1390_v21 }
 0x211   : > { %v11665_v24 = vpop.f32.mrb[28].mxu1  ;;  %v1392_v31 = vadd.f32 %v11659_v51, %v1391_v25 }
 0x212   : > { %v11668_v41 = vpop.f32.mrb[29].mxu1 }
 0x213   : > { %v1393_v53 = vadd.f32 %v1392_v31, %v11668_v41  ;;  %v11671_v23 = vpop.f32.mrb[30].mxu1  ;;  %v1420_v31 = vld [vmem:[%s13226_s8] sm:$0x1] }
 0x214   : > { %v11673_v22 = vpop.f32.mrb[31].mxu1 }
 0x215   : > { %v1394_v61 = vadd.f32 %v1393_v53, %v11673_v22 }
 0x217   : > { %v1395_v57 = vadd.f32 %v11665_v24, %v1394_v61 }
 0x219   : > { %v1396_v13 = vadd.f32 %v11671_v23, %v1395_v57  ;;  %v1508_v57 = vld [vmem:[%s13228_s10] sm:$0x1] }
 0x21b   : > { %v1397_v56 = vrot.slane %v1396_v13, 4 }
 0x21d   : > { %v1398_v21 = vadd.f32 %v1397_v56, %v1396_v13 }
 0x21f   : > { %v1399_v55 = vrot.slane %v1398_v21, 2 }
 0x221   : > { %v1400_v54 = vadd.f32 %v1399_v55, %v1398_v21 }
 0x223   : > { %v1401_v35 = vrot.slane %v1400_v54, 1 }
 0x225   : > { %v1402_v25 = vadd.f32 %v1401_v35, %v1400_v54  ;;  %v1587_v54 = vlaneseq }
 0x227   : > { %v1403_v34 = vmul.f32 0.00390625, %v1402_v25  ;;  %v1588_v21 = vshrl.u32 %v1587_v54, 7 }
 0x229   : > { %9235 = vmatmul.mubr.f32.vlgmr.msra.gmra.mrb[32].mxu0 %v1403_v34 }
 0x2fc   : > { %v1487_v33 = vpop.f32.mrb[32].mxu0 }
 0x2fd   : > { %v1488_v32 = vadd.f32 %v1487_v33, %v1420_v31  ;;  %v9236_v10 = vpop.f32.mrb[33].mxu0 }
 0x2fe   : > { %v1585_v10 = vld [vmem:[%s13229_s11] sm:$0x1] }
 0x2ff   : > { %v1491_v53 = vmax.f32 %v1488_v32, 0.0  ;;  %v1589_v32 = vsub.s32 0, %v1588_v21 }
 0x301   : > { %9270 = vmatmul.mubr.f32.vlgmr.msra.gmra.mrb[32].mxu1 %v1491_v53 }
 0x3d4   : > { %v1575_v56 = vpop.f32.mrb[32].mxu1 }
 0x3d5   : > { %v1576_v61 = vadd.f32 %v1575_v56, %v1508_v57  ;;  %v9271_v55 = vpop.f32.mrb[33].mxu1 }
 0x3d7   : > { %v8163_v13 = vmul.f32 -1.442695, %v1576_v61 }
 0x3d9   : > { %10801 = vpow2.f32 %v8163_v13 }
 0x3e3   : > { %v10802_v35 = vpop.eup %10801 }
 0x3e4   : > { %v1582_v34 = vadd.f32 1.0, %v10802_v35 }
 0x3e6   : > { %10803 = vrcp.f32 %v1582_v34 }
 0x3f0   : > { %v10804_v33 = vpop.eup %10803 }
 0x3f1   : > { %v1586_v25 = vmul.f32 %v10804_v33, %v1585_v10 }
 0x3f3   : > { %v1590_v31 = vrot.slane %v1586_v25, %v1589_v32 }
 0x3f5   : > { %v1591_v53 = vmul.f32 %v1590_v31, %v11584_v48  ;;  %v1592_v57 = vmul.f32 %v1590_v31, %v11588_v52  ;;  %v1593_v56 = vmul.f32 %v11582_v45, %v1590_v31  ;;  %v1594_v61 = vmul.f32 %v11586_v49, %v1590_v31 }
 0x3f6   : > { %v1595_v55 = vmul.f32 %v1590_v31, %v11596_v62  ;;  %v1596_v13 = vmul.f32 %v1590_v31, %v11601_v0  ;;  %v1597_v35 = vmul.f32 %v11593_v60, %v1590_v31  ;;  %v1598_v34 = vmul.f32 %v11599_v63, %v1590_v31 }
 0x3f7   : > { %v1599_v54 = vmul.f32 %v1590_v31, %v11608_v16  ;;  %v1600_v21 = vmul.f32 %v1590_v31, %v11613_v17  ;;  %v1601_v48 = vmul.f32 %v11605_v26, %v1590_v31  ;;  %v1602_v52 = vmul.f32 %v11611_v4, %v1590_v31 }
 0x3f8   : > { %v1603_v45 = vmul.f32 %v1590_v31, %v11620_v36  ;;  %v1604_v49 = vmul.f32 %v1590_v31, %v11625_v39  ;;  %v1605_v62 = vmul.f32 %v11617_v28, %v1590_v31  ;;  %v1606_v0 = vmul.f32 %v11623_v38, %v1590_v31  ;;  %v8164_v28 = vld [vmem:[%s13230_s12] ss:$0 sm:$0xff] }
 0x3f9   : > { %v1607_v60 = vmul.f32 %v1590_v31, %v11632_v58  ;;  %v1608_v63 = vmul.f32 %v1590_v31, %v11637_v1  ;;  %v1609_v16 = vmul.f32 %v11629_v44, %v1590_v31  ;;  %v1610_v17 = vmul.f32 %v11635_v11, %v1590_v31 }
 0x3fa   : > { %v1611_v26 = vmul.f32 %v1590_v31, %v11644_v27  ;;  %v1612_v4 = vmul.f32 %v1590_v31, %v11649_v40  ;;  %v1613_v36 = vmul.f32 %v11641_v2, %v1590_v31  ;;  %v1614_v39 = vmul.f32 %v11647_v37, %v1590_v31 }
 0x3fb   : > { %v1615_v38 = vmul.f32 %v1590_v31, %v11656_v18  ;;  %v1616_v58 = vmul.f32 %v1590_v31, %v11661_v50  ;;  %v1617_v44 = vmul.f32 %v11653_v59, %v1590_v31  ;;  %v1618_v11 = vmul.f32 %v11659_v51, %v1590_v31 }
 0x3fc   : > { %v1619_v1 = vmul.f32 %v1590_v31, %v11668_v41  ;;  %v1620_v27 = vmul.f32 %v1590_v31, %v11673_v22  ;;  %v1621_v2 = vmul.f32 %v11665_v24, %v1590_v31  ;;  %v1622_v37 = vmul.f32 %v11671_v23, %v1590_v31 }
 0x3fd   : > { %v1630_v40 = vadd.f32 %v8164_v28, %v1591_v53  ;;  %v1631_v10 = vadd.f32 %v8164_v28, %v1592_v57  ;;  %v1632_v32 = vadd.f32 %v8164_v28, %v1593_v56  ;;  %v1633_v33 = vadd.f32 %v8164_v28, %v1594_v61 }
 0x3fe   : > { %v1634_v25 = vadd.f32 %v8164_v28, %v1595_v55  ;;  %v1635_v18 = vadd.f32 %v8164_v28, %v1596_v13  ;;  %v1636_v6 = vadd.f32 %v8164_v28, %v1597_v35  ;;  %v1637_v50 = vadd.f32 %v8164_v28, %v1598_v34 }
 0x3ff   : > { %v1638_v5 = vadd.f32 %v8164_v28, %v1599_v54  ;;  %v1639_v59 = vadd.f32 %v8164_v28, %v1600_v21  ;;  %v1640_v3 = vadd.f32 %v8164_v28, %v1601_v48  ;;  %v1641_v51 = vadd.f32 %v8164_v28, %v1602_v52 }
 0x400   : > { %v1642_v47 = vadd.f32 %v8164_v28, %v1603_v45  ;;  %v1643_v41 = vadd.f32 %v8164_v28, %v1604_v49  ;;  %v1644_v46 = vadd.f32 %v8164_v28, %v1605_v62  ;;  %v1645_v22 = vadd.f32 %v8164_v28, %v1606_v0 }
 0x401   : > { %v1646_v43 = vadd.f32 %v8164_v28, %v1607_v60  ;;  %v1647_v24 = vadd.f32 %v8164_v28, %v1608_v63  ;;  %v1648_v42 = vadd.f32 %v8164_v28, %v1609_v16  ;;  %v1649_v23 = vadd.f32 %v8164_v28, %v1610_v17 }
 0x402   : > { %v11722_v31 = vadd.f32 %v8164_v28, %v1611_v26  ;;  %v11724_v53 = vadd.f32 %v8164_v28, %v1612_v4  ;;  %v11726_v57 = vadd.f32 %v8164_v28, %v1613_v36  ;;  %v11728_v56 = vadd.f32 %v8164_v28, %v1614_v39 }
 0x403   : > { %v11730_v61 = vadd.f32 %v8164_v28, %v1615_v38  ;;  %v11732_v55 = vadd.f32 %v8164_v28, %v1616_v58  ;;  %v11734_v13 = vadd.f32 %v8164_v28, %v1617_v44  ;;  %v11736_v35 = vadd.f32 %v8164_v28, %v1618_v11 }
 0x404   : > { %v11738_v34 = vadd.f32 %v8164_v28, %v1619_v1  ;;  %v11740_v54 = vadd.f32 %v8164_v28, %v1620_v27  ;;  %v11742_v21 = vadd.f32 %v8164_v28, %v1621_v2  ;;  %v11744_v48 = vadd.f32 %v8164_v28, %v1622_v37 }
 0x405   : > { %v1662_v52 = vmax.f32 %v1630_v40, 0.0  ;;  %v1663_v45 = vmax.f32 %v1631_v10, 0.0  ;;  %v1664_v49 = vmax.f32 %v1632_v32, 0.0  ;;  %v1665_v62 = vmax.f32 %v1633_v33, 0.0 }
 0x406   : > { %v1666_v0 = vmax.f32 %v1634_v25, 0.0  ;;  %v1667_v60 = vmax.f32 %v1635_v18, 0.0  ;;  %v1668_v63 = vmax.f32 %v1636_v6, 0.0  ;;  %v1669_v16 = vmax.f32 %v1637_v50, 0.0 }
 0x407   : > { %v1670_v17 = vmax.f32 %v1638_v5, 0.0  ;;  %v1671_v26 = vmax.f32 %v1639_v59, 0.0  ;;  %v1672_v4 = vmax.f32 %v1640_v3, 0.0  ;;  %v1673_v36 = vmax.f32 %v1641_v51, 0.0  ;;  %1844 = vst [vmem:[#allocation3 + $0x19] sm:$0xff] %v1662_v52  ;;  %1846 = vst [vmem:[#allocation3 + $0x21] sm:$0xff] %v1663_v45 }
 0x408   : > { %1848 = vst [vmem:[#allocation3 + $0x31] sm:$0xff] %v1664_v49  ;;  %1850 = vst [vmem:[#allocation3 + $0x39] sm:$0xff] %v1665_v62  ;;  %v1674_v39 = vmax.f32 %v1642_v47, 0.0  ;;  %v1675_v38 = vmax.f32 %v1643_v41, 0.0  ;;  %v1676_v28 = vmax.f32 %v1644_v46, 0.0  ;;  %v1677_v58 = vmax.f32 %v1645_v22, 0.0 }
 0x409   : > { %1852 = vst [vmem:[#allocation3 + $0x49] sm:$0xff] %v1666_v0  ;;  %1854 = vst [vmem:[#allocation3 + $0x51] sm:$0xff] %v1667_v60  ;;  %v1678_v44 = vmax.f32 %v1646_v43, 0.0  ;;  %v1679_v11 = vmax.f32 %v1647_v24, 0.0  ;;  %v1680_v6 = vmax.f32 %v1648_v42, 0.0  ;;  %v1681_v1 = vmax.f32 %v1649_v23, 0.0 }
 0x40a   : > { %1856 = vst [vmem:[#allocation3 + $0x61] sm:$0xff] %v1668_v63  ;;  %1858 = vst [vmem:[#allocation3 + $0x69] sm:$0xff] %v1669_v16  ;;  %v1682_v3 = vmax.f32 %v11722_v31, 0.0  ;;  %v1683_v5 = vmax.f32 %v11724_v53, 0.0  ;;  %v1684_v47 = vmax.f32 %v11726_v57, 0.0  ;;  %v1685_v46 = vmax.f32 %v11728_v56, 0.0 }
 0x40b   : > { %1860 = vst [vmem:[#allocation3 + $0x79] sm:$0xff] %v1670_v17  ;;  %1862 = vst [vmem:[#allocation3 + $0x81] sm:$0xff] %v1671_v26  ;;  %v1686_v43 = vmax.f32 %v11730_v61, 0.0  ;;  %v1687_v42 = vmax.f32 %v11732_v55, 0.0  ;;  %v1688_v27 = vmax.f32 %v11734_v13, 0.0  ;;  %v1689_v2 = vmax.f32 %v11736_v35, 0.0 }
 0x40c   : > { %1864 = vst [vmem:[#allocation3 + $0x91] sm:$0xff] %v1672_v4  ;;  %1866 = vst [vmem:[#allocation3 + $0x99] sm:$0xff] %v1673_v36  ;;  %v1690_v37 = vmax.f32 %v11738_v34, 0.0  ;;  %v1691_v40 = vmax.f32 %v11740_v54, 0.0  ;;  %v1692_v10 = vmax.f32 %v11742_v21, 0.0  ;;  %v1693_v32 = vmax.f32 %v11744_v48, 0.0 }
 0x40d   : > { %1868 = vst [vmem:[#allocation3 + $0xa9] sm:$0xff] %v1674_v39  ;;  %1870 = vst [vmem:[#allocation3 + $0xb1] sm:$0xff] %v1675_v38 }
 0x40e   : > { %1872 = vst [vmem:[#allocation3 + $0xc1] sm:$0xff] %v1676_v28  ;;  %1874 = vst [vmem:[#allocation3 + $0xc9] sm:$0xff] %v1677_v58 }
 0x40f   : > { %1876 = vst [vmem:[#allocation3 + $0xd9] sm:$0xff] %v1678_v44  ;;  %1878 = vst [vmem:[#allocation3 + $0xe1] sm:$0xff] %v1679_v11 }
 0x410   : > { %1880 = vst [vmem:[#allocation3 + $0xf1] sm:$0xff] %v1680_v6  ;;  %1882 = vst [vmem:[#allocation3 + $0xf9] sm:$0xff] %v1681_v1 }
 0x411   : > { %1884 = vst [vmem:[#allocation3 + $0x109] sm:$0xff] %v1682_v3  ;;  %1886 = vst [vmem:[#allocation3 + $0x111] sm:$0xff] %v1683_v5 }
 0x412   : > { %1888 = vst [vmem:[#allocation3 + $0x121] sm:$0xff] %v1684_v47  ;;  %1890 = vst [vmem:[#allocation3 + $0x129] sm:$0xff] %v1685_v46 }
 0x413   : > { %1892 = vst [vmem:[#allocation3 + $0x139] sm:$0xff] %v1686_v43  ;;  %1894 = vst [vmem:[#allocation3 + $0x141] sm:$0xff] %v1687_v42 }
 0x414   : > { %1896 = vst [vmem:[#allocation3 + $0x151] sm:$0xff] %v1688_v27  ;;  %1898 = vst [vmem:[#allocation3 + $0x159] sm:$0xff] %v1689_v2 }
 0x415   : > { %1900 = vst [vmem:[#allocation3 + $0x169] sm:$0xff] %v1690_v37  ;;  %1902 = vst [vmem:[#allocation3 + $0x171] sm:$0xff] %v1691_v40 }
 0x416   : > { %1904 = vst [vmem:[#allocation3 + $0x181] sm:$0xff] %v1692_v10  ;;  %1906 = vst [vmem:[#allocation3 + $0x189] sm:$0xff] %v1693_v32 }
 0x417   : > { %1914 = vsyncadd [#allocation4], 4096 }
 0x418   : > { %10956 = dma.done.wait [#allocation4], 4096 }
 0x419   : > { %10957 = vsyncadd [#allocation4], 4294963200  ;;  %v10805_v33 = vld [vmem:[%s13231_s13 + $0x40] sm:$0xff]   ;;  %v10806_v25 = vld [vmem:[%s13231_s13 + $0x48] sm:$0xff]   ;;  %v13317_v24 = vmov 0.0  }
 0x41a   : > { %9272 = vmatprep.subr.bf16.mxu0 %v10805_v33  ;;  %v10807_v18 = vld [vmem:[%s13231_s13 + $0x50] sm:$0xff]   ;;  %v10808_v50 = vld [vmem:[%s13231_s13 + $0x58] sm:$0xff]   ;;  %v1984_v59 = vld [vmem:[#allocation3 + $0x1] sm:$0xff] }
 0x41b   : > { %9273 = vmatpush3.bf16.msra.mxu0 %v10805_v33  ;;  %v1985_v51 = vld [vmem:[#allocation3 + $0x9] sm:$0xff]  ;;  %v10809_v23 = vld [vmem:[%s13231_s13 + $0x60] sm:$0xff]   ;;  %v10812_v57 = vld [vmem:[%s13231_s13 + $0x78] sm:$0xff]  }
 0x41c   : > { %9274 = vmatprep.subr.bf16.mxu0 %v10806_v25  ;;  %v11770_v41 = vld [vmem:[#allocation3 + $0xa] sm:$0xff]  ;;  %v2016_v22 = vpack.c.bf16 %v1985_v51, %v1984_v59  ;;  %v1986_v56 = vld [vmem:[#allocation3 + $0x19] sm:$0xff]  ;;  %v1987_v61 = vld [vmem:[#allocation3 + $0x21] sm:$0xff] }
 0x41d   : > { %4755 = vst [vmem:[#allocation3 + $0x10] sm:$0x3] %v13317_v24  ;;  %v10810_v31 = vld [vmem:[%s13231_s13 + $0x68] sm:$0xff]   ;;  %v10811_v53 = vld [vmem:[%s13231_s13 + $0x70] sm:$0xff]   ;;  %v10813_v55 = vld [vmem:[%s13231_s13] sm:$0xff]   ;;  %v11798_v52 = vpack.c.bf16 %v1987_v61, %v1986_v56 }
 0x41e   : > { %9288 = vmatprep.mubr.bf16.mxu0 %v2016_v22  ;;  %v11788_v13 = vld [vmem:[#allocation3] sm:$0xff]  ;;  %v11790_v35 = vld [vmem:[#allocation3 + $0x8] sm:$0xff]  ;;  %v1988_v54 = vld [vmem:[#allocation3 + $0x31] sm:$0xff] }
 0x41f   : > { %9275 = vmatpush3.bf16.msra.mxu0 %v10806_v25  ;;  %v11792_v34 = vld [vmem:[#allocation3 + $0x2] sm:$0xff]  ;;  %v1989_v21 = vld [vmem:[#allocation3 + $0x39] sm:$0xff]  ;;  %v1991_v0 = vld [vmem:[#allocation3 + $0x51] sm:$0xff] }
 0x420   : > { %9276 = vmatprep.subr.bf16.mxu0 %v10807_v18  ;;  %4753 = vst [vmem:[#allocation3] sm:$0xff] %v13317_v24  ;;  %4754 = vst [vmem:[#allocation3 + $0x8] sm:$0xff] %v13317_v24  ;;  %v2499_v48 = vpack.c.bf16 %v11770_v41, %v11792_v34  ;;  %v11800_v45 = vpack.c.bf16 %v1989_v21, %v1988_v54  ;;  %v10814_v49 = vld [vmem:[%s13231_s13 + $0x8] sm:$0xff]   ;;  %v10815_v16 = vld [vmem:[%s13231_s13 + $0x10] sm:$0xff]  }
 0x421   : > { %v1990_v62 = vld [vmem:[#allocation3 + $0x49] sm:$0xff]  ;;  %v1992_v60 = vld [vmem:[#allocation3 + $0x61] sm:$0xff]  ;;  %v10816_v4 = vld [vmem:[%s13231_s13 + $0x18] sm:$0xff]  }
 0x422   : > { %v1993_v63 = vld [vmem:[#allocation3 + $0x69] sm:$0xff]  ;;  %v11810_v17 = vpack.c.bf16 %v1991_v0, %v1990_v62  ;;  %v1994_v36 = vld [vmem:[#allocation3 + $0x79] sm:$0xff]  ;;  %v1995_v39 = vld [vmem:[#allocation3 + $0x81] sm:$0xff] }
 0x423   : > { %9277 = vmatpush3.bf16.msra.mxu0 %v10807_v18  ;;  %v11812_v26 = vpack.c.bf16 %v1993_v63, %v1992_v60  ;;  %v1996_v38 = vld [vmem:[#allocation3 + $0x91] sm:$0xff]  ;;  %v1997_v28 = vld [vmem:[#allocation3 + $0x99] sm:$0xff]  ;;  %v11826_v6 = vpack.c.bf16 %v1995_v39, %v1994_v36  ;;  %v11830_v3 = vld [vmem:[#allocation3 + $0x22] sm:$0xff] }
 0x424   : > { %9278 = vmatprep.subr.bf16.mxu0 %v10808_v50  ;;  %v10817_v58 = vld [vmem:[%s13231_s13 + $0x20] sm:$0xff]   ;;  %v11822_v44 = vld [vmem:[#allocation3 + $0x18] sm:$0xff]  ;;  %v11832_v5 = vpack.c.bf16 %v1997_v28, %v1996_v38  ;;  %4758 = vst [vmem:[#allocation3 + $0x28] sm:$0x3] %v13317_v24  ;;  %v10818_v47 = vld [vmem:[%s13231_s13 + $0x28] sm:$0xff]  }
 0x425   : > { %v11824_v11 = vld [vmem:[#allocation3 + $0x20] sm:$0xff]  ;;  %v1998_v46 = vld [vmem:[#allocation3 + $0xa9] sm:$0xff]  ;;  %v1999_v43 = vld [vmem:[#allocation3 + $0xb1] sm:$0xff] }
 0x426   : > { %v11828_v1 = vld [vmem:[#allocation3 + $0x1a] sm:$0xff]  ;;  %v2001_v27 = vld [vmem:[#allocation3 + $0xc9] sm:$0xff]  ;;  %v11845_v37 = vpack.c.bf16 %v1999_v43, %v1998_v46  ;;  %v2004_v25 = vld [vmem:[#allocation3 + $0xf1] sm:$0xff]  ;;  %v11882_v39 = vpack.c.bf16 %v11824_v11, %v11822_v44 }
 0x427   : > { %9279 = vmatpush3.bf16.msra.mxu0 %v10808_v50  ;;  %4756 = vst [vmem:[#allocation3 + $0x18] sm:$0xff] %v13317_v24  ;;  %4757 = vst [vmem:[#allocation3 + $0x20] sm:$0xff] %v13317_v24  ;;  %v2000_v42 = vld [vmem:[#allocation3 + $0xc1] sm:$0xff]  ;;  %v10819_v2 = vld [vmem:[%s13231_s13 + $0x30] sm:$0xff]  }
 0x428   : > { %9280 = vmatprep.subr.bf16.mxu0 %v10809_v23  ;;  %v10820_v40 = vld [vmem:[%s13231_s13 + $0x38] sm:$0xff]   ;;  %v11850_v10 = vpack.c.bf16 %v2001_v27, %v2000_v42  ;;  %v2003_v33 = vld [vmem:[#allocation3 + $0xe1] sm:$0xff]  ;;  %v2006_v22 = vld [vmem:[#allocation3 + $0x109] sm:$0xff] }
 0x429   : > { %v2002_v32 = vld [vmem:[#allocation3 + $0xd9] sm:$0xff]  ;;  %v2012_v54 = vld [vmem:[#allocation3 + $0x151] sm:$0xff]  ;;  %v2014_v0 = vld [vmem:[#allocation3 + $0x169] sm:$0xff] }
 0x42a   : > { %v2005_v18 = vld [vmem:[#allocation3 + $0xf9] sm:$0xff]  ;;  %v11857_v59 = vpack.c.bf16 %v2003_v33, %v2002_v32  ;;  %v2015_v60 = vld [vmem:[#allocation3 + $0x171] sm:$0xff]  ;;  %v10822_v28 = vld [vmem:[%s13231_s13 + $0x88] sm:$0xff]  }
 0x42b   : > { %9281 = vmatpush3.bf16.msra.mxu0 %v10809_v23  ;;  %v10821_v50 = vld [vmem:[%s13231_s13 + $0x80] sm:$0xff]   ;;  %v11859_v51 = vpack.c.bf16 %v2005_v18, %v2004_v25  ;;  %v2007_v23 = vld [vmem:[#allocation3 + $0x111] sm:$0xff]  ;;  %v11875_v63 = vpack.c.bf16 %v2015_v60, %v2014_v0  ;;  %v10826_v18 = vld [vmem:[%s13231_s13 + $0xa8] sm:$0xff]  }
 0x42c   : > { %9282 = vmatprep.subr.bf16.mxu0 %v10810_v31  ;;  %v2010_v61 = vld [vmem:[#allocation3 + $0x139] sm:$0xff]  ;;  %v10823_v44 = vld [vmem:[%s13231_s13 + $0x90] sm:$0xff]   ;;  %v2475_v34 = vld [vmem:[#allocation3 + $0x62] sm:$0xff] }
 0x42d   : > { %v2013_v21 = vld [vmem:[#allocation3 + $0x159] sm:$0xff]  ;;  %v1940_v60 = vld [vmem:[#allocation3 + $0xf0] sm:$0xff]  ;;  %v12318_v20 = vld [vmem:[#allocation3 + $0x122] sm:$0xff] }
 0x42e   : > { %v11871_v62 = vpack.c.bf16 %v2013_v21, %v2012_v54  ;;  %v1925_v36 = vld [vmem:[#allocation3 + $0x38] sm:$0xff]  ;;  %v1931_v27 = vld [vmem:[#allocation3 + $0x80] sm:$0xff]  ;;  %v12320_v19 = vld [vmem:[#allocation3 + $0x12a] sm:$0xff] }
 0x42f   : > { %9283 = vmatpush3.bf16.msra.mxu0 %v10810_v31  ;;  %v2008_v31 = vld [vmem:[#allocation3 + $0x121] sm:$0xff]  ;;  %v10824_v43 = vld [vmem:[%s13231_s13 + $0x98] sm:$0xff]   ;;  %v12340_v12 = vld [vmem:[#allocation3 + $0x169] sm:$0xff] }
 0x430   : > { %9284 = vmatprep.subr.bf16.mxu0 %v10811_v53  ;;  %v1930_v42 = vld [vmem:[#allocation3 + $0x78] sm:$0xff]  ;;  %v10825_v32 = vld [vmem:[%s13231_s13 + $0xa0] sm:$0xff]  }
 0x431   : > { %v11906_v33 = vpack.c.bf16 %v1931_v27, %v1930_v42  ;;  %v10828_v54 = vld [vmem:[%s13231_s13 + $0xb8] sm:$0xff]   ;;  %v1939_v0 = vld [vmem:[#allocation3 + $0xe0] sm:$0xff] }
 0x432   : > { %v1938_v21 = vld [vmem:[#allocation3 + $0xd8] sm:$0xff]  ;;  %v1947_v27 = vld [vmem:[#allocation3 + $0x140] sm:$0xff] }
 0x433   : > { %9285 = vmatpush3.bf16.msra.mxu0 %v10811_v53  ;;  %v2009_v53 = vld [vmem:[#allocation3 + $0x129] sm:$0xff]  ;;  %v1946_v42 = vld [vmem:[#allocation3 + $0x138] sm:$0xff]  ;;  %v10869_v30 = vld [vmem:[%s13231_s13 + $0x200] sm:$0xff]  }
 0x434   : > { %9286 = vmatprep.subr.bf16.mxu0 %v10812_v57  ;;  %v11865_v56 = vpack.c.bf16 %v2009_v53, %v2008_v31  ;;  %v1937_v31 = vld [vmem:[#allocation3 + $0xc8] sm:$0xff]  ;;  %v10827_v53 = vld [vmem:[%s13231_s13 + $0xb0] sm:$0xff]   ;;  %v12316_v29 = vld [vmem:[#allocation3 + $0x139] sm:$0xff] }
 0x435   : > { %v2474_v41 = vld [vmem:[#allocation3 + $0x52] sm:$0xff]  ;;  %v12323_v15 = vld [vmem:[#allocation3 + $0x141] sm:$0xff] }
 0x436   : > { %v12330_v14 = vld [vmem:[#allocation3 + $0x142] sm:$0xff]  ;;  %v12342_v9 = vld [vmem:[#allocation3 + $0x152] sm:$0xff]  ;;  %v12344_v8 = vld [vmem:[#allocation3 + $0x15a] sm:$0xff] }
 0x437   : > { %9287 = vmatpush3.bf16.msra.mxu0 %v10812_v57  ;;  %v11863_v57 = vpack.c.bf16 %v2007_v23, %v2006_v22  ;;  %v1935_v22 = vld [vmem:[#allocation3 + $0xb0] sm:$0xff]  ;;  %v1936_v23 = vld [vmem:[#allocation3 + $0xc0] sm:$0xff]  ;;  %13320 = vst [vmem:[#allocation43_spill] sm:$0xff] %v12330_v14  ;;  %13321 = vst [vmem:[#allocation44_spill] sm:$0xff] %v12342_v9 }
 0x438   : > { %9320 = vmatprep.subr.bf16.mxu0 %v10813_v55  ;;  %13322 = vst [vmem:[#allocation45_spill] sm:$0xff] %v12344_v8  ;;  %v12347_v7 = vld [vmem:[#allocation3 + $0x171] sm:$0xff]  ;;  %v12361_v8 = vld [vmem:[#allocation3 + $0x19a] sm:$0xff]  ;;  %v12363_v9 = vld [vmem:[#allocation3 + $0x1a2] sm:$0xff] }
 0x439   : > { %v12354_v14 = vld [vmem:[#allocation3 + $0x172] sm:$0xff] }
 0x43a   : > { %9289 = vmatmul.mubr.bf16.vlgmr.msra.gmra.mrb[36].mxu0 %v11798_v52  ;;  %13324 = vst [vmem:[#allocation47_spill] sm:$0xff] %v12354_v14 }
 0x43b   : > { %9321 = vmatpush3.bf16.msra.mxu0 %v10813_v55  ;;  %9292 = vmatprep.mubr.bf16.mxu0 %v11800_v45  ;;  %v2011_v55 = vld [vmem:[#allocation3 + $0x141] sm:$0xff] }
 0x43c   : > { %9322 = vmatprep.subr.bf16.mxu0 %v10814_v49 }
 0x43f   : > { %9323 = vmatpush3.bf16.msra.mxu0 %v10814_v49  ;;  %v11869_v49 = vpack.c.bf16 %v2011_v55, %v2010_v61  ;;  %v11920_v55 = vpack.c.bf16 %v1937_v31, %v1936_v23  ;;  %v2471_v31 = vld [vmem:[#allocation3 + $0x32] sm:$0xff] }
 0x440   : > { %9324 = vmatprep.subr.bf16.mxu0 %v10815_v16 }
 0x442   : > { %9293 = vmatmul.mubr.bf16.gmra.mrb[40].mxu0 %v11810_v17 }
 0x443   : > { %9296 = vmatprep.mubr.bf16.mxu0 %v11812_v26  ;;  %9325 = vmatpush3.bf16.msra.mxu0 %v10815_v16  ;;  %v1952_v16 = vpack.c.bf16 %v11790_v35, %v11788_v13  ;;  %v1926_v13 = vld [vmem:[#allocation3 + $0x48] sm:$0xff]  ;;  %v1927_v35 = vld [vmem:[#allocation3 + $0x50] sm:$0xff] }
 0x444   : > { %9326 = vmatprep.subr.bf16.mxu0 %v10816_v4  ;;  %v11894_v11 = vpack.c.bf16 %v1927_v35, %v1926_v13  ;;  %v1942_v13 = vld [vmem:[#allocation3 + $0x108] sm:$0xff]  ;;  %v1943_v35 = vld [vmem:[#allocation3 + $0x110] sm:$0xff] }
 0x447   : > { %9327 = vmatpush3.bf16.msra.mxu0 %v10816_v4  ;;  %v1924_v4 = vld [vmem:[#allocation3 + $0x30] sm:$0xff] }
 0x448   : > { %9328 = vmatprep.subr.bf16.mxu0 %v10817_v58  ;;  %v11884_v38 = vpack.c.bf16 %v1925_v36, %v1924_v4  ;;  %v10829_v4 = vld [vmem:[%s13231_s13 + $0xc0] sm:$0xff]   ;;  %v11930_v36 = vpack.c.bf16 %v1939_v0, %v1938_v21  ;;  %v10830_v0 = vld [vmem:[%s13231_s13 + $0xc8] sm:$0xff]  }
 0x44a   : > { %9297 = vmatmul.mubr.bf16.gmra.mrb[44].mxu0 %v11826_v6 }
 0x44b   : > { %9300 = vmatprep.mubr.bf16.mxu0 %v11832_v5  ;;  %9329 = vmatpush3.bf16.msra.mxu0 %v10817_v58  ;;  %v1928_v58 = vld [vmem:[#allocation3 + $0x60] sm:$0xff] }
 0x44c   : > { %9330 = vmatprep.subr.bf16.mxu0 %v10818_v47 }
 0x44f   : > { %9331 = vmatpush3.bf16.msra.mxu0 %v10818_v47  ;;  %v1929_v47 = vld [vmem:[#allocation3 + $0x68] sm:$0xff] }
 0x450   : > { %9332 = vmatprep.subr.bf16.mxu0 %v10819_v2  ;;  %v11896_v46 = vpack.c.bf16 %v1929_v47, %v1928_v58  ;;  %v1944_v58 = vld [vmem:[#allocation3 + $0x120] sm:$0xff]  ;;  %v1945_v47 = vld [vmem:[#allocation3 + $0x128] sm:$0xff] }
 0x452   : > { %9301 = vmatmul.mubr.bf16.gmra.mrb[48].mxu0 %v11845_v37 }
 0x453   : > { %9304 = vmatprep.mubr.bf16.mxu0 %v11850_v10  ;;  %9333 = vmatpush3.bf16.msra.mxu0 %v10819_v2  ;;  %v1932_v2 = vld [vmem:[#allocation3 + $0x90] sm:$0xff] }
 0x454   : > { %9334 = vmatprep.subr.bf16.mxu0 %v10820_v40 }
 0x457   : > { %9335 = vmatpush3.bf16.msra.mxu0 %v10820_v40  ;;  %v1933_v40 = vld [vmem:[#allocation3 + $0x98] sm:$0xff] }
 0x458   : > { %9368 = vmatprep.subr.bf16.mxu0 %v10821_v50  ;;  %v11908_v25 = vpack.c.bf16 %v1933_v40, %v1932_v2  ;;  %v1948_v2 = vld [vmem:[#allocation3 + $0x150] sm:$0xff]  ;;  %v1949_v40 = vld [vmem:[#allocation3 + $0x158] sm:$0xff] }
 0x45a   : > { %9305 = vmatmul.mubr.bf16.gmra.mrb[52].mxu0 %v11857_v59 }
 0x45b   : > { %9308 = vmatprep.mubr.bf16.mxu0 %v11859_v51 }
 0x462   : > { %9309 = vmatmul.mubr.bf16.gmra.mrb[56].mxu0 %v11863_v57 }
 0x463   : > { %9312 = vmatprep.mubr.bf16.mxu0 %v11865_v56 }
 0x46a   : > { %9313 = vmatmul.mubr.bf16.gmra.mrb[60].mxu0 %v11869_v49 }
 0x46b   : > { %9316 = vmatprep.mubr.bf16.mxu0 %v11871_v62 }
 0x472   : > { %9317 = vmatmul.mubr.bf16.gmra.mrb[64].mxu0 %v11875_v63 }
 0x473   : > { %9336 = vmatprep.mubr.bf16.mxu0 %v1952_v16  ;;  %v1941_v16 = vld [vmem:[#allocation3 + $0xf8] sm:$0xff] }
 0x47a   : > { %9337 = vmatmul.mubr.bf16.vlgmr.msra.gmra.mrb[36].mxu0 %v11882_v39 }
 0x47b   : > { %9369 = vmatpush3.bf16.msra.mxu0 %v10821_v50  ;;  %9340 = vmatprep.mubr.bf16.mxu0 %v11884_v38  ;;  %v1934_v50 = vld [vmem:[#allocation3 + $0xa8] sm:$0xff] }
 0x47c   : > { %9370 = vmatprep.subr.bf16.mxu0 %v10822_v28  ;;  %v11918_v61 = vpack.c.bf16 %v1935_v22, %v1934_v50  ;;  %v1950_v50 = vld [vmem:[#allocation3 + $0x168] sm:$0xff]  ;;  %v1951_v22 = vld [vmem:[#allocation3 + $0x170] sm:$0xff] }
 0x47d   : > { %v11948_v23 = vpack.c.bf16 %v1951_v22, %v1950_v50  ;;  %v2481_v50 = vld [vmem:[#allocation3 + $0xaa] sm:$0xff]  ;;  %v2482_v22 = vld [vmem:[#allocation3 + $0xb2] sm:$0xff] }
 0x47f   : > { %9371 = vmatpush3.bf16.msra.mxu0 %v10822_v28  ;;  %v11932_v28 = vpack.c.bf16 %v1941_v16, %v1940_v60  ;;  %v2473_v60 = vld [vmem:[#allocation3 + $0x4a] sm:$0xff] }
 0x480   : > { %9372 = vmatprep.subr.bf16.mxu0 %v10823_v44 }
 0x482   : > { %9341 = vmatmul.mubr.bf16.gmra.mrb[40].mxu0 %v11894_v11 }
 0x483   : > { %9344 = vmatprep.mubr.bf16.mxu0 %v11896_v46  ;;  %9373 = vmatpush3.bf16.msra.mxu0 %v10823_v44  ;;  %v11936_v44 = vpack.c.bf16 %v1943_v35, %v1942_v13  ;;  %v2477_v13 = vld [vmem:[#allocation3 + $0x7a] sm:$0xff]  ;;  %v2478_v35 = vld [vmem:[#allocation3 + $0x82] sm:$0xff] }
 0x484   : > { %9374 = vmatprep.subr.bf16.mxu0 %v10824_v43 }
 0x487   : > { %9375 = vmatpush3.bf16.msra.mxu0 %v10824_v43  ;;  %v11938_v43 = vpack.c.bf16 %v1945_v47, %v1944_v58  ;;  %v2479_v58 = vld [vmem:[#allocation3 + $0x92] sm:$0xff]  ;;  %v2480_v47 = vld [vmem:[#allocation3 + $0x9a] sm:$0xff] }
 0x488   : > { %9376 = vmatprep.subr.bf16.mxu0 %v10825_v32 }
 0x48a   : > { %9345 = vmatmul.mubr.bf16.gmra.mrb[44].mxu0 %v11906_v33 }
 0x48b   : > { %9348 = vmatprep.mubr.bf16.mxu0 %v11908_v25  ;;  %9377 = vmatpush3.bf16.msra.mxu0 %v10825_v32  ;;  %v11942_v32 = vpack.c.bf16 %v1947_v27, %v1946_v42  ;;  %v10833_v42 = vld [vmem:[%s13231_s13 + $0xe0] sm:$0xff]   ;;  %v11980_v27 = vpack.c.bf16 %v2478_v35, %v2477_v13 }
 0x48c   : > { %9378 = vmatprep.subr.bf16.mxu0 %v10826_v18  ;;  %v2488_v13 = vld [vmem:[#allocation3 + $0xfa] sm:$0xff] }
 0x48d   : > { %v10837_v35 = vld [vmem:[%s13231_s13 + $0x100] sm:$0xff]  }
 0x48f   : > { %9379 = vmatpush3.bf16.msra.mxu0 %v10826_v18  ;;  %v11944_v18 = vpack.c.bf16 %v1949_v40, %v1948_v2  ;;  %v11982_v2 = vpack.c.bf16 %v2480_v47, %v2479_v58  ;;  %v10834_v40 = vld [vmem:[%s13231_s13 + $0xe8] sm:$0xff]  }
 0x490   : > { %9380 = vmatprep.subr.bf16.mxu0 %v10827_v53 }
 0x492   : > { %9349 = vmatmul.mubr.bf16.gmra.mrb[48].mxu0 %v11918_v61 }
 0x493   : > { %9352 = vmatprep.mubr.bf16.mxu0 %v11920_v55  ;;  %9381 = vmatpush3.bf16.msra.mxu0 %v10827_v53  ;;  %v2472_v53 = vld [vmem:[#allocation3 + $0x3a] sm:$0xff] }
 0x494   : > { %9382 = vmatprep.subr.bf16.mxu0 %v10828_v54  ;;  %v11958_v21 = vpack.c.bf16 %v2472_v53, %v2471_v31  ;;  %v2483_v31 = vld [vmem:[#allocation3 + $0xc2] sm:$0xff]  ;;  %v2484_v53 = vld [vmem:[#allocation3 + $0xca] sm:$0xff] }
 0x497   : > { %9383 = vmatpush3.bf16.msra.mxu0 %v10828_v54  ;;  %v11956_v54 = vpack.c.bf16 %v11830_v3, %v11828_v1  ;;  %v10831_v1 = vld [vmem:[%s13231_s13 + $0xd0] sm:$0xff]   ;;  %v11968_v3 = vpack.c.bf16 %v2474_v41, %v2473_v60  ;;  %v11992_v60 = vpack.c.bf16 %v2482_v22, %v2481_v50  ;;  %v11994_v41 = vpack.c.bf16 %v2484_v53, %v2483_v31  ;;  %v2491_v50 = vld [vmem:[#allocation3 + $0x122] sm:$0xff] }
 0x498   : > { %9416 = vmatprep.subr.bf16.mxu0 %v10829_v4  ;;  %v2492_v22 = vld [vmem:[#allocation3 + $0x12a] sm:$0xff] }
 0x499   : > { %v12012_v53 = vpack.c.bf16 %v2492_v22, %v2491_v50  ;;  %v10838_v22 = vld [vmem:[%s13231_s13 + $0x108] sm:$0xff]  }
 0x49a   : > { %9353 = vmatmul.mubr.bf16.gmra.mrb[52].mxu0 %v11930_v36 }
 0x49b   : > { %9356 = vmatprep.mubr.bf16.mxu0 %v11932_v28 }
 0x4a2   : > { %9357 = vmatmul.mubr.bf16.gmra.mrb[56].mxu0 %v11936_v44 }
 0x4a3   : > { %9360 = vmatprep.mubr.bf16.mxu0 %v11938_v43 }
 0x4aa   : > { %9361 = vmatmul.mubr.bf16.gmra.mrb[60].mxu0 %v11942_v32 }
 0x4ab   : > { %9364 = vmatprep.mubr.bf16.mxu0 %v11944_v18 }
 0x4b2   : > { %9365 = vmatmul.mubr.bf16.gmra.mrb[64].mxu0 %v11948_v23 }
 0x4b3   : > { %9384 = vmatprep.mubr.bf16.mxu0 %v2499_v48  ;;  %v2476_v48 = vld [vmem:[#allocation3 + $0x6a] sm:$0xff] }
 0x4b4   : > { %v11970_v16 = vpack.c.bf16 %v2476_v48, %v2475_v34  ;;  %v10836_v34 = vld [vmem:[%s13231_s13 + $0xf8] sm:$0xff]  }
 0x4b5   : > { %v2485_v48 = vld [vmem:[#allocation3 + $0xda] sm:$0xff] }
 0x4ba   : > { %9385 = vmatmul.mubr.bf16.vlgmr.msra.gmra.mrb[36].mxu0 %v11956_v54 }
 0x4bb   : > { %9417 = vmatpush3.bf16.msra.mxu0 %v10829_v4  ;;  %9388 = vmatprep.mubr.bf16.mxu0 %v11958_v21  ;;  %v10832_v4 = vld [vmem:[%s13231_s13 + $0xd8] sm:$0xff]  }
 0x4bc   : > { %9418 = vmatprep.subr.bf16.mxu0 %v10830_v0 }
 0x4bf   : > { %9419 = vmatpush3.bf16.msra.mxu0 %v10830_v0  ;;  %v10835_v0 = vld [vmem:[%s13231_s13 + $0xf0] sm:$0xff]  }
 0x4c0   : > { %9420 = vmatprep.subr.bf16.mxu0 %v10831_v1 }
 0x4c2   : > { %9389 = vmatmul.mubr.bf16.gmra.mrb[40].mxu0 %v11968_v3 }
 0x4c3   : > { %9392 = vmatprep.mubr.bf16.mxu0 %v11970_v16  ;;  %9421 = vmatpush3.bf16.msra.mxu0 %v10831_v1  ;;  %v2486_v1 = vld [vmem:[#allocation3 + $0xe2] sm:$0xff] }
 0x4c4   : > { %9422 = vmatprep.subr.bf16.mxu0 %v10832_v4  ;;  %v12004_v58 = vpack.c.bf16 %v2486_v1, %v2485_v48  ;;  %v2494_v48 = vld [vmem:[#allocation3 + $0x142] sm:$0xff]  ;;  %v2496_v1 = vld [vmem:[#allocation3 + $0x15a] sm:$0xff] }
 0x4c7   : > { %9423 = vmatpush3.bf16.msra.mxu0 %v10832_v4  ;;  %v2487_v4 = vld [vmem:[#allocation3 + $0xf2] sm:$0xff] }
 0x4c8   : > { %9424 = vmatprep.subr.bf16.mxu0 %v10833_v42  ;;  %v12006_v47 = vpack.c.bf16 %v2488_v13, %v2487_v4 }
 0x4ca   : > { %9393 = vmatmul.mubr.bf16.gmra.mrb[44].mxu0 %v11980_v27 }
 0x4cb   : > { %9396 = vmatprep.mubr.bf16.mxu0 %v11982_v2  ;;  %9425 = vmatpush3.bf16.msra.mxu0 %v10833_v42  ;;  %v2489_v42 = vld [vmem:[#allocation3 + $0x10a] sm:$0xff] }
 0x4cc   : > { %9426 = vmatprep.subr.bf16.mxu0 %v10834_v40 }
 0x4cf   : > { %9427 = vmatpush3.bf16.msra.mxu0 %v10834_v40  ;;  %v2490_v40 = vld [vmem:[#allocation3 + $0x112] sm:$0xff] }
 0x4d0   : > { %9428 = vmatprep.subr.bf16.mxu0 %v10835_v0  ;;  %v12010_v31 = vpack.c.bf16 %v2490_v40, %v2489_v42  ;;  %v2497_v42 = vld [vmem:[#allocation3 + $0x16a] sm:$0xff]  ;;  %v2498_v40 = vld [vmem:[#allocation3 + $0x172] sm:$0xff] }
 0x4d1   : > { %v12022_v50 = vpack.c.bf16 %v2498_v40, %v2497_v42  ;;  %v10845_v42 = vld [vmem:[%s13231_s13 + $0x140] sm:$0xff]  }
 0x4d2   : > { %9397 = vmatmul.mubr.bf16.gmra.mrb[48].mxu0 %v11992_v60  ;;  %v2804_v40 = vld [vmem:[#allocation3 + $0x180] sm:$0xff] }
 0x4d3   : > { %9400 = vmatprep.mubr.bf16.mxu0 %v11994_v41  ;;  %9429 = vmatpush3.bf16.msra.mxu0 %v10835_v0  ;;  %v2493_v0 = vld [vmem:[#allocation3 + $0x13a] sm:$0xff] }
 0x4d4   : > { %9430 = vmatprep.subr.bf16.mxu0 %v10836_v34  ;;  %v12016_v4 = vpack.c.bf16 %v2494_v48, %v2493_v0  ;;  %v10839_v0 = vld [vmem:[%s13231_s13 + $0x110] sm:$0xff]   ;;  %v10842_v48 = vld [vmem:[%s13231_s13 + $0x128] sm:$0xff]  }
 0x4d7   : > { %9431 = vmatpush3.bf16.msra.mxu0 %v10836_v34  ;;  %v2495_v34 = vld [vmem:[#allocation3 + $0x152] sm:$0xff] }
 0x4d8   : > { %9464 = vmatprep.subr.bf16.mxu0 %v10837_v35  ;;  %v12018_v13 = vpack.c.bf16 %v2496_v1, %v2495_v34  ;;  %v10843_v34 = vld [vmem:[%s13231_s13 + $0x130] sm:$0xff]   ;;  %v10844_v1 = vld [vmem:[%s13231_s13 + $0x138] sm:$0xff]  }
 0x4da   : > { %9401 = vmatmul.mubr.bf16.gmra.mrb[52].mxu0 %v12004_v58 }
 0x4db   : > { %9404 = vmatprep.mubr.bf16.mxu0 %v12006_v47 }
 0x4e2   : > { %9405 = vmatmul.mubr.bf16.gmra.mrb[56].mxu0 %v12010_v31 }
 0x4e3   : > { %9408 = vmatprep.mubr.bf16.mxu0 %v12012_v53 }
 0x4ea   : > { %9409 = vmatmul.mubr.bf16.gmra.mrb[60].mxu0 %v12016_v4 }
 0x4eb   : > { %9412 = vmatprep.mubr.bf16.mxu0 %v12018_v13 }
 0x4f2   : > { %9413 = vmatmul.mubr.bf16.gmra.mrb[64].mxu0 %v12022_v50 }
 0x4f3   : > { %9432 = vmatprep.mubr.bf16.mxu0 %v11882_v39  ;;  %v10840_v39 = vld [vmem:[%s13231_s13 + $0x118] sm:$0xff]  }
 0x4fa   : > { %9433 = vmatmul.mubr.bf16.vlgmr.msra.gmra.mrb[36].mxu0 %v11884_v38 }
 0x4fb   : > { %9465 = vmatpush3.bf16.msra.mxu0 %v10837_v35  ;;  %9436 = vmatprep.mubr.bf16.mxu0 %v11894_v11  ;;  %v10841_v35 = vld [vmem:[%s13231_s13 + $0x120] sm:$0xff]  }
 0x4fc   : > { %9466 = vmatprep.subr.bf16.mxu0 %v10838_v22 }
 0x4ff   : > { %9467 = vmatpush3.bf16.msra.mxu0 %v10838_v22  ;;  %v2805_v22 = vld [vmem:[#allocation3 + $0x188] sm:$0xff] }
 0x500   : > { %9468 = vmatprep.subr.bf16.mxu0 %v10839_v0 }
 0x502   : > { %9437 = vmatmul.mubr.bf16.gmra.mrb[40].mxu0 %v11896_v46 }
 0x503   : > { %9440 = vmatprep.mubr.bf16.mxu0 %v11906_v33  ;;  %9469 = vmatpush3.bf16.msra.mxu0 %v10839_v0  ;;  %v3110_v0 = vld [vmem:[#allocation3 + $0x181] sm:$0xff] }
 0x504   : > { %9470 = vmatprep.subr.bf16.mxu0 %v10840_v39 }
 0x507   : > { %9471 = vmatpush3.bf16.msra.mxu0 %v10840_v39  ;;  %v3111_v39 = vld [vmem:[#allocation3 + $0x189] sm:$0xff] }
 0x508   : > { %9472 = vmatprep.subr.bf16.mxu0 %v10841_v35 }
 0x50a   : > { %9441 = vmatmul.mubr.bf16.gmra.mrb[44].mxu0 %v11908_v25 }
 0x50b   : > { %9444 = vmatprep.mubr.bf16.mxu0 %v11918_v61  ;;  %9473 = vmatpush3.bf16.msra.mxu0 %v10841_v35  ;;  %v12064_v35 = vld [vmem:[#allocation3 + $0x182] sm:$0xff] }
 0x50c   : > { %9474 = vmatprep.subr.bf16.mxu0 %v10842_v48  ;;  %4801 = vst [vmem:[#allocation3 + $0x180] sm:$0xff] %v13317_v24 }
 0x50f   : > { %9475 = vmatpush3.bf16.msra.mxu0 %v10842_v48  ;;  %v12066_v48 = vld [vmem:[#allocation3 + $0x18a] sm:$0xff] }
 0x510   : > { %9476 = vmatprep.subr.bf16.mxu0 %v10843_v34  ;;  %4802 = vst [vmem:[#allocation3 + $0x188] sm:$0xff] %v13317_v24  ;;  %4803 = vst [vmem:[#allocation3 + $0x190] sm:$0x3] %v13317_v24  ;;  %v10847_v24 = vld [vmem:[%s13231_s13 + $0x150] sm:$0xff]  }
 0x512   : > { %9445 = vmatmul.mubr.bf16.gmra.mrb[48].mxu0 %v11920_v55 }
 0x513   : > { %9448 = vmatprep.mubr.bf16.mxu0 %v11930_v36  ;;  %9477 = vmatpush3.bf16.msra.mxu0 %v10843_v34  ;;  %v12071_v34 = vpack.c.bf16 %v2805_v22, %v2804_v40  ;;  %v12201_v40 = vld [vmem:[#allocation3 + $0x62] sm:$0xff]  ;;  %v12203_v22 = vld [vmem:[#allocation3 + $0x6a] sm:$0xff] }
 0x514   : > { %9478 = vmatprep.subr.bf16.mxu0 %v10844_v1 }
 0x517   : > { %9479 = vmatpush3.bf16.msra.mxu0 %v10844_v1  ;;  %v10846_v1 = vld [vmem:[%s13231_s13 + $0x148] sm:$0xff]  }
 0x518   : > { %9512 = vmatprep.subr.bf16.mxu0 %v10845_v42 }
 0x51a   : > { %9449 = vmatmul.mubr.bf16.gmra.mrb[52].mxu0 %v11932_v28 }
 0x51b   : > { %9452 = vmatprep.mubr.bf16.mxu0 %v11936_v44 }
 0x522   : > { %9453 = vmatmul.mubr.bf16.gmra.mrb[56].mxu0 %v11938_v43 }
 0x523   : > { %9456 = vmatprep.mubr.bf16.mxu0 %v11942_v32 }
 0x52a   : > { %9457 = vmatmul.mubr.bf16.gmra.mrb[60].mxu0 %v11944_v18 }
 0x52b   : > { %9460 = vmatprep.mubr.bf16.mxu0 %v11948_v23 }
 0x532   : > { %9461 = vmatmul.mubr.bf16.gmra.mrb[64].mxu0 %v12071_v34 }
 0x533   : > { %9480 = vmatprep.mubr.bf16.mxu0 %v11798_v52  ;;  %v10848_v52 = vld [vmem:[%s13231_s13 + $0x158] sm:$0xff]  }
 0x53a   : > { %9481 = vmatmul.mubr.bf16.vlgmr.msra.gmra.mrb[36].mxu0 %v11800_v45  ;;  %v10849_v45 = vld [vmem:[%s13231_s13 + $0x160] sm:$0xff]  }
 0x53b   : > { %9513 = vmatpush3.bf16.msra.mxu0 %v10845_v42  ;;  %9484 = vmatprep.mubr.bf16.mxu0 %v11810_v17  ;;  %v10850_v17 = vld [vmem:[%s13231_s13 + $0x168] sm:$0xff]   ;;  %v12199_v42 = vld [vmem:[#allocation3 + $0x79] sm:$0xff] }
 0x53c   : > { %9514 = vmatprep.subr.bf16.mxu0 %v10846_v1 }
 0x53f   : > { %9515 = vmatpush3.bf16.msra.mxu0 %v10846_v1  ;;  %v12226_v1 = vld [vmem:[#allocation3 + $0x99] sm:$0xff] }
 0x540   : > { %9516 = vmatprep.subr.bf16.mxu0 %v10847_v24 }
 0x542   : > { %9485 = vmatmul.mubr.bf16.gmra.mrb[40].mxu0 %v11812_v26  ;;  %v10851_v26 = vld [vmem:[%s13231_s13 + $0x170] sm:$0xff]  }
 0x543   : > { %9488 = vmatprep.mubr.bf16.mxu0 %v11826_v6  ;;  %9517 = vmatpush3.bf16.msra.mxu0 %v10847_v24  ;;  %v10852_v6 = vld [vmem:[%s13231_s13 + $0x178] sm:$0xff]   ;;  %v12229_v24 = vld [vmem:[#allocation3 + $0xa9] sm:$0xff] }
 0x544   : > { %9518 = vmatprep.subr.bf16.mxu0 %v10848_v52 }
 0x547   : > { %9519 = vmatpush3.bf16.msra.mxu0 %v10848_v52  ;;  %v12231_v52 = vld [vmem:[#allocation3 + $0x92] sm:$0xff] }
 0x548   : > { %9520 = vmatprep.subr.bf16.mxu0 %v10849_v45 }
 0x54a   : > { %9489 = vmatmul.mubr.bf16.gmra.mrb[44].mxu0 %v11832_v5  ;;  %v10853_v5 = vld [vmem:[%s13231_s13 + $0x180] sm:$0xff]  }
 0x54b   : > { %9492 = vmatprep.mubr.bf16.mxu0 %v11845_v37  ;;  %9521 = vmatpush3.bf16.msra.mxu0 %v10849_v45  ;;  %v12113_v37 = vpack.c.bf16 %v3111_v39, %v3110_v0  ;;  %v12206_v0 = vld [vmem:[#allocation3 + $0x81] sm:$0xff] }
 0x54c   : > { %9522 = vmatprep.subr.bf16.mxu0 %v10850_v17  ;;  %v12211_v39 = vld [vmem:[#allocation3 + $0x7a] sm:$0xff] }
 0x54d   : > { %v12233_v45 = vld [vmem:[#allocation3 + $0x9a] sm:$0xff] }
 0x54f   : > { %9523 = vmatpush3.bf16.msra.mxu0 %v10850_v17  ;;  %v12236_v17 = vld [vmem:[#allocation3 + $0xb1] sm:$0xff] }
 0x550   : > { %9524 = vmatprep.subr.bf16.mxu0 %v10851_v26 }
 0x552   : > { %9493 = vmatmul.mubr.bf16.gmra.mrb[48].mxu0 %v11850_v10  ;;  %v10854_v10 = vld [vmem:[%s13231_s13 + $0x188] sm:$0xff]  }
 0x553   : > { %9496 = vmatprep.mubr.bf16.mxu0 %v11857_v59  ;;  %9525 = vmatpush3.bf16.msra.mxu0 %v10851_v26  ;;  %v10855_v59 = vld [vmem:[%s13231_s13 + $0x190] sm:$0xff]  }
 0x554   : > { %9526 = vmatprep.subr.bf16.mxu0 %v10852_v6  ;;  %v12241_v26 = vld [vmem:[#allocation3 + $0xaa] sm:$0xff] }
 0x557   : > { %9527 = vmatpush3.bf16.msra.mxu0 %v10852_v6  ;;  %v10865_v6 = vld [vmem:[%s13231_s13 + $0x1e0] sm:$0xff]  }
 0x558   : > { %9560 = vmatprep.subr.bf16.mxu0 %v10853_v5 }
 0x55a   : > { %9497 = vmatmul.mubr.bf16.gmra.mrb[52].mxu0 %v11859_v51  ;;  %v10856_v51 = vld [vmem:[%s13231_s13 + $0x198] sm:$0xff]  }
 0x55b   : > { %9500 = vmatprep.mubr.bf16.mxu0 %v11863_v57  ;;  %v10857_v57 = vld [vmem:[%s13231_s13 + $0x1a0] sm:$0xff]  }
 0x562   : > { %9501 = vmatmul.mubr.bf16.gmra.mrb[56].mxu0 %v11865_v56  ;;  %v10858_v56 = vld [vmem:[%s13231_s13 + $0x1a8] sm:$0xff]  }
 0x563   : > { %9504 = vmatprep.mubr.bf16.mxu0 %v11869_v49  ;;  %v10859_v49 = vld [vmem:[%s13231_s13 + $0x1b0] sm:$0xff]  }
 0x56a   : > { %9505 = vmatmul.mubr.bf16.gmra.mrb[60].mxu0 %v11871_v62  ;;  %v10860_v62 = vld [vmem:[%s13231_s13 + $0x1b8] sm:$0xff]  }
 0x56b   : > { %9508 = vmatprep.mubr.bf16.mxu0 %v11875_v63  ;;  %v10861_v63 = vld [vmem:[%s13231_s13 + $0x1c0] sm:$0xff]  }
 0x572   : > { %9509 = vmatmul.mubr.bf16.gmra.mrb[64].mxu0 %v12113_v37 }
 0x573   : > { %9528 = vmatprep.mubr.bf16.mxu0 %v11956_v54  ;;  %v12155_v54 = vld [vmem:[#allocation3 + $0x199] sm:$0xff] }
 0x57a   : > { %9529 = vmatmul.mubr.bf16.vlgmr.msra.gmra.mrb[36].mxu0 %v11958_v21  ;;  %v12157_v21 = vld [vmem:[#allocation3 + $0x1a1] sm:$0xff] }
 0x57b   : > { %9561 = vmatpush3.bf16.msra.mxu0 %v10853_v5  ;;  %9532 = vmatprep.mubr.bf16.mxu0 %v11968_v3  ;;  %v12254_v5 = vld [vmem:[#allocation3 + $0xc1] sm:$0xff]  ;;  %v12301_v3 = vld [vmem:[#allocation3 + $0x10a] sm:$0xff] }
 0x57c   : > { %9562 = vmatprep.subr.bf16.mxu0 %v10854_v10 }
 0x57f   : > { %9563 = vmatpush3.bf16.msra.mxu0 %v10854_v10  ;;  %v12256_v10 = vld [vmem:[#allocation3 + $0xc9] sm:$0xff] }
 0x580   : > { %9564 = vmatprep.subr.bf16.mxu0 %v10855_v59 }
 0x582   : > { %9533 = vmatmul.mubr.bf16.gmra.mrb[40].mxu0 %v11970_v16  ;;  %v12163_v16 = vpack.c.bf16 %v12066_v48, %v12064_v35  ;;  %v10863_v35 = vld [vmem:[%s13231_s13 + $0x1d0] sm:$0xff]  }
 0x583   : > { %9536 = vmatprep.mubr.bf16.mxu0 %v11980_v27  ;;  %9565 = vmatpush3.bf16.msra.mxu0 %v10855_v59  ;;  %v12165_v27 = vld [vmem:[#allocation3 + $0x31] sm:$0xff]  ;;  %v12259_v59 = vld [vmem:[#allocation3 + $0xd9] sm:$0xff] }
 0x584   : > { %9566 = vmatprep.subr.bf16.mxu0 %v10856_v51  ;;  %13318 = vst [vmem:[#allocation41_spill] sm:$0xff] %v12163_v16  ;;  %v12224_v48 = vld [vmem:[#allocation3 + $0x91] sm:$0xff] }
 0x587   : > { %9567 = vmatpush3.bf16.msra.mxu0 %v10856_v51  ;;  %v12261_v51 = vld [vmem:[#allocation3 + $0xc2] sm:$0xff] }
 0x588   : > { %9568 = vmatprep.subr.bf16.mxu0 %v10857_v57 }
 0x58a   : > { %9537 = vmatmul.mubr.bf16.gmra.mrb[44].mxu0 %v11982_v2  ;;  %v12167_v2 = vld [vmem:[#allocation3 + $0x39] sm:$0xff] }
 0x58b   : > { %9540 = vmatprep.mubr.bf16.mxu0 %v11992_v60  ;;  %9569 = vmatpush3.bf16.msra.mxu0 %v10857_v57  ;;  %v12170_v60 = vld [vmem:[#allocation3 + $0x49] sm:$0xff] }
 0x58c   : > { %9570 = vmatprep.subr.bf16.mxu0 %v10858_v56  ;;  %v12263_v57 = vld [vmem:[#allocation3 + $0xca] sm:$0xff] }
 0x58f   : > { %9571 = vmatpush3.bf16.msra.mxu0 %v10858_v56  ;;  %v12266_v56 = vld [vmem:[#allocation3 + $0xe1] sm:$0xff] }
 0x590   : > { %9572 = vmatprep.subr.bf16.mxu0 %v10859_v49 }
 0x592   : > { %9541 = vmatmul.mubr.bf16.gmra.mrb[48].mxu0 %v11994_v41  ;;  %v12172_v41 = vld [vmem:[#allocation3 + $0x32] sm:$0xff] }
 0x593   : > { %9544 = vmatprep.mubr.bf16.mxu0 %v12004_v58  ;;  %9573 = vmatpush3.bf16.msra.mxu0 %v10859_v49  ;;  %v12174_v58 = vld [vmem:[#allocation3 + $0x3a] sm:$0xff] }
 0x594   : > { %9574 = vmatprep.subr.bf16.mxu0 %v10860_v62  ;;  %v12271_v49 = vld [vmem:[#allocation3 + $0xda] sm:$0xff] }
 0x597   : > { %9575 = vmatpush3.bf16.msra.mxu0 %v10860_v62  ;;  %v10867_v62 = vld [vmem:[%s13231_s13 + $0x1f0] sm:$0xff]  }
 0x598   : > { %9608 = vmatprep.subr.bf16.mxu0 %v10861_v63 }
 0x59a   : > { %9545 = vmatmul.mubr.bf16.gmra.mrb[52].mxu0 %v12006_v47  ;;  %v12177_v47 = vld [vmem:[#allocation3 + $0x51] sm:$0xff] }
 0x59b   : > { %9548 = vmatprep.mubr.bf16.mxu0 %v12010_v31  ;;  %v12179_v31 = vld [vmem:[#allocation3] sm:$0xff] }
 0x59c   : > { %4759 = vst [vmem:[#allocation3 + $0x30] sm:$0xff] %v12179_v31  ;;  %4760 = vst [vmem:[#allocation3 + $0x38] sm:$0xff] %v12179_v31 }
 0x59d   : > { %4761 = vst [vmem:[#allocation3 + $0x40] sm:$0x3] %v12179_v31  ;;  %4768 = vst [vmem:[#allocation3 + $0x78] sm:$0xff] %v12179_v31 }
 0x59e   : > { %4771 = vst [vmem:[#allocation3 + $0x90] sm:$0xff] %v12179_v31  ;;  %4772 = vst [vmem:[#allocation3 + $0x98] sm:$0xff] %v12179_v31 }
 0x59f   : > { %4773 = vst [vmem:[#allocation3 + $0xa0] sm:$0x3] %v12179_v31  ;;  %4774 = vst [vmem:[#allocation3 + $0xa8] sm:$0xff] %v12179_v31 }
 0x5a0   : > { %4777 = vst [vmem:[#allocation3 + $0xc0] sm:$0xff] %v12179_v31  ;;  %4778 = vst [vmem:[#allocation3 + $0xc8] sm:$0xff] %v12179_v31 }
 0x5a1   : > { %4779 = vst [vmem:[#allocation3 + $0xd0] sm:$0x3] %v12179_v31  ;;  %4780 = vst [vmem:[#allocation3 + $0xd8] sm:$0xff] %v12179_v31 }
 0x5a2   : > { %9549 = vmatmul.mubr.bf16.gmra.mrb[56].mxu0 %v12012_v53  ;;  %v12184_v53 = vld [vmem:[#allocation3 + $0x4a] sm:$0xff]  ;;  %4794 = vst [vmem:[#allocation3 + $0x148] sm:$0x3] %v12179_v31  ;;  %4800 = vst [vmem:[#allocation3 + $0x178] sm:$0x3] %v12179_v31 }
 0x5a3   : > { %9552 = vmatprep.mubr.bf16.mxu0 %v12016_v4  ;;  %v12186_v4 = vld [vmem:[#allocation3 + $0x52] sm:$0xff]  ;;  %4762 = vst [vmem:[#allocation3 + $0x48] sm:$0xff] %v12179_v31  ;;  %4806 = vst [vmem:[#allocation3 + $0x1a8] sm:$0x3] %v12179_v31 }
 0x5a4   : > { %4764 = vst [vmem:[#allocation3 + $0x58] sm:$0x3] %v12179_v31  ;;  %4763 = vst [vmem:[#allocation3 + $0x50] sm:$0xff] %v12179_v31 }
 0x5aa   : > { %9553 = vmatmul.mubr.bf16.gmra.mrb[60].mxu0 %v12018_v13  ;;  %v12194_v13 = vld [vmem:[#allocation3 + $0x61] sm:$0xff] }
 0x5ab   : > { %9556 = vmatprep.mubr.bf16.mxu0 %v12022_v50  ;;  %v12196_v50 = vld [vmem:[#allocation3 + $0x69] sm:$0xff]  ;;  %4765 = vst [vmem:[#allocation3 + $0x60] sm:$0xff] %v12179_v31 }
 0x5ac   : > { %4766 = vst [vmem:[#allocation3 + $0x68] sm:$0xff] %v12179_v31  ;;  %4767 = vst [vmem:[#allocation3 + $0x70] sm:$0x3] %v12179_v31 }
 0x5b2   : > { %9557 = vmatmul.mubr.bf16.gmra.mrb[64].mxu0 %v12163_v16  ;;  %v12352_v16 = vld [vmem:[#allocation3 + $0x16a] sm:$0xff] }
 0x5b3   : > { %9576 = vmatprep.mubr.bf16.mxu0 %v11884_v38  ;;  %v10862_v38 = vld [vmem:[%s13231_s13 + $0x1c8] sm:$0xff]   ;;  %13323 = vst [vmem:[#allocation46_spill] sm:$0xff] %v12352_v16  ;;  %4798 = vst [vmem:[#allocation3 + $0x168] sm:$0xff] %v12179_v31 }
 0x5b4   : > { %4799 = vst [vmem:[#allocation3 + $0x170] sm:$0xff] %v12179_v31  ;;  %v10870_v16 = vld [vmem:[%s13231_s13 + $0x208] sm:$0xff]  }
 0x5ba   : > { %9577 = vmatmul.mubr.bf16.vlgmr.msra.gmra.mrb[36].mxu0 %v11894_v11  ;;  %v12213_v11 = vld [vmem:[#allocation3 + $0x82] sm:$0xff] }
 0x5bb   : > { %9609 = vmatpush3.bf16.msra.mxu0 %v10861_v63  ;;  %9580 = vmatprep.mubr.bf16.mxu0 %v11896_v46  ;;  %4769 = vst [vmem:[#allocation3 + $0x80] sm:$0xff] %v12179_v31  ;;  %4770 = vst [vmem:[#allocation3 + $0x88] sm:$0x3] %v12179_v31  ;;  %v10864_v46 = vld [vmem:[%s13231_s13 + $0x1d8] sm:$0xff]  }
 0x5bc   : > { %9610 = vmatprep.subr.bf16.mxu0 %v10862_v38  ;;  %v12284_v63 = vld [vmem:[#allocation3 + $0xf1] sm:$0xff] }
 0x5bf   : > { %9611 = vmatpush3.bf16.msra.mxu0 %v10862_v38  ;;  %v12286_v38 = vld [vmem:[#allocation3 + $0xf9] sm:$0xff] }
 0x5c0   : > { %9612 = vmatprep.subr.bf16.mxu0 %v10863_v35 }
 0x5c2   : > { %9581 = vmatmul.mubr.bf16.gmra.mrb[40].mxu0 %v11906_v33  ;;  %v12243_v33 = vld [vmem:[#allocation3 + $0xb2] sm:$0xff] }
 0x5c3   : > { %9584 = vmatprep.mubr.bf16.mxu0 %v11908_v25  ;;  %9613 = vmatpush3.bf16.msra.mxu0 %v10863_v35  ;;  %4775 = vst [vmem:[#allocation3 + $0xb0] sm:$0xff] %v12179_v31  ;;  %4776 = vst [vmem:[#allocation3 + $0xb8] sm:$0x3] %v12179_v31  ;;  %v10866_v25 = vld [vmem:[%s13231_s13 + $0x1e8] sm:$0xff]  }
 0x5c4   : > { %9614 = vmatprep.subr.bf16.mxu0 %v10864_v46  ;;  %v12289_v35 = vld [vmem:[#allocation3 + $0x109] sm:$0xff] }
 0x5c5   : > { %4786 = vst [vmem:[#allocation3 + $0x108] sm:$0xff] %v12179_v31 }
 0x5c7   : > { %9615 = vmatpush3.bf16.msra.mxu0 %v10864_v46  ;;  %v12291_v46 = vld [vmem:[#allocation3 + $0xf2] sm:$0xff] }
 0x5c8   : > { %9616 = vmatprep.subr.bf16.mxu0 %v10865_v6  ;;  %4783 = vst [vmem:[#allocation3 + $0xf0] sm:$0xff] %v12179_v31 }
 0x5ca   : > { %9585 = vmatmul.mubr.bf16.gmra.mrb[44].mxu0 %v11918_v61  ;;  %v12273_v61 = vld [vmem:[#allocation3 + $0xe2] sm:$0xff] }
 0x5cb   : > { %9588 = vmatprep.mubr.bf16.mxu0 %v11920_v55  ;;  %9617 = vmatpush3.bf16.msra.mxu0 %v10865_v6  ;;  %4781 = vst [vmem:[#allocation3 + $0xe0] sm:$0xff] %v12179_v31  ;;  %4782 = vst [vmem:[#allocation3 + $0xe8] sm:$0x3] %v12179_v31  ;;  %v10868_v55 = vld [vmem:[%s13231_s13 + $0x1f8] sm:$0xff]  }
 0x5cc   : > { %9618 = vmatprep.subr.bf16.mxu0 %v10866_v25  ;;  %v12293_v6 = vld [vmem:[#allocation3 + $0xfa] sm:$0xff] }
 0x5cd   : > { %4784 = vst [vmem:[#allocation3 + $0xf8] sm:$0xff] %v12179_v31  ;;  %4785 = vst [vmem:[#allocation3 + $0x100] sm:$0x3] %v12179_v31 }
 0x5cf   : > { %9619 = vmatpush3.bf16.msra.mxu0 %v10866_v25  ;;  %v12296_v25 = vld [vmem:[#allocation3 + $0x111] sm:$0xff] }
 0x5d0   : > { %9620 = vmatprep.subr.bf16.mxu0 %v10867_v62 }
 0x5d2   : > { %9589 = vmatmul.mubr.bf16.gmra.mrb[48].mxu0 %v11930_v36  ;;  %v12303_v36 = vld [vmem:[#allocation3 + $0x112] sm:$0xff] }
 0x5d3   : > { %9592 = vmatprep.mubr.bf16.mxu0 %v11932_v28  ;;  %9621 = vmatpush3.bf16.msra.mxu0 %v10867_v62  ;;  %4787 = vst [vmem:[#allocation3 + $0x110] sm:$0xff] %v12179_v31  ;;  %4788 = vst [vmem:[#allocation3 + $0x118] sm:$0x3] %v12179_v31  ;;  %v12311_v28 = vld [vmem:[#allocation3 + $0x121] sm:$0xff]  ;;  %v12313_v62 = vld [vmem:[#allocation3 + $0x129] sm:$0xff] }
 0x5d4   : > { %9622 = vmatprep.subr.bf16.mxu0 %v10868_v55  ;;  %4789 = vst [vmem:[#allocation3 + $0x120] sm:$0xff] %v12179_v31  ;;  %4790 = vst [vmem:[#allocation3 + $0x128] sm:$0xff] %v12179_v31 }
 0x5d5   : > { %4791 = vst [vmem:[#allocation3 + $0x130] sm:$0x3] %v12179_v31 }
 0x5d7   : > { %9623 = vmatpush3.bf16.msra.mxu0 %v10868_v55  ;;  %v12328_v55 = vld [vmem:[#allocation3 + $0x13a] sm:$0xff] }
 0x5d8   : > { %9656 = vmatprep.subr.bf16.mxu0 %v10869_v30  ;;  %13319 = vst [vmem:[#allocation42_spill] sm:$0xff] %v12328_v55  ;;  %4792 = vst [vmem:[#allocation3 + $0x138] sm:$0xff] %v12179_v31  ;;  %v4033_v55 = vpack.c.bf16 %v12196_v50, %v12194_v13  ;;  %v10875_v13 = vld [vmem:[%s13231_s13 + $0x230] sm:$0xff]   ;;  %v4038_v50 = vpack.c.bf16 %v12266_v56, %v12259_v59  ;;  %v13325_v59 = vpack.c.bf16 %v12157_v21, %v12155_v54 }
 0x5d9   : > { %4793 = vst [vmem:[#allocation3 + $0x140] sm:$0xff] %v12179_v31  ;;  %v4343_v54 = vpack.c.bf16 %v12263_v57, %v12261_v51  ;;  %v4344_v21 = vpack.c.bf16 %v12273_v61, %v12271_v49  ;;  %v13332_v51 = vld [vmem:[#allocation41_spill] sm:$0xff]  ;;  %v12463_v57 = vld [vmem:[%s13233_s15] ss:$0 sm:$0xff] }
 0x5da   : > { %9593 = vmatmul.mubr.bf16.gmra.mrb[52].mxu0 %v11936_v44  ;;  %v12335_v44 = vld [vmem:[#allocation3 + $0x151] sm:$0xff] }
 0x5db   : > { %9596 = vmatprep.mubr.bf16.mxu0 %v11938_v43  ;;  %v12337_v43 = vld [vmem:[#allocation3 + $0x159] sm:$0xff]  ;;  %4795 = vst [vmem:[#allocation3 + $0x150] sm:$0xff] %v12179_v31 }
 0x5dc   : > { %4796 = vst [vmem:[#allocation3 + $0x158] sm:$0xff] %v12179_v31  ;;  %4797 = vst [vmem:[#allocation3 + $0x160] sm:$0x3] %v12179_v31 }
 0x5e2   : > { %9597 = vmatmul.mubr.bf16.gmra.mrb[56].mxu0 %v11942_v32  ;;  %v3723_v32 = vld [vmem:[#allocation3 + $0x198] sm:$0xff] }
 0x5e3   : > { %9600 = vmatprep.mubr.bf16.mxu0 %v11944_v18  ;;  %v3724_v18 = vld [vmem:[#allocation3 + $0x1a0] sm:$0xff]  ;;  %4804 = vst [vmem:[#allocation3 + $0x198] sm:$0xff] %v12179_v31 }
 0x5e4   : > { %4805 = vst [vmem:[#allocation3 + $0x1a0] sm:$0xff] %v12179_v31  ;;  %v3740_v14 = vpack.c.bf16 %v3724_v18, %v3723_v32  ;;  %v10874_v31 = vld [vmem:[%s13231_s13 + $0x228] sm:$0xff]  }
 0x5ea   : > { %9601 = vmatmul.mubr.bf16.gmra.mrb[60].mxu0 %v11948_v23  ;;  %v4031_v23 = vpack.c.bf16 %v12167_v2, %v12165_v27  ;;  %v10871_v27 = vld [vmem:[%s13231_s13 + $0x210] sm:$0xff]   ;;  %v4035_v2 = vpack.c.bf16 %v12226_v1, %v12224_v48  ;;  %v4040_v48 = vpack.c.bf16 %v12296_v25, %v12289_v35  ;;  %v4041_v1 = vpack.c.bf16 %v12313_v62, %v12311_v28 }
 0x5eb   : > { %9604 = vmatprep.mubr.bf16.mxu0 %v12071_v34  ;;  %v4032_v34 = vpack.c.bf16 %v12177_v47, %v12170_v60  ;;  %v10872_v60 = vld [vmem:[%s13231_s13 + $0x218] sm:$0xff]   ;;  %v4036_v47 = vpack.c.bf16 %v12236_v17, %v12229_v24  ;;  %v4042_v24 = vpack.c.bf16 %v12323_v15, %v12316_v29  ;;  %v4043_v17 = vpack.c.bf16 %v12337_v43, %v12335_v44 }
 0x5ec   : > { %v4338_v15 = vpack.c.bf16 %v12186_v4, %v12184_v53  ;;  %v4339_v29 = vpack.c.bf16 %v12203_v22, %v12201_v40  ;;  %v4347_v53 = vpack.c.bf16 %v12320_v19, %v12318_v20  ;;  %v13326_v4 = vld [vmem:[#allocation42_spill] sm:$0xff]  ;;  %v13327_v40 = vld [vmem:[#allocation43_spill] sm:$0xff] }
 0x5ed   : > { %v4348_v22 = vpack.c.bf16 %v13327_v40, %v13326_v4  ;;  %v12458_v19 = vld [vmem:[%s13232_s14] ss:$0 sm:$0xff] }
 0x5f2   : > { %9605 = vmatmul.mubr.bf16.gmra.mrb[64].mxu0 %v3740_v14  ;;  %v4034_v14 = vpack.c.bf16 %v12206_v0, %v12199_v42  ;;  %v4039_v42 = vpack.c.bf16 %v12286_v38, %v12284_v63  ;;  %v10876_v0 = vld [vmem:[%s13231_s13 + $0x238] sm:$0xff]  }
 0x5f3   : > { %9624 = vmatprep.mubr.bf16.mxu0 %v4031_v23 }
 0x5fa   : > { %9625 = vmatmul.mubr.bf16.vlgmr.msra.gmra.mrb[36].mxu0 %v4032_v34 }
 0x5fb   : > { %9657 = vmatpush3.bf16.msra.mxu0 %v10869_v30  ;;  %9628 = vmatprep.mubr.bf16.mxu0 %v4033_v55  ;;  %v10873_v30 = vld [vmem:[%s13231_s13 + $0x220] sm:$0xff]  }
 0x5fc   : > { %9658 = vmatprep.subr.bf16.mxu0 %v10870_v16 }
 0x5ff   : > { %9659 = vmatpush3.bf16.msra.mxu0 %v10870_v16  ;;  %v4037_v16 = vpack.c.bf16 %v12256_v10, %v12254_v5  ;;  %v4044_v5 = vpack.c.bf16 %v12347_v7, %v12340_v12  ;;  %v4337_v10 = vpack.c.bf16 %v12174_v58, %v12172_v41  ;;  %v4340_v7 = vpack.c.bf16 %v12213_v11, %v12211_v39  ;;  %v13328_v39 = vld [vmem:[#allocation44_spill] sm:$0xff]  ;;  %v13329_v11 = vld [vmem:[#allocation45_spill] sm:$0xff] }
 0x600   : > { %9660 = vmatprep.subr.bf16.mxu0 %v10871_v27  ;;  %v4341_v12 = vpack.c.bf16 %v12233_v45, %v12231_v52  ;;  %v4345_v41 = vpack.c.bf16 %v12293_v6, %v12291_v46  ;;  %v4346_v58 = vpack.c.bf16 %v12303_v36, %v12301_v3  ;;  %v4349_v52 = vpack.c.bf16 %v13329_v11, %v13328_v39  ;;  %v13330_v45 = vld [vmem:[#allocation46_spill] sm:$0xff] }
 0x601   : > { %v13333_v3 = vpack.c.bf16 %v12363_v9, %v12361_v8 }
 0x602   : > { %9629 = vmatmul.mubr.bf16.gmra.mrb[40].mxu0 %v4034_v14 }
 0x603   : > { %9632 = vmatprep.mubr.bf16.mxu0 %v4035_v2  ;;  %9661 = vmatpush3.bf16.msra.mxu0 %v10871_v27 }
 0x604   : > { %9662 = vmatprep.subr.bf16.mxu0 %v10872_v60 }
 0x607   : > { %9663 = vmatpush3.bf16.msra.mxu0 %v10872_v60 }
 0x608   : > { %9664 = vmatprep.subr.bf16.mxu0 %v10873_v30 }
 0x60a   : > { %9633 = vmatmul.mubr.bf16.gmra.mrb[44].mxu0 %v4036_v47 }
 0x60b   : > { %9636 = vmatprep.mubr.bf16.mxu0 %v4037_v16  ;;  %9665 = vmatpush3.bf16.msra.mxu0 %v10873_v30 }
 0x60c   : > { %9666 = vmatprep.subr.bf16.mxu0 %v10874_v31 }
 0x60f   : > { %9667 = vmatpush3.bf16.msra.mxu0 %v10874_v31 }
 0x610   : > { %9668 = vmatprep.subr.bf16.mxu0 %v10875_v13 }
 0x612   : > { %9637 = vmatmul.mubr.bf16.gmra.mrb[48].mxu0 %v4038_v50 }
 0x613   : > { %9640 = vmatprep.mubr.bf16.mxu0 %v4039_v42  ;;  %9669 = vmatpush3.bf16.msra.mxu0 %v10875_v13 }
 0x614   : > { %9670 = vmatprep.subr.bf16.mxu0 %v10876_v0 }
 0x617   : > { %9671 = vmatpush3.bf16.msra.mxu0 %v10876_v0 }
 0x61a   : > { %9641 = vmatmul.mubr.bf16.gmra.mrb[52].mxu0 %v4040_v48 }
 0x61b   : > { %9644 = vmatprep.mubr.bf16.mxu0 %v4041_v1 }
 0x622   : > { %9645 = vmatmul.mubr.bf16.gmra.mrb[56].mxu0 %v4042_v24 }
 0x623   : > { %9648 = vmatprep.mubr.bf16.mxu0 %v4043_v17 }
 0x62a   : > { %9649 = vmatmul.mubr.bf16.gmra.mrb[60].mxu0 %v4044_v5 }
 0x62b   : > { %9652 = vmatprep.mubr.bf16.mxu0 %v12113_v37  ;;  %v4342_v37 = vpack.c.bf16 %v12243_v33, %v12241_v26  ;;  %v13331_v26 = vld [vmem:[#allocation47_spill] sm:$0xff] }
 0x62c   : > { %v4350_v33 = vpack.c.bf16 %v13331_v26, %v13330_v45 }
 0x632   : > { %9653 = vmatmul.mubr.bf16.gmra.mrb[64].mxu0 %v13325_v59 }
 0x633   : > { %9672 = vmatprep.mubr.bf16.mxu0 %v4337_v10 }
 0x63a   : > { %9673 = vmatmul.mubr.bf16.vlgmr.msra.gmra.mrb[36].mxu0 %v4338_v15 }
 0x63b   : > { %9676 = vmatprep.mubr.bf16.mxu0 %v4339_v29 }
 0x642   : > { %9677 = vmatmul.mubr.bf16.gmra.mrb[40].mxu0 %v4340_v7 }
 0x643   : > { %9680 = vmatprep.mubr.bf16.mxu0 %v4341_v12 }
 0x64a   : > { %9681 = vmatmul.mubr.bf16.gmra.mrb[44].mxu0 %v4342_v37 }
 0x64b   : > { %9684 = vmatprep.mubr.bf16.mxu0 %v4343_v54 }
 0x652   : > { %9685 = vmatmul.mubr.bf16.gmra.mrb[48].mxu0 %v4344_v21 }
 0x653   : > { %9688 = vmatprep.mubr.bf16.mxu0 %v4345_v41 }
 0x65a   : > { %9689 = vmatmul.mubr.bf16.gmra.mrb[52].mxu0 %v4346_v58 }
 0x65b   : > { %9692 = vmatprep.mubr.bf16.mxu0 %v4347_v53 }
 0x662   : > { %9693 = vmatmul.mubr.bf16.gmra.mrb[56].mxu0 %v4348_v22 }
 0x663   : > { %9696 = vmatprep.mubr.bf16.mxu0 %v4349_v52 }
 0x66a   : > { %9697 = vmatmul.mubr.bf16.gmra.mrb[60].mxu0 %v4350_v33 }
 0x66b   : > { %9700 = vmatprep.mubr.bf16.mxu0 %v13332_v51 }
 0x672   : > { %9701 = vmatmul.mubr.bf16.gmra.mrb[64].mxu0 %v13333_v3 }
 0x70d   : > { %v9674_v20 = vpop.f32.mrb[36].mxu0 }
 0x70e   : > { %v4620_v56 = vmul.f32 %v9674_v20, %v12458_v19  ;;  %v4452_v49 = vpop.f32.mrb[37].mxu0 }
 0x70f   : > { %v4618_v61 = vmul.f32 %v12458_v19, %v4452_v49  ;;  %v9675_v63 = vpop.f32.mrb[38].mxu0 }
 0x710   : > { %v4659_v8 = vadd.f32 %v12463_v57, %v4620_v56  ;;  %v4621_v9 = vmul.f32 %v9675_v63, %v12458_v19  ;;  %v4455_v38 = vpop.f32.mrb[39].mxu0 }
 0x711   : > { %v4657_v35 = vadd.f32 %v12463_v57, %v4618_v61  ;;  %v4619_v46 = vmul.f32 %v12458_v19, %v4455_v38 }
 0x712   : > { %v4691_v6 = vmax.f32 %v4659_v8, 0.0  ;;  %v4660_v25 = vadd.f32 %v12463_v57, %v4621_v9 }
 0x713   : > { %v4689_v36 = vmax.f32 %v4657_v35, 0.0  ;;  %v4658_v28 = vadd.f32 %v12463_v57, %v4619_v46 }
 0x714   : > { %4874 = vst [vmem:[#allocation3 + $0x31] sm:$0xff] %v4691_v6  ;;  %v4692_v62 = vmax.f32 %v4660_v25, 0.0 }
 0x715   : > { %4870 = vst [vmem:[#allocation3 + $0x19] sm:$0xff] %v4689_v36  ;;  %v4690_v55 = vmax.f32 %v4658_v28, 0.0  ;;  %v9678_v44 = vpop.f32.mrb[40].mxu0 }
 0x716   : > { %4876 = vst [vmem:[#allocation3 + $0x39] sm:$0xff] %v4692_v62  ;;  %v4624_v43 = vmul.f32 %v9678_v44, %v12458_v19  ;;  %v4468_v32 = vpop.f32.mrb[41].mxu0 }
 0x717   : > { %4872 = vst [vmem:[#allocation3 + $0x21] sm:$0xff] %v4690_v55  ;;  %v4622_v18 = vmul.f32 %v12458_v19, %v4468_v32  ;;  %v9679_v23 = vpop.f32.mrb[42].mxu0 }
 0x718   : > { %v4663_v34 = vadd.f32 %v12463_v57, %v4624_v43  ;;  %v4625_v27 = vmul.f32 %v9679_v23, %v12458_v19  ;;  %v4471_v14 = vpop.f32.mrb[43].mxu0 }
 0x719   : > { %v4661_v2 = vadd.f32 %v12463_v57, %v4622_v18  ;;  %v4623_v60 = vmul.f32 %v12458_v19, %v4471_v14 }
 0x71a   : > { %v4695_v30 = vmax.f32 %v4663_v34, 0.0  ;;  %v4664_v47 = vadd.f32 %v12463_v57, %v4625_v27 }
 0x71b   : > { %v4693_v16 = vmax.f32 %v4661_v2, 0.0  ;;  %v4662_v31 = vadd.f32 %v12463_v57, %v4623_v60 }
 0x71c   : > { %4882 = vst [vmem:[#allocation3 + $0x61] sm:$0xff] %v4695_v30  ;;  %v4696_v13 = vmax.f32 %v4664_v47, 0.0 }
 0x71d   : > { %4878 = vst [vmem:[#allocation3 + $0x49] sm:$0xff] %v4693_v16  ;;  %v4694_v50 = vmax.f32 %v4662_v31, 0.0  ;;  %v9682_v42 = vpop.f32.mrb[44].mxu0 }
 0x71e   : > { %4884 = vst [vmem:[#allocation3 + $0x69] sm:$0xff] %v4696_v13  ;;  %v4628_v0 = vmul.f32 %v9682_v42, %v12458_v19  ;;  %v4484_v48 = vpop.f32.mrb[45].mxu0 }
 0x71f   : > { %4880 = vst [vmem:[#allocation3 + $0x51] sm:$0xff] %v4694_v50  ;;  %v4626_v1 = vmul.f32 %v12458_v19, %v4484_v48  ;;  %v9683_v24 = vpop.f32.mrb[46].mxu0 }
 0x720   : > { %v4667_v17 = vadd.f32 %v12463_v57, %v4628_v0  ;;  %v4629_v5 = vmul.f32 %v9683_v24, %v12458_v19  ;;  %v4487_v10 = vpop.f32.mrb[47].mxu0 }
 0x721   : > { %v4665_v59 = vadd.f32 %v12463_v57, %v4626_v1  ;;  %v4627_v15 = vmul.f32 %v12458_v19, %v4487_v10 }
 0x722   : > { %v4699_v29 = vmax.f32 %v4667_v17, 0.0  ;;  %v4668_v7 = vadd.f32 %v12463_v57, %v4629_v5 }
 0x723   : > { %v4697_v12 = vmax.f32 %v4665_v59, 0.0  ;;  %v4666_v37 = vadd.f32 %v12463_v57, %v4627_v15 }
 0x724   : > { %4890 = vst [vmem:[#allocation3 + $0x91] sm:$0xff] %v4699_v29  ;;  %v4700_v54 = vmax.f32 %v4668_v7, 0.0 }
 0x725   : > { %4886 = vst [vmem:[#allocation3 + $0x79] sm:$0xff] %v4697_v12  ;;  %v4698_v21 = vmax.f32 %v4666_v37, 0.0  ;;  %v9686_v41 = vpop.f32.mrb[48].mxu0 }
 0x726   : > { %4892 = vst [vmem:[#allocation3 + $0x99] sm:$0xff] %v4700_v54  ;;  %v4632_v58 = vmul.f32 %v9686_v41, %v12458_v19  ;;  %v4500_v53 = vpop.f32.mrb[49].mxu0 }
 0x727   : > { %4888 = vst [vmem:[#allocation3 + $0x81] sm:$0xff] %v4698_v21  ;;  %v4630_v4 = vmul.f32 %v12458_v19, %v4500_v53  ;;  %v9687_v40 = vpop.f32.mrb[50].mxu0 }
 0x728   : > { %v4671_v22 = vadd.f32 %v12463_v57, %v4632_v58  ;;  %v4633_v39 = vmul.f32 %v9687_v40, %v12458_v19  ;;  %v4503_v11 = vpop.f32.mrb[51].mxu0 }
 0x729   : > { %v4669_v52 = vadd.f32 %v12463_v57, %v4630_v4  ;;  %v4631_v45 = vmul.f32 %v12458_v19, %v4503_v11 }
 0x72a   : > { %v4703_v26 = vmax.f32 %v4671_v22, 0.0  ;;  %v4672_v33 = vadd.f32 %v12463_v57, %v4633_v39 }
 0x72b   : > { %v4701_v51 = vmax.f32 %v4669_v52, 0.0  ;;  %v4670_v3 = vadd.f32 %v12463_v57, %v4631_v45 }
 0x72c   : > { %4898 = vst [vmem:[#allocation3 + $0xc1] sm:$0xff] %v4703_v26  ;;  %v4704_v20 = vmax.f32 %v4672_v33, 0.0 }
 0x72d   : > { %4894 = vst [vmem:[#allocation3 + $0xa9] sm:$0xff] %v4701_v51  ;;  %v4702_v56 = vmax.f32 %v4670_v3, 0.0  ;;  %v9690_v49 = vpop.f32.mrb[52].mxu0 }
 0x72e   : > { %4900 = vst [vmem:[#allocation3 + $0xc9] sm:$0xff] %v4704_v20  ;;  %v4636_v61 = vmul.f32 %v9690_v49, %v12458_v19  ;;  %v4516_v63 = vpop.f32.mrb[53].mxu0 }
 0x72f   : > { %4896 = vst [vmem:[#allocation3 + $0xb1] sm:$0xff] %v4702_v56  ;;  %v4634_v8 = vmul.f32 %v12458_v19, %v4516_v63  ;;  %v9691_v9 = vpop.f32.mrb[54].mxu0 }
 0x730   : > { %v4675_v38 = vadd.f32 %v12463_v57, %v4636_v61  ;;  %v4637_v35 = vmul.f32 %v9691_v9, %v12458_v19  ;;  %v4519_v46 = vpop.f32.mrb[55].mxu0 }
 0x731   : > { %v4673_v6 = vadd.f32 %v12463_v57, %v4634_v8  ;;  %v4635_v25 = vmul.f32 %v12458_v19, %v4519_v46 }
 0x732   : > { %v4707_v36 = vmax.f32 %v4675_v38, 0.0  ;;  %v4676_v28 = vadd.f32 %v12463_v57, %v4637_v35 }
 0x733   : > { %v4705_v62 = vmax.f32 %v4673_v6, 0.0  ;;  %v4674_v55 = vadd.f32 %v12463_v57, %v4635_v25 }
 0x734   : > { %4906 = vst [vmem:[#allocation3 + $0xf1] sm:$0xff] %v4707_v36  ;;  %v4708_v44 = vmax.f32 %v4676_v28, 0.0 }
 0x735   : > { %4902 = vst [vmem:[#allocation3 + $0xd9] sm:$0xff] %v4705_v62  ;;  %v4706_v43 = vmax.f32 %v4674_v55, 0.0  ;;  %v9694_v32 = vpop.f32.mrb[56].mxu0 }
 0x736   : > { %4908 = vst [vmem:[#allocation3 + $0xf9] sm:$0xff] %v4708_v44  ;;  %v4640_v18 = vmul.f32 %v9694_v32, %v12458_v19  ;;  %v4532_v23 = vpop.f32.mrb[57].mxu0 }
 0x737   : > { %4904 = vst [vmem:[#allocation3 + $0xe1] sm:$0xff] %v4706_v43  ;;  %v4638_v34 = vmul.f32 %v12458_v19, %v4532_v23  ;;  %v9695_v27 = vpop.f32.mrb[58].mxu0 }
 0x738   : > { %v4679_v14 = vadd.f32 %v12463_v57, %v4640_v18  ;;  %v4641_v2 = vmul.f32 %v9695_v27, %v12458_v19  ;;  %v4535_v60 = vpop.f32.mrb[59].mxu0 }
 0x739   : > { %v4677_v30 = vadd.f32 %v12463_v57, %v4638_v34  ;;  %v4639_v47 = vmul.f32 %v12458_v19, %v4535_v60 }
 0x73a   : > { %v4711_v16 = vmax.f32 %v4679_v14, 0.0  ;;  %v4680_v31 = vadd.f32 %v12463_v57, %v4641_v2 }
 0x73b   : > { %v4709_v13 = vmax.f32 %v4677_v30, 0.0  ;;  %v4678_v50 = vadd.f32 %v12463_v57, %v4639_v47 }
 0x73c   : > { %4914 = vst [vmem:[#allocation3 + $0x121] sm:$0xff] %v4711_v16  ;;  %v4712_v42 = vmax.f32 %v4680_v31, 0.0 }
 0x73d   : > { %4910 = vst [vmem:[#allocation3 + $0x109] sm:$0xff] %v4709_v13  ;;  %v4710_v0 = vmax.f32 %v4678_v50, 0.0  ;;  %v9698_v48 = vpop.f32.mrb[60].mxu0 }
 0x73e   : > { %4916 = vst [vmem:[#allocation3 + $0x129] sm:$0xff] %v4712_v42  ;;  %v4644_v1 = vmul.f32 %v9698_v48, %v12458_v19  ;;  %v4548_v24 = vpop.f32.mrb[61].mxu0 }
 0x73f   : > { %4912 = vst [vmem:[#allocation3 + $0x111] sm:$0xff] %v4710_v0  ;;  %v4642_v17 = vmul.f32 %v12458_v19, %v4548_v24  ;;  %v9699_v5 = vpop.f32.mrb[62].mxu0 }
 0x740   : > { %v4683_v10 = vadd.f32 %v12463_v57, %v4644_v1  ;;  %v4645_v59 = vmul.f32 %v9699_v5, %v12458_v19  ;;  %v4551_v15 = vpop.f32.mrb[63].mxu0 }
 0x741   : > { %v4681_v29 = vadd.f32 %v12463_v57, %v4642_v17  ;;  %v4643_v7 = vmul.f32 %v12458_v19, %v4551_v15 }
 0x742   : > { %v4715_v12 = vmax.f32 %v4683_v10, 0.0  ;;  %v4684_v37 = vadd.f32 %v12463_v57, %v4645_v59 }
 0x743   : > { %v4713_v54 = vmax.f32 %v4681_v29, 0.0  ;;  %v4682_v21 = vadd.f32 %v12463_v57, %v4643_v7 }
 0x744   : > { %4922 = vst [vmem:[#allocation3 + $0x151] sm:$0xff] %v4715_v12  ;;  %v4716_v41 = vmax.f32 %v4684_v37, 0.0 }
 0x745   : > { %4918 = vst [vmem:[#allocation3 + $0x139] sm:$0xff] %v4713_v54  ;;  %v4714_v58 = vmax.f32 %v4682_v21, 0.0  ;;  %v9702_v53 = vpop.f32.mrb[64].mxu0 }
 0x746   : > { %4924 = vst [vmem:[#allocation3 + $0x159] sm:$0xff] %v4716_v41  ;;  %v4648_v4 = vmul.f32 %v9702_v53, %v12458_v19  ;;  %v4564_v40 = vpop.f32.mrb[65].mxu0 }
 0x747   : > { %4920 = vst [vmem:[#allocation3 + $0x141] sm:$0xff] %v4714_v58  ;;  %v4646_v22 = vmul.f32 %v12458_v19, %v4564_v40  ;;  %v9703_v39 = vpop.f32.mrb[66].mxu0 }
 0x748   : > { %v4687_v11 = vadd.f32 %v12463_v57, %v4648_v4  ;;  %v4649_v52 = vmul.f32 %v9703_v39, %v12458_v19  ;;  %v4567_v45 = vpop.f32.mrb[67].mxu0 }
 0x749   : > { %v4685_v26 = vadd.f32 %v12463_v57, %v4646_v22  ;;  %v4647_v33 = vmul.f32 %v12458_v19, %v4567_v45 }
 0x74a   : > { %v4719_v51 = vmax.f32 %v4687_v11, 0.0  ;;  %v4688_v3 = vadd.f32 %v12463_v57, %v4649_v52 }
 0x74b   : > { %v4717_v20 = vmax.f32 %v4685_v26, 0.0  ;;  %v4686_v56 = vadd.f32 %v12463_v57, %v4647_v33 }
 0x74c   : > { %4930 = vst [vmem:[#allocation3 + $0x181] sm:$0xff] %v4719_v51  ;;  %v4720_v49 = vmax.f32 %v4688_v3, 0.0 }
 0x74d   : > { %4926 = vst [vmem:[#allocation3 + $0x169] sm:$0xff] %v4717_v20  ;;  %v4718_v61 = vmax.f32 %v4686_v56, 0.0 }
 0x74e   : > { %4932 = vst [vmem:[#allocation3 + $0x189] sm:$0xff] %v4720_v49 }
 0x74f   : > { %4928 = vst [vmem:[#allocation3 + $0x171] sm:$0xff] %v4718_v61 }
 0x750   : > { %4940 = vsyncadd [#allocation4], 4096 }
 0x751   : > { %10958 = dma.done.wait [#allocation4], 4096 }
 0x752   : > { %10959 = vsyncadd [#allocation4], 4294963200  ;;  %v10878_v63 = vld [vmem:[%s13234_s16 + $0x40] sm:$0xff]   ;;  %v10879_v19 = vld [vmem:[%s13234_s16 + $0x48] sm:$0xff]  }
 0x753   : > { %9704 = vmatprep.subr.bf16.mxu1 %v10878_v63  ;;  %v10880_v57 = vld [vmem:[%s13234_s16 + $0x50] sm:$0xff]   ;;  %v10881_v8 = vld [vmem:[%s13234_s16 + $0x58] sm:$0xff]   ;;  %v5007_v9 = vld [vmem:[#allocation3 + $0x1] sm:$0xff] }
 0x754   : > { %9705 = vmatpush3.bf16.msra.mxu1 %v10878_v63  ;;  %v5008_v38 = vld [vmem:[#allocation3 + $0x9] sm:$0xff]  ;;  %v10882_v46 = vld [vmem:[%s13234_s16 + $0x60] sm:$0xff]   ;;  %v10885_v36 = vld [vmem:[%s13234_s16 + $0x78] sm:$0xff]  }
 0x755   : > { %9706 = vmatprep.subr.bf16.mxu1 %v10879_v19  ;;  %v5039_v35 = vpack.c.bf16 %v5008_v38, %v5007_v9  ;;  %v10883_v6 = vld [vmem:[%s13234_s16 + $0x68] sm:$0xff]   ;;  %v10884_v25 = vld [vmem:[%s13234_s16 + $0x70] sm:$0xff]   ;;  %v5009_v28 = vld [vmem:[#allocation3 + $0x19] sm:$0xff] }
 0x756   : > { %v5010_v62 = vld [vmem:[#allocation3 + $0x21] sm:$0xff]  ;;  %v5011_v44 = vld [vmem:[#allocation3 + $0x31] sm:$0xff]  ;;  %v5012_v43 = vld [vmem:[#allocation3 + $0x39] sm:$0xff] }
 0x757   : > { %9720 = vmatprep.mubr.bf16.mxu1 %v5039_v35  ;;  %v10886_v55 = vld [vmem:[%s13234_s16] sm:$0xff]   ;;  %v12556_v32 = vpack.c.bf16 %v5010_v62, %v5009_v28  ;;  %v12558_v18 = vpack.c.bf16 %v5012_v43, %v5011_v44  ;;  %v10887_v23 = vld [vmem:[%s13234_s16 + $0x8] sm:$0xff]   ;;  %v5014_v27 = vld [vmem:[#allocation3 + $0x51] sm:$0xff] }
 0x758   : > { %9707 = vmatpush3.bf16.msra.mxu1 %v10879_v19  ;;  %v5013_v34 = vld [vmem:[#allocation3 + $0x49] sm:$0xff]  ;;  %v5015_v14 = vld [vmem:[#allocation3 + $0x61] sm:$0xff]  ;;  %v10889_v16 = vld [vmem:[%s13234_s16 + $0x18] sm:$0xff]  }
 0x759   : > { %9708 = vmatprep.subr.bf16.mxu1 %v10880_v57  ;;  %v5016_v2 = vld [vmem:[#allocation3 + $0x69] sm:$0xff]  ;;  %v12568_v30 = vpack.c.bf16 %v5014_v27, %v5013_v34  ;;  %v5017_v31 = vld [vmem:[#allocation3 + $0x79] sm:$0xff]  ;;  %v5018_v13 = vld [vmem:[#allocation3 + $0x81] sm:$0xff] }
 0x75a   : > { %v10888_v60 = vld [vmem:[%s13234_s16 + $0x10] sm:$0xff]   ;;  %v12570_v47 = vpack.c.bf16 %v5016_v2, %v5015_v14  ;;  %v5020_v42 = vld [vmem:[#allocation3 + $0x99] sm:$0xff]  ;;  %v12580_v48 = vpack.c.bf16 %v5018_v13, %v5017_v31  ;;  %v10891_v24 = vld [vmem:[%s13234_s16 + $0x28] sm:$0xff]  }
 0x75b   : > { %v5019_v50 = vld [vmem:[#allocation3 + $0x91] sm:$0xff]  ;;  %v10890_v0 = vld [vmem:[%s13234_s16 + $0x20] sm:$0xff]   ;;  %v5021_v17 = vld [vmem:[#allocation3 + $0xa9] sm:$0xff] }
 0x75c   : > { %9709 = vmatpush3.bf16.msra.mxu1 %v10880_v57  ;;  %v12582_v1 = vpack.c.bf16 %v5020_v42, %v5019_v50  ;;  %v5022_v5 = vld [vmem:[#allocation3 + $0xb1] sm:$0xff]  ;;  %v5023_v10 = vld [vmem:[#allocation3 + $0xc1] sm:$0xff]  ;;  %v5024_v59 = vld [vmem:[#allocation3 + $0xc9] sm:$0xff] }
 0x75d   : > { %9710 = vmatprep.subr.bf16.mxu1 %v10881_v8  ;;  %v10892_v15 = vld [vmem:[%s13234_s16 + $0x30] sm:$0xff]   ;;  %v12592_v29 = vpack.c.bf16 %v5022_v5, %v5021_v17  ;;  %v10893_v7 = vld [vmem:[%s13234_s16 + $0x38] sm:$0xff]   ;;  %v12597_v12 = vpack.c.bf16 %v5024_v59, %v5023_v10  ;;  %v5026_v54 = vld [vmem:[#allocation3 + $0xe1] sm:$0xff] }
 0x75e   : > { %v5025_v37 = vld [vmem:[#allocation3 + $0xd9] sm:$0xff]  ;;  %v5027_v21 = vld [vmem:[#allocation3 + $0xf1] sm:$0xff]  ;;  %v5029_v40 = vld [vmem:[#allocation3 + $0x109] sm:$0xff] }
 0x75f   : > { %v5028_v41 = vld [vmem:[#allocation3 + $0xf9] sm:$0xff]  ;;  %v12604_v53 = vpack.c.bf16 %v5026_v54, %v5025_v37  ;;  %v5030_v22 = vld [vmem:[#allocation3 + $0x111] sm:$0xff]  ;;  %v5031_v39 = vld [vmem:[#allocation3 + $0x121] sm:$0xff] }
 0x760   : > { %9711 = vmatpush3.bf16.msra.mxu1 %v10881_v8  ;;  %v10894_v58 = vld [vmem:[%s13234_s16 + $0x80] sm:$0xff]   ;;  %v12606_v4 = vpack.c.bf16 %v5028_v41, %v5027_v21  ;;  %v5032_v11 = vld [vmem:[#allocation3 + $0x129] sm:$0xff]  ;;  %v12610_v52 = vpack.c.bf16 %v5030_v22, %v5029_v40  ;;  %v5035_v51 = vld [vmem:[#allocation3 + $0x151] sm:$0xff] }
 0x761   : > { %9712 = vmatprep.subr.bf16.mxu1 %v10882_v46  ;;  %v12612_v45 = vpack.c.bf16 %v5032_v11, %v5031_v39  ;;  %v5033_v26 = vld [vmem:[#allocation3 + $0x139] sm:$0xff]  ;;  %v5034_v33 = vld [vmem:[#allocation3 + $0x141] sm:$0xff]  ;;  %v5037_v49 = vld [vmem:[#allocation3 + $0x169] sm:$0xff] }
 0x762   : > { %v5036_v3 = vld [vmem:[#allocation3 + $0x159] sm:$0xff]  ;;  %v12616_v20 = vpack.c.bf16 %v5034_v33, %v5033_v26  ;;  %v5038_v61 = vld [vmem:[#allocation3 + $0x171] sm:$0xff]  ;;  %v4944_v19 = vld [vmem:[#allocation3 + $0x8] sm:$0xff] }
 0x763   : > { %v12618_v56 = vpack.c.bf16 %v5036_v3, %v5035_v51  ;;  %v4943_v63 = vld [vmem:[#allocation3] sm:$0xff]  ;;  %v12622_v57 = vpack.c.bf16 %v5038_v61, %v5037_v49  ;;  %v4945_v9 = vld [vmem:[#allocation3 + $0x18] sm:$0xff]  ;;  %v4947_v35 = vld [vmem:[#allocation3 + $0x30] sm:$0xff] }
 0x764   : > { %9713 = vmatpush3.bf16.msra.mxu1 %v10882_v46  ;;  %v4975_v8 = vpack.c.bf16 %v4944_v19, %v4943_v63  ;;  %v4946_v38 = vld [vmem:[#allocation3 + $0x20] sm:$0xff]  ;;  %v4948_v46 = vld [vmem:[#allocation3 + $0x38] sm:$0xff]  ;;  %v4949_v28 = vld [vmem:[#allocation3 + $0x48] sm:$0xff] }
 0x765   : > { %9714 = vmatprep.subr.bf16.mxu1 %v10883_v6  ;;  %v4950_v62 = vld [vmem:[#allocation3 + $0x50] sm:$0xff]  ;;  %v4952_v44 = vld [vmem:[#allocation3 + $0x68] sm:$0xff]  ;;  %v10897_v27 = vld [vmem:[%s13234_s16 + $0x98] sm:$0xff]  }
 0x766   : > { %v10896_v43 = vld [vmem:[%s13234_s16 + $0x90] sm:$0xff]   ;;  %v4953_v14 = vld [vmem:[#allocation3 + $0x78] sm:$0xff]  ;;  %v4954_v2 = vld [vmem:[#allocation3 + $0x80] sm:$0xff] }
 0x767   : > { %v10898_v31 = vld [vmem:[%s13234_s16 + $0xa0] sm:$0xff]   ;;  %v12649_v13 = vpack.c.bf16 %v4954_v2, %v4953_v14  ;;  %v10899_v42 = vld [vmem:[%s13234_s16 + $0xa8] sm:$0xff]   ;;  %v10900_v10 = vld [vmem:[%s13234_s16 + $0xb0] sm:$0xff]  }
 0x768   : > { %9715 = vmatpush3.bf16.msra.mxu1 %v10883_v6  ;;  %v12625_v6 = vpack.c.bf16 %v4946_v38, %v4945_v9  ;;  %v4959_v17 = vld [vmem:[#allocation3 + $0xc0] sm:$0xff]  ;;  %v4960_v5 = vld [vmem:[#allocation3 + $0xc8] sm:$0xff]  ;;  %v4961_v37 = vld [vmem:[#allocation3 + $0xd8] sm:$0xff] }
 0x769   : > { %9716 = vmatprep.subr.bf16.mxu1 %v10884_v25  ;;  %v4962_v54 = vld [vmem:[#allocation3 + $0xe0] sm:$0xff]  ;;  %v4963_v21 = vld [vmem:[#allocation3 + $0xf0] sm:$0xff]  ;;  %v4964_v41 = vld [vmem:[#allocation3 + $0xf8] sm:$0xff] }
 0x76a   : > { %v12673_v40 = vpack.c.bf16 %v4962_v54, %v4961_v37  ;;  %v12675_v22 = vpack.c.bf16 %v4964_v41, %v4963_v21  ;;  %v4965_v39 = vld [vmem:[#allocation3 + $0x108] sm:$0xff]  ;;  %v4966_v11 = vld [vmem:[#allocation3 + $0x110] sm:$0xff]  ;;  %v4967_v26 = vld [vmem:[#allocation3 + $0x120] sm:$0xff] }
 0x76b   : > { %v4968_v33 = vld [vmem:[#allocation3 + $0x128] sm:$0xff]  ;;  %v12679_v51 = vpack.c.bf16 %v4966_v11, %v4965_v39  ;;  %v4969_v49 = vld [vmem:[#allocation3 + $0x138] sm:$0xff]  ;;  %v4970_v61 = vld [vmem:[#allocation3 + $0x140] sm:$0xff] }
 0x76c   : > { %9717 = vmatpush3.bf16.msra.mxu1 %v10884_v25  ;;  %v12627_v25 = vpack.c.bf16 %v4948_v46, %v4947_v35  ;;  %v12681_v3 = vpack.c.bf16 %v4968_v33, %v4967_v26  ;;  %v4971_v63 = vld [vmem:[#allocation3 + $0x150] sm:$0xff]  ;;  %v4972_v19 = vld [vmem:[#allocation3 + $0x158] sm:$0xff]  ;;  %v4973_v38 = vld [vmem:[#allocation3 + $0x168] sm:$0xff] }
 0x76d   : > { %9718 = vmatprep.subr.bf16.mxu1 %v10885_v36  ;;  %v12687_v9 = vpack.c.bf16 %v4972_v19, %v4971_v63  ;;  %v4974_v35 = vld [vmem:[#allocation3 + $0x170] sm:$0xff]  ;;  %v5490_v46 = vld [vmem:[#allocation3 + $0x2] sm:$0xff]  ;;  %v5503_v21 = vld [vmem:[#allocation3 + $0x9a] sm:$0xff] }
 0x76e   : > { %v5501_v37 = vld [vmem:[#allocation3 + $0x82] sm:$0xff]  ;;  %v5502_v54 = vld [vmem:[#allocation3 + $0x92] sm:$0xff]  ;;  %v5504_v26 = vld [vmem:[#allocation3 + $0xaa] sm:$0xff] }
 0x76f   : > { %v10906_v41 = vld [vmem:[%s13234_s16 + $0xe0] sm:$0xff]   ;;  %v12720_v39 = vpack.c.bf16 %v5503_v21, %v5502_v54  ;;  %v10907_v11 = vld [vmem:[%s13234_s16 + $0xe8] sm:$0xff]   ;;  %v5505_v33 = vld [vmem:[#allocation3 + $0xb2] sm:$0xff] }
 0x770   : > { %9719 = vmatpush3.bf16.msra.mxu1 %v10885_v36  ;;  %v10895_v36 = vld [vmem:[%s13234_s16 + $0x88] sm:$0xff]   ;;  %v10908_v63 = vld [vmem:[%s13234_s16 + $0xf0] sm:$0xff]   ;;  %v12730_v19 = vpack.c.bf16 %v5505_v33, %v5504_v26  ;;  %v5519_v54 = vld [vmem:[#allocation3 + $0x15a] sm:$0xff] }
 0x771   : > { %9752 = vmatprep.subr.bf16.mxu1 %v10886_v55  ;;  %v5521_v26 = vld [vmem:[#allocation3 + $0x172] sm:$0xff] }
 0x773   : > { %9721 = vmatmul.mubr.bf16.vlgmr.msra.gmra.mrb[36].mxu1 %v12556_v32 }
 0x774   : > { %9753 = vmatpush3.bf16.msra.mxu1 %v10886_v55  ;;  %9724 = vmatprep.mubr.bf16.mxu1 %v12558_v18  ;;  %v4951_v55 = vld [vmem:[#allocation3 + $0x60] sm:$0xff] }
 0x775   : > { %9754 = vmatprep.subr.bf16.mxu1 %v10887_v23  ;;  %v12639_v34 = vpack.c.bf16 %v4952_v44, %v4951_v55  ;;  %v5492_v55 = vld [vmem:[#allocation3 + $0x1a] sm:$0xff]  ;;  %v5493_v44 = vld [vmem:[#allocation3 + $0x22] sm:$0xff] }
 0x776   : > { %v12694_v14 = vpack.c.bf16 %v5493_v44, %v5492_v55  ;;  %v5511_v55 = vld [vmem:[#allocation3 + $0xfa] sm:$0xff] }
 0x777   : > { %v10910_v44 = vld [vmem:[%s13234_s16 + $0x100] sm:$0xff]  }
 0x778   : > { %9755 = vmatpush3.bf16.msra.mxu1 %v10887_v23  ;;  %v12637_v23 = vpack.c.bf16 %v4950_v62, %v4949_v28  ;;  %v12691_v28 = vpack.c.bf16 %v4974_v35, %v4973_v38  ;;  %v10909_v35 = vld [vmem:[%s13234_s16 + $0xf8] sm:$0xff]  }
 0x779   : > { %9756 = vmatprep.subr.bf16.mxu1 %v10888_v60 }
 0x77b   : > { %9725 = vmatmul.mubr.bf16.gmra.mrb[40].mxu1 %v12568_v30 }
 0x77c   : > { %9728 = vmatprep.mubr.bf16.mxu1 %v12570_v47  ;;  %9757 = vmatpush3.bf16.msra.mxu1 %v10888_v60  ;;  %v4955_v60 = vld [vmem:[#allocation3 + $0x90] sm:$0xff] }
 0x77d   : > { %9758 = vmatprep.subr.bf16.mxu1 %v10889_v16 }
 0x780   : > { %9759 = vmatpush3.bf16.msra.mxu1 %v10889_v16  ;;  %v4956_v16 = vld [vmem:[#allocation3 + $0x98] sm:$0xff] }
 0x781   : > { %9760 = vmatprep.subr.bf16.mxu1 %v10890_v0  ;;  %v12651_v50 = vpack.c.bf16 %v4956_v16, %v4955_v60  ;;  %v10903_v60 = vld [vmem:[%s13234_s16 + $0xc8] sm:$0xff]  }
 0x782   : > { %v5496_v16 = vld [vmem:[#allocation3 + $0x4a] sm:$0xff] }
 0x783   : > { %9729 = vmatmul.mubr.bf16.gmra.mrb[44].mxu1 %v12580_v48 }
 0x784   : > { %9732 = vmatprep.mubr.bf16.mxu1 %v12582_v1  ;;  %9761 = vmatpush3.bf16.msra.mxu1 %v10890_v0  ;;  %v4957_v0 = vld [vmem:[#allocation3 + $0xa8] sm:$0xff] }
 0x785   : > { %9762 = vmatprep.subr.bf16.mxu1 %v10891_v24 }
 0x788   : > { %9763 = vmatpush3.bf16.msra.mxu1 %v10891_v24  ;;  %v4958_v24 = vld [vmem:[#allocation3 + $0xb0] sm:$0xff] }
 0x789   : > { %9764 = vmatprep.subr.bf16.mxu1 %v10892_v15  ;;  %v12661_v59 = vpack.c.bf16 %v4958_v24, %v4957_v0  ;;  %v5499_v0 = vld [vmem:[#allocation3 + $0x6a] sm:$0xff] }
 0x78a   : > { %v10904_v24 = vld [vmem:[%s13234_s16 + $0xd0] sm:$0xff]  }
 0x78b   : > { %9733 = vmatmul.mubr.bf16.gmra.mrb[48].mxu1 %v12592_v29 }
 0x78c   : > { %9736 = vmatprep.mubr.bf16.mxu1 %v12597_v12  ;;  %9765 = vmatpush3.bf16.msra.mxu1 %v10892_v15  ;;  %v12663_v15 = vpack.c.bf16 %v4960_v5, %v4959_v17 }
 0x78d   : > { %9766 = vmatprep.subr.bf16.mxu1 %v10893_v7 }
 0x790   : > { %9767 = vmatpush3.bf16.msra.mxu1 %v10893_v7  ;;  %v10901_v7 = vld [vmem:[%s13234_s16 + $0xb8] sm:$0xff]  }
 0x791   : > { %9800 = vmatprep.subr.bf16.mxu1 %v10894_v58 }
 0x793   : > { %9737 = vmatmul.mubr.bf16.gmra.mrb[52].mxu1 %v12604_v53 }
 0x794   : > { %9740 = vmatprep.mubr.bf16.mxu1 %v12606_v4 }
 0x79b   : > { %9741 = vmatmul.mubr.bf16.gmra.mrb[56].mxu1 %v12610_v52 }
 0x79c   : > { %9744 = vmatprep.mubr.bf16.mxu1 %v12612_v45 }
 0x7a3   : > { %9745 = vmatmul.mubr.bf16.gmra.mrb[60].mxu1 %v12616_v20 }
 0x7a4   : > { %9748 = vmatprep.mubr.bf16.mxu1 %v12618_v56 }
 0x7ab   : > { %9749 = vmatmul.mubr.bf16.gmra.mrb[64].mxu1 %v12622_v57 }
 0x7ac   : > { %9768 = vmatprep.mubr.bf16.mxu1 %v4975_v8  ;;  %v12685_v8 = vpack.c.bf16 %v4970_v61, %v4969_v49  ;;  %v5506_v49 = vld [vmem:[#allocation3 + $0xc2] sm:$0xff]  ;;  %v5507_v61 = vld [vmem:[#allocation3 + $0xca] sm:$0xff] }
 0x7ad   : > { %v12732_v38 = vpack.c.bf16 %v5507_v61, %v5506_v49  ;;  %v10911_v49 = vld [vmem:[%s13234_s16 + $0x108] sm:$0xff]   ;;  %v10912_v61 = vld [vmem:[%s13234_s16 + $0x110] sm:$0xff]  }
 0x7b3   : > { %9769 = vmatmul.mubr.bf16.vlgmr.msra.gmra.mrb[36].mxu1 %v12625_v6 }
 0x7b4   : > { %9801 = vmatpush3.bf16.msra.mxu1 %v10894_v58  ;;  %9772 = vmatprep.mubr.bf16.mxu1 %v12627_v25  ;;  %v10902_v58 = vld [vmem:[%s13234_s16 + $0xc0] sm:$0xff]  }
 0x7b5   : > { %9802 = vmatprep.subr.bf16.mxu1 %v10895_v36 }
 0x7b8   : > { %9803 = vmatpush3.bf16.msra.mxu1 %v10895_v36  ;;  %v5491_v36 = vld [vmem:[#allocation3 + $0xa] sm:$0xff] }
 0x7b9   : > { %9804 = vmatprep.subr.bf16.mxu1 %v10896_v43  ;;  %v5522_v62 = vpack.c.bf16 %v5491_v36, %v5490_v46  ;;  %v5508_v46 = vld [vmem:[#allocation3 + $0xda] sm:$0xff]  ;;  %v5509_v36 = vld [vmem:[#allocation3 + $0xe2] sm:$0xff] }
 0x7bb   : > { %9773 = vmatmul.mubr.bf16.gmra.mrb[40].mxu1 %v12637_v23 }
 0x7bc   : > { %9776 = vmatprep.mubr.bf16.mxu1 %v12639_v34  ;;  %9805 = vmatpush3.bf16.msra.mxu1 %v10896_v43  ;;  %v5494_v43 = vld [vmem:[#allocation3 + $0x32] sm:$0xff] }
 0x7bd   : > { %9806 = vmatprep.subr.bf16.mxu1 %v10897_v27 }
 0x7c0   : > { %9807 = vmatpush3.bf16.msra.mxu1 %v10897_v27  ;;  %v5495_v27 = vld [vmem:[#allocation3 + $0x3a] sm:$0xff] }
 0x7c1   : > { %9808 = vmatprep.subr.bf16.mxu1 %v10898_v31  ;;  %v12696_v2 = vpack.c.bf16 %v5495_v27, %v5494_v43  ;;  %v12742_v43 = vpack.c.bf16 %v5509_v36, %v5508_v46  ;;  %v10916_v46 = vld [vmem:[%s13234_s16 + $0x130] sm:$0xff]   ;;  %v10917_v36 = vld [vmem:[%s13234_s16 + $0x138] sm:$0xff]  }
 0x7c3   : > { %9777 = vmatmul.mubr.bf16.gmra.mrb[44].mxu1 %v12649_v13 }
 0x7c4   : > { %9780 = vmatprep.mubr.bf16.mxu1 %v12651_v50  ;;  %9809 = vmatpush3.bf16.msra.mxu1 %v10898_v31  ;;  %v5497_v31 = vld [vmem:[#allocation3 + $0x52] sm:$0xff] }
 0x7c5   : > { %9810 = vmatprep.subr.bf16.mxu1 %v10899_v42  ;;  %v12706_v17 = vpack.c.bf16 %v5497_v31, %v5496_v16  ;;  %v5513_v16 = vld [vmem:[#allocation3 + $0x112] sm:$0xff]  ;;  %v5514_v31 = vld [vmem:[#allocation3 + $0x122] sm:$0xff] }
 0x7c8   : > { %9811 = vmatpush3.bf16.msra.mxu1 %v10899_v42  ;;  %v5498_v42 = vld [vmem:[#allocation3 + $0x62] sm:$0xff] }
 0x7c9   : > { %9812 = vmatprep.subr.bf16.mxu1 %v10900_v10  ;;  %v12708_v5 = vpack.c.bf16 %v5499_v0, %v5498_v42  ;;  %v5515_v42 = vld [vmem:[#allocation3 + $0x12a] sm:$0xff] }
 0x7cb   : > { %9781 = vmatmul.mubr.bf16.gmra.mrb[48].mxu1 %v12661_v59 }
 0x7cc   : > { %9784 = vmatprep.mubr.bf16.mxu1 %v12663_v15  ;;  %9813 = vmatpush3.bf16.msra.mxu1 %v10900_v10  ;;  %v10905_v10 = vld [vmem:[%s13234_s16 + $0xd8] sm:$0xff]  }
 0x7cd   : > { %9814 = vmatprep.subr.bf16.mxu1 %v10901_v7 }
 0x7d0   : > { %9815 = vmatpush3.bf16.msra.mxu1 %v10901_v7  ;;  %v5500_v7 = vld [vmem:[#allocation3 + $0x7a] sm:$0xff] }
 0x7d1   : > { %9848 = vmatprep.subr.bf16.mxu1 %v10902_v58 }
 0x7d3   : > { %9785 = vmatmul.mubr.bf16.gmra.mrb[52].mxu1 %v12673_v40 }
 0x7d4   : > { %9788 = vmatprep.mubr.bf16.mxu1 %v12675_v22 }
 0x7db   : > { %9789 = vmatmul.mubr.bf16.gmra.mrb[56].mxu1 %v12679_v51 }
 0x7dc   : > { %9792 = vmatprep.mubr.bf16.mxu1 %v12681_v3 }
 0x7e3   : > { %9793 = vmatmul.mubr.bf16.gmra.mrb[60].mxu1 %v12685_v8 }
 0x7e4   : > { %9796 = vmatprep.mubr.bf16.mxu1 %v12687_v9 }
 0x7eb   : > { %9797 = vmatmul.mubr.bf16.gmra.mrb[64].mxu1 %v12691_v28 }
 0x7ec   : > { %9816 = vmatprep.mubr.bf16.mxu1 %v5522_v62  ;;  %v5510_v62 = vld [vmem:[#allocation3 + $0xf2] sm:$0xff] }
 0x7ed   : > { %v12744_v27 = vpack.c.bf16 %v5511_v55, %v5510_v62  ;;  %v10918_v62 = vld [vmem:[%s13234_s16 + $0x140] sm:$0xff]  }
 0x7ee   : > { %v5826_v55 = vld [vmem:[#allocation3 + $0x180] sm:$0xff] }
 0x7f3   : > { %9817 = vmatmul.mubr.bf16.vlgmr.msra.gmra.mrb[36].mxu1 %v12694_v14 }
 0x7f4   : > { %9849 = vmatpush3.bf16.msra.mxu1 %v10902_v58  ;;  %9820 = vmatprep.mubr.bf16.mxu1 %v12696_v2  ;;  %v12718_v58 = vpack.c.bf16 %v5501_v37, %v5500_v7  ;;  %v5517_v7 = vld [vmem:[#allocation3 + $0x142] sm:$0xff]  ;;  %v5518_v37 = vld [vmem:[#allocation3 + $0x152] sm:$0xff] }
 0x7f5   : > { %9850 = vmatprep.subr.bf16.mxu1 %v10903_v60 }
 0x7f8   : > { %9851 = vmatpush3.bf16.msra.mxu1 %v10903_v60  ;;  %v5512_v60 = vld [vmem:[#allocation3 + $0x10a] sm:$0xff] }
 0x7f9   : > { %9852 = vmatprep.subr.bf16.mxu1 %v10904_v24  ;;  %v12748_v0 = vpack.c.bf16 %v5513_v16, %v5512_v60  ;;  %v10919_v16 = vld [vmem:[%s13234_s16 + $0x148] sm:$0xff]  }
 0x7fb   : > { %9821 = vmatmul.mubr.bf16.gmra.mrb[40].mxu1 %v12706_v17 }
 0x7fc   : > { %9824 = vmatprep.mubr.bf16.mxu1 %v12708_v5  ;;  %9853 = vmatpush3.bf16.msra.mxu1 %v10904_v24  ;;  %v12750_v24 = vpack.c.bf16 %v5515_v42, %v5514_v31  ;;  %v7327_v31 = vld [vmem:[#allocation3 + $0x3a] sm:$0xff] }
 0x7fd   : > { %9854 = vmatprep.subr.bf16.mxu1 %v10905_v10 }
 0x800   : > { %9855 = vmatpush3.bf16.msra.mxu1 %v10905_v10  ;;  %v5516_v10 = vld [vmem:[#allocation3 + $0x13a] sm:$0xff] }
 0x801   : > { %9856 = vmatprep.subr.bf16.mxu1 %v10906_v41  ;;  %v12754_v21 = vpack.c.bf16 %v5517_v7, %v5516_v10  ;;  %v7328_v10 = vld [vmem:[#allocation3 + $0x4a] sm:$0xff]  ;;  %v7329_v7 = vld [vmem:[#allocation3 + $0x52] sm:$0xff] }
 0x803   : > { %9825 = vmatmul.mubr.bf16.gmra.mrb[44].mxu1 %v12718_v58 }
 0x804   : > { %9828 = vmatprep.mubr.bf16.mxu1 %v12720_v39  ;;  %9857 = vmatpush3.bf16.msra.mxu1 %v10906_v41  ;;  %v12756_v41 = vpack.c.bf16 %v5519_v54, %v5518_v37  ;;  %v10927_v37 = vld [vmem:[%s13234_s16 + $0x188] sm:$0xff]   ;;  %v7359_v54 = vpack.c.bf16 %v7329_v7, %v7328_v10  ;;  %v6739_v10 = vld [vmem:[#allocation3 + $0x158] sm:$0xff] }
 0x805   : > { %9858 = vmatprep.subr.bf16.mxu1 %v10907_v11 }
 0x808   : > { %9859 = vmatpush3.bf16.msra.mxu1 %v10907_v11  ;;  %v5520_v11 = vld [vmem:[#allocation3 + $0x16a] sm:$0xff] }
 0x809   : > { %9860 = vmatprep.subr.bf16.mxu1 %v10908_v63  ;;  %v12760_v33 = vpack.c.bf16 %v5521_v26, %v5520_v11  ;;  %v10928_v11 = vld [vmem:[%s13234_s16 + $0x190] sm:$0xff]  }
 0x80a   : > { %v7331_v26 = vld [vmem:[#allocation3 + $0x6a] sm:$0xff] }
 0x80b   : > { %9829 = vmatmul.mubr.bf16.gmra.mrb[48].mxu1 %v12730_v19 }
 0x80c   : > { %9832 = vmatprep.mubr.bf16.mxu1 %v12732_v38  ;;  %9861 = vmatpush3.bf16.msra.mxu1 %v10908_v63  ;;  %v10914_v63 = vld [vmem:[%s13234_s16 + $0x120] sm:$0xff]  }
 0x80d   : > { %9862 = vmatprep.subr.bf16.mxu1 %v10909_v35 }
 0x810   : > { %9863 = vmatpush3.bf16.msra.mxu1 %v10909_v35  ;;  %v10915_v35 = vld [vmem:[%s13234_s16 + $0x128] sm:$0xff]  }
 0x811   : > { %9896 = vmatprep.subr.bf16.mxu1 %v10910_v44 }
 0x813   : > { %9833 = vmatmul.mubr.bf16.gmra.mrb[52].mxu1 %v12742_v43 }
 0x814   : > { %9836 = vmatprep.mubr.bf16.mxu1 %v12744_v27 }
 0x81b   : > { %9837 = vmatmul.mubr.bf16.gmra.mrb[56].mxu1 %v12748_v0 }
 0x81c   : > { %9840 = vmatprep.mubr.bf16.mxu1 %v12750_v24 }
 0x823   : > { %9841 = vmatmul.mubr.bf16.gmra.mrb[60].mxu1 %v12754_v21 }
 0x824   : > { %9844 = vmatprep.mubr.bf16.mxu1 %v12756_v41 }
 0x82b   : > { %9845 = vmatmul.mubr.bf16.gmra.mrb[64].mxu1 %v12760_v33 }
 0x82c   : > { %9864 = vmatprep.mubr.bf16.mxu1 %v12625_v6  ;;  %v10913_v6 = vld [vmem:[%s13234_s16 + $0x118] sm:$0xff]  }
 0x833   : > { %9865 = vmatmul.mubr.bf16.vlgmr.msra.gmra.mrb[36].mxu1 %v12627_v25 }
 0x834   : > { %9897 = vmatpush3.bf16.msra.mxu1 %v10910_v44  ;;  %9868 = vmatprep.mubr.bf16.mxu1 %v12637_v23  ;;  %v5827_v44 = vld [vmem:[#allocation3 + $0x188] sm:$0xff] }
 0x835   : > { %9898 = vmatprep.subr.bf16.mxu1 %v10911_v49  ;;  %v12802_v60 = vpack.c.bf16 %v5827_v44, %v5826_v55  ;;  %v7337_v55 = vld [vmem:[#allocation3 + $0xb2] sm:$0xff] }
 0x838   : > { %9899 = vmatpush3.bf16.msra.mxu1 %v10911_v49 }
 0x839   : > { %9900 = vmatprep.subr.bf16.mxu1 %v10912_v61 }
 0x83b   : > { %9869 = vmatmul.mubr.bf16.gmra.mrb[40].mxu1 %v12639_v34 }
 0x83c   : > { %9872 = vmatprep.mubr.bf16.mxu1 %v12649_v13  ;;  %9901 = vmatpush3.bf16.msra.mxu1 %v10912_v61  ;;  %v7332_v61 = vld [vmem:[#allocation3 + $0x7a] sm:$0xff] }
 0x83d   : > { %9902 = vmatprep.subr.bf16.mxu1 %v10913_v6 }
 0x840   : > { %9903 = vmatpush3.bf16.msra.mxu1 %v10913_v6  ;;  %v7333_v6 = vld [vmem:[#allocation3 + $0x82] sm:$0xff] }
 0x841   : > { %9904 = vmatprep.subr.bf16.mxu1 %v10914_v63 }
 0x843   : > { %9873 = vmatmul.mubr.bf16.gmra.mrb[44].mxu1 %v12651_v50 }
 0x844   : > { %9876 = vmatprep.mubr.bf16.mxu1 %v12661_v59  ;;  %9905 = vmatpush3.bf16.msra.mxu1 %v10914_v63  ;;  %v7361_v63 = vpack.c.bf16 %v7333_v6, %v7332_v61  ;;  %v7022_v6 = vld [vmem:[#allocation3 + $0x49] sm:$0xff] }
 0x845   : > { %9906 = vmatprep.subr.bf16.mxu1 %v10915_v35 }
 0x848   : > { %9907 = vmatpush3.bf16.msra.mxu1 %v10915_v35  ;;  %v7335_v35 = vld [vmem:[#allocation3 + $0x9a] sm:$0xff] }
 0x849   : > { %9908 = vmatprep.subr.bf16.mxu1 %v10916_v46 }
 0x84b   : > { %9877 = vmatmul.mubr.bf16.gmra.mrb[48].mxu1 %v12663_v15 }
 0x84c   : > { %9880 = vmatprep.mubr.bf16.mxu1 %v12673_v40  ;;  %9909 = vmatpush3.bf16.msra.mxu1 %v10916_v46  ;;  %v10930_v46 = vld [vmem:[%s13234_s16 + $0x1a0] sm:$0xff]  }
 0x84d   : > { %9910 = vmatprep.subr.bf16.mxu1 %v10917_v36 }
 0x850   : > { %9911 = vmatpush3.bf16.msra.mxu1 %v10917_v36 }
 0x851   : > { %9944 = vmatprep.subr.bf16.mxu1 %v10918_v62 }
 0x853   : > { %9881 = vmatmul.mubr.bf16.gmra.mrb[52].mxu1 %v12675_v22 }
 0x854   : > { %9884 = vmatprep.mubr.bf16.mxu1 %v12679_v51 }
 0x85b   : > { %9885 = vmatmul.mubr.bf16.gmra.mrb[56].mxu1 %v12681_v3  ;;  %v10920_v3 = vld [vmem:[%s13234_s16 + $0x150] sm:$0xff]  }
 0x85c   : > { %9888 = vmatprep.mubr.bf16.mxu1 %v12685_v8  ;;  %v6133_v8 = vld [vmem:[#allocation3 + $0x189] sm:$0xff] }
 0x863   : > { %9889 = vmatmul.mubr.bf16.gmra.mrb[60].mxu1 %v12687_v9 }
 0x864   : > { %9892 = vmatprep.mubr.bf16.mxu1 %v12691_v28  ;;  %v7326_v28 = vld [vmem:[#allocation3 + $0x32] sm:$0xff] }
 0x865   : > { %v7358_v42 = vpack.c.bf16 %v7327_v31, %v7326_v28  ;;  %v7345_v28 = vld [vmem:[#allocation3 + $0x112] sm:$0xff] }
 0x867   : > { %10104 = vmatprep.mubr.bf16.mxu0 %v7358_v42 }
 0x86b   : > { %9893 = vmatmul.mubr.bf16.gmra.mrb[64].mxu1 %v12802_v60 }
 0x86c   : > { %9912 = vmatprep.mubr.bf16.mxu1 %v12556_v32  ;;  %v10921_v32 = vld [vmem:[%s13234_s16 + $0x158] sm:$0xff]  }
 0x873   : > { %9913 = vmatmul.mubr.bf16.vlgmr.msra.gmra.mrb[36].mxu1 %v12558_v18  ;;  %v10922_v18 = vld [vmem:[%s13234_s16 + $0x160] sm:$0xff]  }
 0x874   : > { %9945 = vmatpush3.bf16.msra.mxu1 %v10918_v62  ;;  %9916 = vmatprep.mubr.bf16.mxu1 %v12568_v30  ;;  %v10923_v30 = vld [vmem:[%s13234_s16 + $0x168] sm:$0xff]  }
 0x875   : > { %9946 = vmatprep.subr.bf16.mxu1 %v10919_v16  ;;  %v7336_v62 = vld [vmem:[#allocation3 + $0xaa] sm:$0xff] }
 0x876   : > { %v7363_v44 = vpack.c.bf16 %v7337_v55, %v7336_v62  ;;  %v7028_v62 = vld [vmem:[#allocation3 + $0x91] sm:$0xff]  ;;  %v7029_v55 = vld [vmem:[#allocation3 + $0x99] sm:$0xff] }
 0x878   : > { %9947 = vmatpush3.bf16.msra.mxu1 %v10919_v16  ;;  %v7339_v16 = vld [vmem:[#allocation3 + $0xca] sm:$0xff] }
 0x879   : > { %9948 = vmatprep.subr.bf16.mxu1 %v10920_v3 }
 0x87b   : > { %9917 = vmatmul.mubr.bf16.gmra.mrb[40].mxu1 %v12570_v47  ;;  %v10924_v47 = vld [vmem:[%s13234_s16 + $0x170] sm:$0xff]  }
 0x87c   : > { %9920 = vmatprep.mubr.bf16.mxu1 %v12580_v48  ;;  %9949 = vmatpush3.bf16.msra.mxu1 %v10920_v3  ;;  %v10925_v48 = vld [vmem:[%s13234_s16 + $0x178] sm:$0xff]   ;;  %v10932_v3 = vld [vmem:[%s13234_s16 + $0x1b0] sm:$0xff]  }
 0x87d   : > { %9950 = vmatprep.subr.bf16.mxu1 %v10921_v32 }
 0x880   : > { %9951 = vmatpush3.bf16.msra.mxu1 %v10921_v32 }
 0x881   : > { %9952 = vmatprep.subr.bf16.mxu1 %v10922_v18 }
 0x883   : > { %9921 = vmatmul.mubr.bf16.gmra.mrb[44].mxu1 %v12582_v1  ;;  %v10926_v1 = vld [vmem:[%s13234_s16 + $0x180] sm:$0xff]  }
 0x884   : > { %9924 = vmatprep.mubr.bf16.mxu1 %v12592_v29  ;;  %9953 = vmatpush3.bf16.msra.mxu1 %v10922_v18  ;;  %v12841_v29 = vld [vmem:[%s13234_s16 + $0x200] sm:$0xff]  }
 0x885   : > { %9954 = vmatprep.subr.bf16.mxu1 %v10923_v30  ;;  %10088 = vmatprep.subr.bf16.mxu0 %v12841_v29  ;;  %v7340_v18 = vld [vmem:[#allocation3 + $0xda] sm:$0xff] }
 0x886   : > { %10089 = vmatpush3.bf16.msra.mxu0 %v12841_v29 }
 0x888   : > { %9955 = vmatpush3.bf16.msra.mxu1 %v10923_v30  ;;  %v7341_v30 = vld [vmem:[#allocation3 + $0xe2] sm:$0xff] }
 0x889   : > { %9956 = vmatprep.subr.bf16.mxu1 %v10924_v47 }
 0x88b   : > { %9925 = vmatmul.mubr.bf16.gmra.mrb[48].mxu1 %v12597_v12  ;;  %v12848_v12 = vld [vmem:[%s13234_s16 + $0x208] sm:$0xff]  }
 0x88c   : > { %9928 = vmatprep.mubr.bf16.mxu1 %v12604_v53  ;;  %9957 = vmatpush3.bf16.msra.mxu1 %v10924_v47  ;;  %v12857_v53 = vld [vmem:[%s13234_s16 + $0x210] sm:$0xff]   ;;  %v7365_v47 = vpack.c.bf16 %v7341_v30, %v7340_v18  ;;  %v7035_v30 = vld [vmem:[#allocation3 + $0xe1] sm:$0xff] }
 0x88d   : > { %9958 = vmatprep.subr.bf16.mxu1 %v10925_v48  ;;  %10090 = vmatprep.subr.bf16.mxu0 %v12848_v12 }
 0x88e   : > { %10091 = vmatpush3.bf16.msra.mxu0 %v12848_v12 }
 0x88f   : > { %10092 = vmatprep.subr.bf16.mxu0 %v12857_v53 }
 0x890   : > { %9959 = vmatpush3.bf16.msra.mxu1 %v10925_v48  ;;  %v7343_v48 = vld [vmem:[#allocation3 + $0xfa] sm:$0xff] }
 0x891   : > { %9992 = vmatprep.subr.bf16.mxu1 %v10926_v1 }
 0x892   : > { %10093 = vmatpush3.bf16.msra.mxu0 %v12857_v53 }
 0x893   : > { %9929 = vmatmul.mubr.bf16.gmra.mrb[52].mxu1 %v12606_v4  ;;  %v12864_v4 = vld [vmem:[%s13234_s16 + $0x218] sm:$0xff]  }
 0x894   : > { %9932 = vmatprep.mubr.bf16.mxu1 %v12610_v52  ;;  %10094 = vmatprep.subr.bf16.mxu0 %v12864_v4  ;;  %v12873_v52 = vld [vmem:[%s13234_s16 + $0x220] sm:$0xff]  }
 0x896   : > { %10095 = vmatpush3.bf16.msra.mxu0 %v12864_v4 }
 0x897   : > { %10096 = vmatprep.subr.bf16.mxu0 %v12873_v52 }
 0x89a   : > { %10097 = vmatpush3.bf16.msra.mxu0 %v12873_v52 }
 0x89b   : > { %9933 = vmatmul.mubr.bf16.gmra.mrb[56].mxu1 %v12612_v45  ;;  %v12880_v45 = vld [vmem:[%s13234_s16 + $0x228] sm:$0xff]  }
 0x89c   : > { %9936 = vmatprep.mubr.bf16.mxu1 %v12616_v20  ;;  %v6132_v20 = vld [vmem:[#allocation3 + $0x181] sm:$0xff]  ;;  %10098 = vmatprep.subr.bf16.mxu0 %v12880_v45 }
 0x89d   : > { %v12885_v9 = vpack.c.bf16 %v6133_v8, %v6132_v20  ;;  %v7344_v8 = vld [vmem:[#allocation3 + $0x10a] sm:$0xff] }
 0x89e   : > { %10099 = vmatpush3.bf16.msra.mxu0 %v12880_v45  ;;  %v7367_v31 = vpack.c.bf16 %v7345_v28, %v7344_v8 }
 0x8a3   : > { %9937 = vmatmul.mubr.bf16.gmra.mrb[60].mxu1 %v12618_v56  ;;  %v12891_v56 = vld [vmem:[%s13234_s16 + $0x230] sm:$0xff]  }
 0x8a4   : > { %9940 = vmatprep.mubr.bf16.mxu1 %v12622_v57  ;;  %10100 = vmatprep.subr.bf16.mxu0 %v12891_v56  ;;  %v12898_v57 = vld [vmem:[%s13234_s16 + $0x238] sm:$0xff]  }
 0x8a5   : > { %10101 = vmatpush3.bf16.msra.mxu0 %v12891_v56 }
 0x8a6   : > { %10102 = vmatprep.subr.bf16.mxu0 %v12898_v57 }
 0x8a9   : > { %10103 = vmatpush3.bf16.msra.mxu0 %v12898_v57 }
 0x8ab   : > { %9941 = vmatmul.mubr.bf16.gmra.mrb[64].mxu1 %v12885_v9 }
 0x8ac   : > { %9960 = vmatprep.mubr.bf16.mxu1 %v12694_v14  ;;  %10105 = vmatmul.mubr.bf16.vlgmr.msra.gmra.mrb[68].mxu0 %v7359_v54  ;;  %v7330_v14 = vld [vmem:[#allocation3 + $0x62] sm:$0xff] }
 0x8ad   : > { %v7360_v49 = vpack.c.bf16 %v7331_v26, %v7330_v14  ;;  %v6744_v14 = vld [vmem:[#allocation3 + $0x198] sm:$0xff] }
 0x8ae   : > { %v7020_v26 = vld [vmem:[#allocation3 + $0x31] sm:$0xff] }
 0x8af   : > { %10108 = vmatprep.mubr.bf16.mxu0 %v7360_v49  ;;  %v7021_v49 = vld [vmem:[#allocation3 + $0x39] sm:$0xff] }
 0x8b0   : > { %v7052_v61 = vpack.c.bf16 %v7021_v49, %v7020_v26  ;;  %v13012_v49 = vld [vmem:[%s13236_s18] ss:$0 sm:$0xff] }
 0x8b3   : > { %9961 = vmatmul.mubr.bf16.vlgmr.msra.gmra.mrb[36].mxu1 %v12696_v2  ;;  %v10929_v2 = vld [vmem:[%s13234_s16 + $0x198] sm:$0xff]  }
 0x8b4   : > { %9993 = vmatpush3.bf16.msra.mxu1 %v10926_v1  ;;  %9964 = vmatprep.mubr.bf16.mxu1 %v12706_v17  ;;  %v7334_v17 = vld [vmem:[#allocation3 + $0x92] sm:$0xff]  ;;  %v10934_v1 = vld [vmem:[%s13234_s16 + $0x1c0] sm:$0xff]  }
 0x8b5   : > { %9994 = vmatprep.subr.bf16.mxu1 %v10927_v37  ;;  %10109 = vmatmul.mubr.bf16.gmra.mrb[72].mxu0 %v7361_v63  ;;  %v7362_v36 = vpack.c.bf16 %v7335_v35, %v7334_v17  ;;  %v7024_v63 = vld [vmem:[#allocation3 + $0x61] sm:$0xff]  ;;  %v7025_v17 = vld [vmem:[#allocation3 + $0x69] sm:$0xff] }
 0x8b7   : > { %10112 = vmatprep.mubr.bf16.mxu0 %v7362_v36  ;;  %v7026_v36 = vld [vmem:[#allocation3 + $0x79] sm:$0xff] }
 0x8b8   : > { %9995 = vmatpush3.bf16.msra.mxu1 %v10927_v37 }
 0x8b9   : > { %9996 = vmatprep.subr.bf16.mxu1 %v10928_v11 }
 0x8bb   : > { %9965 = vmatmul.mubr.bf16.gmra.mrb[40].mxu1 %v12708_v5  ;;  %v10931_v5 = vld [vmem:[%s13234_s16 + $0x1a8] sm:$0xff]  }
 0x8bc   : > { %9968 = vmatprep.mubr.bf16.mxu1 %v12718_v58  ;;  %9997 = vmatpush3.bf16.msra.mxu1 %v10928_v11  ;;  %v7338_v58 = vld [vmem:[#allocation3 + $0xc2] sm:$0xff] }
 0x8bd   : > { %9998 = vmatprep.subr.bf16.mxu1 %v10929_v2  ;;  %10113 = vmatmul.mubr.bf16.gmra.mrb[76].mxu0 %v7363_v44  ;;  %v7364_v32 = vpack.c.bf16 %v7339_v16, %v7338_v58  ;;  %v6745_v11 = vld [vmem:[#allocation3 + $0x1a0] sm:$0xff]  ;;  %v7056_v44 = vpack.c.bf16 %v7029_v55, %v7028_v62  ;;  %v7030_v58 = vld [vmem:[#allocation3 + $0xa9] sm:$0xff]  ;;  %v7031_v16 = vld [vmem:[#allocation3 + $0xb1] sm:$0xff] }
 0x8be   : > { %v13338_v55 = vld [vmem:[#allocation13_spill] sm:$0xff] }
 0x8bf   : > { %10116 = vmatprep.mubr.bf16.mxu0 %v7364_v32  ;;  %v7057_v32 = vpack.c.bf16 %v7031_v16, %v7030_v58 }
 0x8c0   : > { %9999 = vmatpush3.bf16.msra.mxu1 %v10929_v2  ;;  %v7023_v2 = vld [vmem:[#allocation3 + $0x51] sm:$0xff] }
 0x8c1   : > { %10000 = vmatprep.subr.bf16.mxu1 %v10930_v46  ;;  %v7053_v35 = vpack.c.bf16 %v7023_v2, %v7022_v6  ;;  %v13336_v2 = vld [vmem:[#allocation11_spill] sm:$0xff] }
 0x8c3   : > { %9969 = vmatmul.mubr.bf16.gmra.mrb[44].mxu1 %v12720_v39  ;;  %v10933_v39 = vld [vmem:[%s13234_s16 + $0x1b8] sm:$0xff]  }
 0x8c4   : > { %9972 = vmatprep.mubr.bf16.mxu1 %v12730_v19  ;;  %10001 = vmatpush3.bf16.msra.mxu1 %v10930_v46  ;;  %v7342_v19 = vld [vmem:[#allocation3 + $0xf2] sm:$0xff]  ;;  %v7054_v46 = vpack.c.bf16 %v7025_v17, %v7024_v63  ;;  %v13337_v17 = vld [vmem:[#allocation12_spill] sm:$0xff] }
 0x8c5   : > { %10002 = vmatprep.subr.bf16.mxu1 %v10931_v5  ;;  %10117 = vmatmul.mubr.bf16.gmra.mrb[80].mxu0 %v7365_v47  ;;  %v7366_v20 = vpack.c.bf16 %v7343_v48, %v7342_v19  ;;  %v7037_v47 = vld [vmem:[#allocation3 + $0xf9] sm:$0xff]  ;;  %v7039_v48 = vld [vmem:[#allocation3 + $0x111] sm:$0xff] }
 0x8c7   : > { %10120 = vmatprep.mubr.bf16.mxu0 %v7366_v20  ;;  %v7041_v20 = vld [vmem:[#allocation3 + $0x129] sm:$0xff] }
 0x8c8   : > { %10003 = vmatpush3.bf16.msra.mxu1 %v10931_v5 }
 0x8c9   : > { %10004 = vmatprep.subr.bf16.mxu1 %v10932_v3 }
 0x8cb   : > { %9973 = vmatmul.mubr.bf16.gmra.mrb[48].mxu1 %v12732_v38  ;;  %v6438_v38 = vld [vmem:[#allocation3 + $0x182] sm:$0xff] }
 0x8cc   : > { %9976 = vmatprep.mubr.bf16.mxu1 %v12742_v43  ;;  %10005 = vmatpush3.bf16.msra.mxu1 %v10932_v3  ;;  %v6439_v43 = vld [vmem:[#allocation3 + $0x18a] sm:$0xff] }
 0x8cd   : > { %10006 = vmatprep.subr.bf16.mxu1 %v10933_v39  ;;  %10121 = vmatmul.mubr.bf16.gmra.mrb[84].mxu0 %v7367_v31  ;;  %v12942_v42 = vpack.c.bf16 %v6439_v43, %v6438_v38  ;;  %v7033_v3 = vld [vmem:[#allocation3 + $0xc9] sm:$0xff]  ;;  %v7043_v31 = vld [vmem:[#allocation3 + $0x141] sm:$0xff]  ;;  %v7044_v38 = vld [vmem:[#allocation3 + $0x151] sm:$0xff] }
 0x8ce   : > { %v7045_v43 = vld [vmem:[#allocation3 + $0x159] sm:$0xff] }
 0x8d0   : > { %10007 = vmatpush3.bf16.msra.mxu1 %v10933_v39  ;;  %v7036_v39 = vld [vmem:[#allocation3 + $0xf1] sm:$0xff] }
 0x8d1   : > { %10040 = vmatprep.subr.bf16.mxu1 %v10934_v1  ;;  %v7060_v19 = vpack.c.bf16 %v7037_v47, %v7036_v39  ;;  %v13340_v39 = vld [vmem:[#allocation15_spill] sm:$0xff] }
 0x8d3   : > { %9977 = vmatmul.mubr.bf16.gmra.mrb[52].mxu1 %v12744_v27  ;;  %v10935_v27 = vld [vmem:[%s13234_s16 + $0x1c8] sm:$0xff]  }
 0x8d4   : > { %9980 = vmatprep.mubr.bf16.mxu1 %v12748_v0  ;;  %v10936_v0 = vld [vmem:[%s13234_s16 + $0x1d0] sm:$0xff]  }
 0x8db   : > { %9981 = vmatmul.mubr.bf16.gmra.mrb[56].mxu1 %v12750_v24  ;;  %v6735_v24 = vld [vmem:[#allocation3 + $0x128] sm:$0xff] }
 0x8dc   : > { %9984 = vmatprep.mubr.bf16.mxu1 %v12754_v21  ;;  %v6736_v21 = vld [vmem:[#allocation3 + $0x138] sm:$0xff] }
 0x8e3   : > { %9985 = vmatmul.mubr.bf16.gmra.mrb[60].mxu1 %v12756_v41  ;;  %v6737_v41 = vld [vmem:[#allocation3 + $0x140] sm:$0xff] }
 0x8e4   : > { %9988 = vmatprep.mubr.bf16.mxu1 %v12760_v33  ;;  %v6738_v33 = vld [vmem:[#allocation3 + $0x150] sm:$0xff]  ;;  %v6757_v7 = vpack.c.bf16 %v6737_v41, %v6736_v21  ;;  %v7349_v21 = vld [vmem:[#allocation3 + $0x142] sm:$0xff] }
 0x8e5   : > { %v6758_v37 = vpack.c.bf16 %v6739_v10, %v6738_v33  ;;  %v7350_v41 = vld [vmem:[#allocation3 + $0x152] sm:$0xff]  ;;  %v7351_v33 = vld [vmem:[#allocation3 + $0x15a] sm:$0xff] }
 0x8eb   : > { %9989 = vmatmul.mubr.bf16.gmra.mrb[64].mxu1 %v12942_v42 }
 0x8ec   : > { %10008 = vmatprep.mubr.bf16.mxu1 %v12627_v25  ;;  %v10937_v25 = vld [vmem:[%s13234_s16 + $0x1d8] sm:$0xff]  }
 0x8f3   : > { %10009 = vmatmul.mubr.bf16.vlgmr.msra.gmra.mrb[36].mxu1 %v12637_v23  ;;  %v10938_v23 = vld [vmem:[%s13234_s16 + $0x1e0] sm:$0xff]  }
 0x8f4   : > { %10041 = vmatpush3.bf16.msra.mxu1 %v10934_v1  ;;  %10012 = vmatprep.mubr.bf16.mxu1 %v12639_v34  ;;  %v10941_v34 = vld [vmem:[%s13234_s16 + $0x1e8] sm:$0xff]  }
 0x8f5   : > { %10042 = vmatprep.subr.bf16.mxu1 %v10935_v27  ;;  %v7040_v1 = vld [vmem:[#allocation3 + $0x121] sm:$0xff] }
 0x8f6   : > { %v7062_v28 = vpack.c.bf16 %v7041_v20, %v7040_v1  ;;  %v13342_v1 = vld [vmem:[#allocation17_spill] sm:$0xff] }
 0x8f8   : > { %10043 = vmatpush3.bf16.msra.mxu1 %v10935_v27  ;;  %v7064_v27 = vpack.c.bf16 %v7045_v43, %v7044_v38 }
 0x8f9   : > { %10044 = vmatprep.subr.bf16.mxu1 %v10936_v0 }
 0x8fb   : > { %10013 = vmatmul.mubr.bf16.gmra.mrb[40].mxu1 %v12649_v13  ;;  %v10944_v13 = vld [vmem:[%s13234_s16 + $0x1f0] sm:$0xff]  }
 0x8fc   : > { %10016 = vmatprep.mubr.bf16.mxu1 %v12651_v50  ;;  %10045 = vmatpush3.bf16.msra.mxu1 %v10936_v0  ;;  %v10947_v50 = vld [vmem:[%s13234_s16 + $0x1f8] sm:$0xff]   ;;  %v7046_v0 = vld [vmem:[#allocation3 + $0x169] sm:$0xff] }
 0x8fd   : > { %10046 = vmatprep.subr.bf16.mxu1 %v10937_v25 }
 0x900   : > { %10047 = vmatpush3.bf16.msra.mxu1 %v10937_v25  ;;  %v7047_v25 = vld [vmem:[#allocation3 + $0x171] sm:$0xff] }
 0x901   : > { %10048 = vmatprep.subr.bf16.mxu1 %v10938_v23 }
 0x903   : > { %10017 = vmatmul.mubr.bf16.gmra.mrb[44].mxu1 %v12661_v59  ;;  %v6734_v59 = vld [vmem:[#allocation3 + $0x120] sm:$0xff] }
 0x904   : > { %10020 = vmatprep.mubr.bf16.mxu1 %v12663_v15  ;;  %10049 = vmatpush3.bf16.msra.mxu1 %v10938_v23  ;;  %v6756_v15 = vpack.c.bf16 %v6735_v24, %v6734_v59  ;;  %v7065_v23 = vpack.c.bf16 %v7047_v25, %v7046_v0 }
 0x905   : > { %10050 = vmatprep.subr.bf16.mxu1 %v10941_v34 }
 0x908   : > { %10051 = vmatpush3.bf16.msra.mxu1 %v10941_v34  ;;  %v7050_v34 = vld [vmem:[#allocation3 + $0x199] sm:$0xff] }
 0x909   : > { %10052 = vmatprep.subr.bf16.mxu1 %v10944_v13 }
 0x90b   : > { %10021 = vmatmul.mubr.bf16.gmra.mrb[48].mxu1 %v12673_v40  ;;  %v6740_v40 = vld [vmem:[#allocation3 + $0x168] sm:$0xff] }
 0x90c   : > { %10024 = vmatprep.mubr.bf16.mxu1 %v12675_v22  ;;  %10053 = vmatpush3.bf16.msra.mxu1 %v10944_v13  ;;  %v6741_v22 = vld [vmem:[#allocation3 + $0x170] sm:$0xff]  ;;  %v7051_v13 = vld [vmem:[#allocation3 + $0x1a1] sm:$0xff] }
 0x90d   : > { %10054 = vmatprep.subr.bf16.mxu1 %v10947_v50  ;;  %v6759_v54 = vpack.c.bf16 %v6741_v22, %v6740_v40  ;;  %v7067_v59 = vpack.c.bf16 %v7051_v13, %v7050_v34  ;;  %v7352_v40 = vld [vmem:[#allocation3 + $0x16a] sm:$0xff]  ;;  %v7353_v22 = vld [vmem:[#allocation3 + $0x172] sm:$0xff] }
 0x910   : > { %10055 = vmatpush3.bf16.msra.mxu1 %v10947_v50  ;;  %v7347_v50 = vld [vmem:[#allocation3 + $0x12a] sm:$0xff] }
 0x911   : > { %10220 = vmatprep.subr.bf16.mxu1 %v12841_v29 }
 0x913   : > { %10025 = vmatmul.mubr.bf16.gmra.mrb[52].mxu1 %v12679_v51  ;;  %v6761_v51 = vpack.c.bf16 %v6745_v11, %v6744_v14  ;;  %v13335_v11 = vld [vmem:[#allocation10_spill] sm:$0xff] }
 0x914   : > { %10028 = vmatprep.mubr.bf16.mxu1 %v6756_v15  ;;  %v7348_v15 = vld [vmem:[#allocation3 + $0x13a] sm:$0xff] }
 0x915   : > { %v7369_v10 = vpack.c.bf16 %v7349_v21, %v7348_v15 }
 0x91b   : > { %10029 = vmatmul.mubr.bf16.gmra.mrb[56].mxu1 %v6757_v7  ;;  %v7370_v7 = vpack.c.bf16 %v7351_v33, %v7350_v41  ;;  %v13346_v41 = vld [vmem:[#allocation21_spill] sm:$0xff] }
 0x91c   : > { %10032 = vmatprep.mubr.bf16.mxu1 %v6758_v37  ;;  %v10951_v37 = vld [vmem:[%s13237_s19 + $0x8] sm:$0xff]  }
 0x923   : > { %10033 = vmatmul.mubr.bf16.gmra.mrb[60].mxu1 %v6759_v54  ;;  %v13334_v54 = vld [vmem:[#allocation9_spill] sm:$0xff] }
 0x924   : > { %10036 = vmatprep.mubr.bf16.mxu1 %v12802_v60  ;;  %v7027_v60 = vld [vmem:[#allocation3 + $0x81] sm:$0xff] }
 0x925   : > { %v7055_v5 = vpack.c.bf16 %v7027_v60, %v7026_v36  ;;  %v7357_v36 = vld [vmem:[#allocation3 + $0x1a2] sm:$0xff] }
 0x92b   : > { %10037 = vmatmul.mubr.bf16.gmra.mrb[64].mxu1 %v6761_v51  ;;  %v7371_v51 = vpack.c.bf16 %v7353_v22, %v7352_v40 }
 0x92c   : > { %10056 = vmatprep.mubr.bf16.mxu1 %v7052_v61 }
 0x933   : > { %10057 = vmatmul.mubr.bf16.vlgmr.msra.gmra.mrb[36].mxu1 %v7053_v35 }
 0x934   : > { %10228 = vmatpush3.bf16.msra.mxu1 %v12841_v29  ;;  %10060 = vmatprep.mubr.bf16.mxu1 %v7054_v46  ;;  %v7032_v29 = vld [vmem:[#allocation3 + $0xc1] sm:$0xff] }
 0x935   : > { %10221 = vmatprep.subr.bf16.mxu1 %v12848_v12  ;;  %v7058_v18 = vpack.c.bf16 %v7033_v3, %v7032_v29  ;;  %v7356_v46 = vld [vmem:[#allocation3 + $0x19a] sm:$0xff] }
 0x936   : > { %v7373_v16 = vpack.c.bf16 %v7357_v36, %v7356_v46  ;;  %v13349_v46 = vld [vmem:[#allocation24_spill] sm:$0xff] }
 0x938   : > { %10229 = vmatpush3.bf16.msra.mxu1 %v12848_v12  ;;  %v7034_v12 = vld [vmem:[#allocation3 + $0xd9] sm:$0xff] }
 0x939   : > { %10222 = vmatprep.subr.bf16.mxu1 %v12857_v53 }
 0x93b   : > { %10061 = vmatmul.mubr.bf16.gmra.mrb[40].mxu1 %v7055_v5 }
 0x93c   : > { %10064 = vmatprep.mubr.bf16.mxu1 %v7056_v44  ;;  %10230 = vmatpush3.bf16.msra.mxu1 %v12857_v53  ;;  %v7059_v53 = vpack.c.bf16 %v7035_v30, %v7034_v12  ;;  %v13339_v44 = vld [vmem:[#allocation14_spill] sm:$0xff] }
 0x93d   : > { %10223 = vmatprep.subr.bf16.mxu1 %v12864_v4 }
 0x940   : > { %10231 = vmatpush3.bf16.msra.mxu1 %v12864_v4  ;;  %v7038_v4 = vld [vmem:[#allocation3 + $0x109] sm:$0xff] }
 0x941   : > { %10224 = vmatprep.subr.bf16.mxu1 %v12873_v52  ;;  %v7061_v8 = vpack.c.bf16 %v7039_v48, %v7038_v4 }
 0x943   : > { %10065 = vmatmul.mubr.bf16.gmra.mrb[44].mxu1 %v7057_v32 }
 0x944   : > { %10068 = vmatprep.mubr.bf16.mxu1 %v7058_v18  ;;  %10232 = vmatpush3.bf16.msra.mxu1 %v12873_v52  ;;  %v10950_v52 = vld [vmem:[%s13237_s19] sm:$0xff]  }
 0x945   : > { %10225 = vmatprep.subr.bf16.mxu1 %v12880_v45 }
 0x948   : > { %10233 = vmatpush3.bf16.msra.mxu1 %v12880_v45  ;;  %v7042_v45 = vld [vmem:[#allocation3 + $0x139] sm:$0xff] }
 0x949   : > { %10226 = vmatprep.subr.bf16.mxu1 %v12891_v56 }
 0x94b   : > { %10069 = vmatmul.mubr.bf16.gmra.mrb[48].mxu1 %v7059_v53  ;;  %v13341_v53 = vld [vmem:[#allocation16_spill] sm:$0xff] }
 0x94c   : > { %10072 = vmatprep.mubr.bf16.mxu1 %v7060_v19  ;;  %10234 = vmatpush3.bf16.msra.mxu1 %v12891_v56  ;;  %v7063_v56 = vpack.c.bf16 %v7043_v31, %v7042_v45 }
 0x94d   : > { %10227 = vmatprep.subr.bf16.mxu1 %v12898_v57 }
 0x950   : > { %10235 = vmatpush3.bf16.msra.mxu1 %v12898_v57  ;;  %v7346_v57 = vld [vmem:[#allocation3 + $0x122] sm:$0xff] }
 0x951   : > { %10136 = vmatprep.subr.bf16.mxu1 %v10950_v52  ;;  %v7368_v24 = vpack.c.bf16 %v7347_v50, %v7346_v57  ;;  %v13344_v57 = vld [vmem:[#allocation19_spill] sm:$0xff] }
 0x953   : > { %10073 = vmatmul.mubr.bf16.gmra.mrb[52].mxu1 %v7061_v8 }
 0x954   : > { %10076 = vmatprep.mubr.bf16.mxu1 %v7062_v28 }
 0x95b   : > { %10077 = vmatmul.mubr.bf16.gmra.mrb[56].mxu1 %v7063_v56 }
 0x95c   : > { %10080 = vmatprep.mubr.bf16.mxu1 %v7064_v27 }
 0x963   : > { %10081 = vmatmul.mubr.bf16.gmra.mrb[60].mxu1 %v7065_v23 }
 0x964   : > { %10084 = vmatprep.mubr.bf16.mxu1 %v12885_v9  ;;  %v13003_v9 = vld [vmem:[%s13235_s17] ss:$0 sm:$0xff] }
 0x965   : > { %v7639_v14 = vmul.f32 %v13003_v9, %v13334_v54  ;;  %v7640_v26 = vmul.f32 %v13003_v9, %v13335_v11  ;;  %v7641_v63 = vmul.f32 %v13003_v9, %v13336_v2  ;;  %v7642_v35 = vmul.f32 %v13003_v9, %v13337_v17  ;;  %v13348_v17 = vld [vmem:[#allocation23_spill] sm:$0xff] }
 0x966   : > { %v7643_v5 = vmul.f32 %v13003_v9, %v13338_v55  ;;  %v7644_v58 = vmul.f32 %v13003_v9, %v13339_v44  ;;  %v7645_v47 = vmul.f32 %v13003_v9, %v13340_v39  ;;  %v7646_v19 = vmul.f32 %v13003_v9, %v13341_v53  ;;  %v13350_v55 = vld [vmem:[#allocation25_spill] sm:$0xff]  ;;  %v13351_v44 = vld [vmem:[#allocation26_spill] sm:$0xff] }
 0x967   : > { %v7678_v61 = vadd.f32 %v13012_v49, %v7639_v14  ;;  %v7679_v6 = vadd.f32 %v13012_v49, %v7640_v26  ;;  %v7680_v29 = vadd.f32 %v13012_v49, %v7641_v63  ;;  %v7681_v3 = vadd.f32 %v13012_v49, %v7642_v35 }
 0x968   : > { %v7682_v18 = vadd.f32 %v13012_v49, %v7643_v5  ;;  %v7647_v20 = vmul.f32 %v13003_v9, %v13342_v1  ;;  %v7684_v31 = vadd.f32 %v13012_v49, %v7645_v47  ;;  %v7685_v38 = vadd.f32 %v13012_v49, %v7646_v19  ;;  %v13353_v1 = vld [vmem:[#allocation28_spill] sm:$0xff] }
 0x969   : > { %v7710_v60 = vmax.f32 %v7678_v61, 0.0  ;;  %v7711_v62 = vmax.f32 %v7679_v6, 0.0  ;;  %v7712_v12 = vmax.f32 %v7680_v29, 0.0  ;;  %v7713_v30 = vmax.f32 %v7681_v3, 0.0 }
 0x96a   : > { %v7714_v4 = vmax.f32 %v7682_v18, 0.0  ;;  %v7686_v27 = vadd.f32 %v13012_v49, %v7647_v20  ;;  %v7716_v34 = vmax.f32 %v7684_v31, 0.0  ;;  %v7717_v13 = vmax.f32 %v7685_v38, 0.0  ;;  %v13355_v38 = vld [vmem:[#allocation30_spill] sm:$0xff] }
 0x96b   : > { %10085 = vmatmul.mubr.bf16.gmra.mrb[64].mxu1 %v7067_v59  ;;  %v7742_v32 = vpack.c.bf16 %v7711_v62, %v7710_v60  ;;  %v7743_v45 = vpack.c.bf16 %v7713_v30, %v7712_v12  ;;  %v7649_v50 = vmul.f32 %v13003_v9, %v13344_v57  ;;  %v13345_v59 = vld [vmem:[#allocation20_spill] sm:$0xff]  ;;  %v7651_v33 = vmul.f32 %v13003_v9, %v13346_v41 }
 0x96c   : > { %10124 = vmatprep.mubr.bf16.mxu1 %v7368_v24  ;;  %v7650_v24 = vmul.f32 %v13003_v9, %v13345_v59  ;;  %v7718_v15 = vmax.f32 %v7686_v27, 0.0  ;;  %v7745_v40 = vpack.c.bf16 %v7717_v13, %v7716_v34  ;;  %v7653_v35 = vmul.f32 %v13003_v9, %v13348_v17 }
 0x96d   : > { %v7688_v22 = vadd.f32 %v13012_v49, %v7649_v50  ;;  %v7690_v26 = vadd.f32 %v13012_v49, %v7651_v33  ;;  %v7654_v36 = vmul.f32 %v13003_v9, %v13349_v46  ;;  %v7655_v5 = vmul.f32 %v13003_v9, %v13350_v55 }
 0x96e   : > { %v7689_v54 = vadd.f32 %v13012_v49, %v7650_v24  ;;  %v7692_v3 = vadd.f32 %v13012_v49, %v7653_v35  ;;  %v7658_v20 = vmul.f32 %v13003_v9, %v13353_v1  ;;  %v13363_v1 = vld [vmem:[#allocation38_spill] sm:$0xff] }
 0x96f   : > { %v7720_v2 = vmax.f32 %v7688_v22, 0.0  ;;  %v7722_v60 = vmax.f32 %v7690_v26, 0.0  ;;  %v7694_v12 = vadd.f32 %v13012_v49, %v7655_v5  ;;  %v13358_v26 = vld [vmem:[#allocation33_spill] sm:$0xff] }
 0x970   : > { %v7721_v63 = vmax.f32 %v7689_v54, 0.0  ;;  %v7724_v53 = vmax.f32 %v7692_v3, 0.0  ;;  %v7697_v13 = vadd.f32 %v13012_v49, %v7658_v20  ;;  %v7668_v20 = vmul.f32 %v13003_v9, %v13363_v1 }
 0x972   : > { %v7747_v29 = vpack.c.bf16 %v7721_v63, %v7720_v2  ;;  %v7729_v33 = vmax.f32 %v7697_v13, 0.0  ;;  %v13359_v2 = vld [vmem:[#allocation34_spill] sm:$0xff]  ;;  %v13364_v13 = vld [vmem:[#allocation39_spill] sm:$0xff] }
 0x973   : > { %10125 = vmatmul.mubr.bf16.vlgmr.msra.gmra.mrb[56].mxu1 %v7369_v10  ;;  %v13347_v10 = vld [vmem:[#allocation22_spill] sm:$0xff]  ;;  %v7664_v63 = vmul.f32 %v13003_v9, %v13359_v2 }
 0x974   : > { %10137 = vmatpush3.bf16.msra.mxu1 %v10950_v52  ;;  %10128 = vmatprep.mubr.bf16.mxu1 %v7370_v7  ;;  %v13343_v52 = vld [vmem:[#allocation18_spill] sm:$0xff]  ;;  %v7652_v7 = vmul.f32 %v13003_v9, %v13347_v10  ;;  %v13356_v10 = vld [vmem:[#allocation31_spill] sm:$0xff] }
 0x975   : > { %10138 = vmatprep.subr.bf16.mxu1 %v10951_v37  ;;  %v7648_v8 = vmul.f32 %v13003_v9, %v13343_v52  ;;  %v7726_v52 = vmax.f32 %v7694_v12, 0.0  ;;  %v7703_v5 = vadd.f32 %v13012_v49, %v7664_v63  ;;  %v13361_v12 = vld [vmem:[#allocation36_spill] sm:$0xff] }
 0x977   : > { %v7687_v0 = vadd.f32 %v13012_v49, %v7648_v8 }
 0x978   : > { %10139 = vmatpush3.bf16.msra.mxu1 %v10951_v37 }
 0x979   : > { %v7719_v21 = vmax.f32 %v7687_v0, 0.0 }
 0x97b   : > { %10129 = vmatmul.mubr.bf16.gmra.mrb[60].mxu1 %v7371_v51  ;;  %v7746_v11 = vpack.c.bf16 %v7719_v21, %v7718_v15  ;;  %v7691_v51 = vadd.f32 %v13012_v49, %v7652_v7  ;;  %v7661_v7 = vmul.f32 %v13003_v9, %v13356_v10 }
 0x97c   : > { %10132 = vmatprep.mubr.bf16.mxu1 %v12942_v42  ;;  %v7683_v42 = vadd.f32 %v13012_v49, %v7644_v58  ;;  %v7656_v58 = vmul.f32 %v13003_v9, %v13351_v44 }
 0x97d   : > { %v7723_v62 = vmax.f32 %v7691_v51, 0.0  ;;  %v7663_v51 = vmul.f32 %v13003_v9, %v13358_v26  ;;  %v7700_v46 = vadd.f32 %v13012_v49, %v7661_v7 }
 0x97e   : > { %v7715_v48 = vmax.f32 %v7683_v42, 0.0  ;;  %v7695_v30 = vadd.f32 %v13012_v49, %v7656_v58 }
 0x97f   : > { %v13038_v28 = vpop.f32.mrb[68].mxu0  ;;  %v7748_v42 = vpack.c.bf16 %v7723_v62, %v7722_v60  ;;  %v7702_v55 = vadd.f32 %v13012_v49, %v7663_v51 }
 0x980   : > { %v13042_v43 = vpop.f32.mrb[69].mxu0  ;;  %v7744_v56 = vpack.c.bf16 %v7715_v48, %v7714_v4  ;;  %v13352_v4 = vld [vmem:[#allocation27_spill] sm:$0xff]  ;;  %v7727_v8 = vmax.f32 %v7695_v30, 0.0  ;;  %v7666_v30 = vmul.f32 %v13003_v9, %v13361_v12 }
 0x981   : > { %v13046_v25 = vpop.f32.mrb[70].mxu0  ;;  %v7657_v48 = vmul.f32 %v13003_v9, %v13352_v4  ;;  %v13362_v4 = vld [vmem:[#allocation37_spill] sm:$0xff] }
 0x982   : > { %v13048_v23 = vpop.f32.mrb[71].mxu0  ;;  %v7750_v50 = vpack.c.bf16 %v7727_v8, %v7726_v52 }
 0x983   : > { %10133 = vmatmul.mubr.bf16.gmra.mrb[64].mxu1 %v7373_v16  ;;  %v7696_v34 = vadd.f32 %v13012_v49, %v7657_v48  ;;  %v7667_v48 = vmul.f32 %v13003_v9, %v13362_v4 }
 0x984   : > { %10140 = vmatprep.mubr.msk.bf16.mxu1 %vm805_vm0, %v7742_v32  ;;  %v7693_v32 = vadd.f32 %v13012_v49, %v7654_v36 }
 0x985   : > { %v7728_v41 = vmax.f32 %v7696_v34, 0.0 }
 0x986   : > { %v7725_v19 = vmax.f32 %v7693_v32, 0.0  ;;  %v13360_v32 = vld [vmem:[#allocation35_spill] sm:$0xff] }
 0x987   : > { %v7751_v35 = vpack.c.bf16 %v7729_v33, %v7728_v41 }
 0x988   : > { %v13060_v37 = vpop.f32.mrb[72].mxu0  ;;  %v7749_v0 = vpack.c.bf16 %v7725_v19, %v7724_v53  ;;  %v7734_v53 = vmax.f32 %v7702_v55, 0.0  ;;  %v7735_v19 = vmax.f32 %v7703_v5, 0.0 }
 0x989   : > { %v13064_v14 = vpop.f32.mrb[73].mxu0 }
 0x98a   : > { %v13068_v61 = vpop.f32.mrb[74].mxu0 }
 0x98b   : > { %10141 = vmatmul.mubr.msk.bf16.vlgmr.msra.gmra.mrb[68].mxu1 %vm805_vm0, %v7743_v45  ;;  %v13070_v6 = vpop.f32.mrb[75].mxu0  ;;  %v13354_v45 = vld [vmem:[#allocation29_spill] sm:$0xff] }
 0x98c   : > { %10144 = vmatprep.mubr.msk.bf16.mxu1 %vm805_vm0, %v7744_v56  ;;  %v7659_v31 = vmul.f32 %v13003_v9, %v13354_v45  ;;  %v7660_v56 = vmul.f32 %v13003_v9, %v13355_v38  ;;  %v7705_v45 = vadd.f32 %v13012_v49, %v7666_v30  ;;  %v7706_v38 = vadd.f32 %v13012_v49, %v7667_v48 }
 0x98e   : > { %v7698_v59 = vadd.f32 %v13012_v49, %v7659_v31  ;;  %v7699_v24 = vadd.f32 %v13012_v49, %v7660_v56  ;;  %v7754_v31 = vpack.c.bf16 %v7735_v19, %v7734_v53  ;;  %v7707_v56 = vadd.f32 %v13012_v49, %v7668_v20 }
 0x98f   : > { %v7737_v34 = vmax.f32 %v7705_v45, 0.0  ;;  %v7738_v41 = vmax.f32 %v7706_v38, 0.0 }
 0x990   : > { %v13082_v16 = vpop.f32.mrb[76].mxu0  ;;  %v7730_v54 = vmax.f32 %v7698_v59, 0.0  ;;  %v13365_v59 = vld [vmem:[#allocation40_spill] sm:$0xff]  ;;  %v7739_v33 = vmax.f32 %v7707_v56, 0.0 }
 0x991   : > { %v13086_v18 = vpop.f32.mrb[77].mxu0 }
 0x992   : > { %v13090_v39 = vpop.f32.mrb[78].mxu0 }
 0x993   : > { %10145 = vmatmul.mubr.msk.bf16.gmra.mrb[72].mxu1 %vm805_vm0, %v7745_v40  ;;  %v13092_v47 = vpop.f32.mrb[79].mxu0  ;;  %v13357_v40 = vld [vmem:[#allocation32_spill] sm:$0xff] }
 0x994   : > { %10148 = vmatprep.mubr.msk.bf16.mxu1 %vm805_vm0, %v7746_v11  ;;  %v7662_v22 = vmul.f32 %v13003_v9, %v13357_v40  ;;  %v7731_v11 = vmax.f32 %v7699_v24, 0.0  ;;  %v7670_v24 = vmul.f32 %v13003_v9, %v13365_v59 }
 0x996   : > { %v7701_v36 = vadd.f32 %v13012_v49, %v7662_v22  ;;  %v7752_v62 = vpack.c.bf16 %v7731_v11, %v7730_v54  ;;  %v7709_v40 = vadd.f32 %v13012_v49, %v7670_v24  ;;  %v7756_v22 = vpack.c.bf16 %v7739_v33, %v7738_v41 }
 0x998   : > { %v13104_v27 = vpop.f32.mrb[80].mxu0  ;;  %v7733_v3 = vmax.f32 %v7701_v36, 0.0  ;;  %v7741_v11 = vmax.f32 %v7709_v40, 0.0 }
 0x999   : > { %v13108_v57 = vpop.f32.mrb[81].mxu0 }
 0x99a   : > { %v13112_v15 = vpop.f32.mrb[82].mxu0 }
 0x99b   : > { %10149 = vmatmul.mubr.msk.bf16.gmra.mrb[76].mxu1 %vm805_vm0, %v7747_v29  ;;  %v13114_v21 = vpop.f32.mrb[83].mxu0  ;;  %v7732_v29 = vmax.f32 %v7700_v46, 0.0 }
 0x99c   : > { %10152 = vmatprep.mubr.msk.bf16.mxu1 %vm805_vm0, %v7748_v42  ;;  %v7665_v42 = vmul.f32 %v13003_v9, %v13360_v32 }
 0x99d   : > { %v7753_v52 = vpack.c.bf16 %v7733_v3, %v7732_v29 }
 0x99e   : > { %v7704_v8 = vadd.f32 %v13012_v49, %v7665_v42 }
 0x9a0   : > { %v13126_v17 = vpop.f32.mrb[84].mxu0 }
 0x9a1   : > { %v13130_v60 = vpop.f32.mrb[85].mxu0 }
 0x9a2   : > { %v13134_v44 = vpop.f32.mrb[86].mxu0 }
 0x9a3   : > { %10153 = vmatmul.mubr.msk.bf16.gmra.mrb[80].mxu1 %vm805_vm0, %v7749_v0  ;;  %v13136_v58 = vpop.f32.mrb[87].mxu0  ;;  %v7736_v0 = vmax.f32 %v7704_v8, 0.0 }
 0x9a4   : > { %10156 = vmatprep.mubr.msk.bf16.mxu1 %vm805_vm0, %v7750_v50  ;;  %v7669_v50 = vmul.f32 %v13003_v9, %v13364_v13 }
 0x9a5   : > { %v7755_v10 = vpack.c.bf16 %v7737_v34, %v7736_v0 }
 0x9a6   : > { %v7708_v7 = vadd.f32 %v13012_v49, %v7669_v50 }
 0x9a8   : > { %v7740_v54 = vmax.f32 %v7708_v7, 0.0 }
 0x9aa   : > { %v7757_v26 = vpack.c.bf16 %v7741_v11, %v7740_v54 }
 0x9ab   : > { %10157 = vmatmul.mubr.msk.bf16.gmra.mrb[84].mxu1 %vm805_vm0, %v7751_v35 }
 0x9ac   : > { %10160 = vmatprep.mubr.msk.bf16.mxu1 %vm805_vm0, %v7752_v62 }
 0x9b3   : > { %10161 = vmatmul.mubr.msk.bf16.gmra.mrb[56].mxu1 %vm805_vm0, %v7753_v52 }
 0x9b4   : > { %10164 = vmatprep.mubr.msk.bf16.mxu1 %vm805_vm0, %v7754_v31 }
 0x9bb   : > { %10165 = vmatmul.mubr.msk.bf16.gmra.mrb[60].mxu1 %vm805_vm0, %v7755_v10 }
 0x9bc   : > { %10168 = vmatprep.mubr.msk.bf16.mxu1 %vm805_vm0, %v7756_v22 }
 0x9c3   : > { %10169 = vmatmul.mubr.msk.bf16.gmra.mrb[64].mxu1 %vm805_vm0, %v7757_v26 }
 0xa06   : > { %v10058_v9 = vpop.f32.mrb[36].mxu1 }
 0xa07   : > { %v10236_v51 = vadd.f32 %v13038_v28, %v10058_v9  ;;  %v7167_v2 = vpop.f32.mrb[37].mxu1 }
 0xa08   : > { %v10238_v63 = vadd.f32 %v13042_v43, %v7167_v2  ;;  %v10059_v35 = vpop.f32.mrb[38].mxu1 }
 0xa09   : > { %v10240_v46 = vadd.f32 %v13046_v25, %v10059_v35  ;;  %v7170_v49 = vpop.f32.mrb[39].mxu1 }
 0xa0a   : > { %v10242_v36 = vadd.f32 %v13048_v23, %v7170_v49 }
 0xa0e   : > { %v10062_v62 = vpop.f32.mrb[40].mxu1 }
 0xa0f   : > { %v10244_v55 = vadd.f32 %v13060_v37, %v10062_v62  ;;  %v7183_v5 = vpop.f32.mrb[41].mxu1 }
 0xa10   : > { %v10246_v29 = vadd.f32 %v13064_v14, %v7183_v5  ;;  %v10063_v3 = vpop.f32.mrb[42].mxu1 }
 0xa11   : > { %v10248_v32 = vadd.f32 %v13068_v61, %v10063_v3  ;;  %v7186_v42 = vpop.f32.mrb[43].mxu1 }
 0xa12   : > { %v10250_v28 = vadd.f32 %v13070_v6, %v7186_v42 }
 0xa16   : > { %v10066_v12 = vpop.f32.mrb[44].mxu1 }
 0xa17   : > { %v10252_v43 = vadd.f32 %v13082_v16, %v10066_v12  ;;  %v7199_v30 = vpop.f32.mrb[45].mxu1 }
 0xa18   : > { %v10254_v25 = vadd.f32 %v13086_v18, %v7199_v30  ;;  %v10067_v53 = vpop.f32.mrb[46].mxu1 }
 0xa19   : > { %v10256_v23 = vadd.f32 %v13090_v39, %v10067_v53  ;;  %v7202_v19 = vpop.f32.mrb[47].mxu1 }
 0xa1a   : > { %v10258_v37 = vadd.f32 %v13092_v47, %v7202_v19 }
 0xa1e   : > { %v10070_v4 = vpop.f32.mrb[48].mxu1 }
 0xa1f   : > { %v10260_v14 = vadd.f32 %v13104_v27, %v10070_v4  ;;  %v7215_v48 = vpop.f32.mrb[49].mxu1 }
 0xa20   : > { %v10262_v61 = vadd.f32 %v13108_v57, %v7215_v48  ;;  %v10071_v1 = vpop.f32.mrb[50].mxu1 }
 0xa21   : > { %v10264_v6 = vadd.f32 %v13112_v15, %v10071_v1  ;;  %v7218_v16 = vpop.f32.mrb[51].mxu1 }
 0xa22   : > { %v10266_v20 = vadd.f32 %v13114_v21, %v7218_v16 }
 0xa26   : > { %v10074_v18 = vpop.f32.mrb[52].mxu1 }
 0xa27   : > { %v10268_v39 = vadd.f32 %v13126_v17, %v10074_v18  ;;  %v7231_v52 = vpop.f32.mrb[53].mxu1 }
 0xa28   : > { %v10270_v47 = vadd.f32 %v13130_v60, %v7231_v52  ;;  %v10075_v27 = vpop.f32.mrb[54].mxu1 }
 0xa29   : > { %v10272_v8 = vadd.f32 %v13134_v44, %v10075_v27  ;;  %v7234_v57 = vpop.f32.mrb[55].mxu1 }
 0xa2a   : > { %v10274_v45 = vadd.f32 %v13136_v58, %v7234_v57 }
 0xa5e   : > { %v10142_v15 = vpop.f32.mrb[68].mxu1 }
 0xa5f   : > { %v10237_v31 = vadd.f32 %v10236_v51, %v10142_v15  ;;  %v7856_v38 = vpop.f32.mrb[69].mxu1 }
 0xa60   : > { %v10239_v21 = vadd.f32 %v10238_v63, %v7856_v38  ;;  %v10143_v56 = vpop.f32.mrb[70].mxu1 }
 0xa61   : > { %8017 = vst [vmem:[%s11110_s22 + $0x10] sm:$0xff] %v10237_v31  ;;  %v10241_v17 = vadd.f32 %v10240_v46, %v10143_v56  ;;  %v7859_v0 = vpop.f32.mrb[71].mxu1 }
 0xa62   : > { %8015 = vst [vmem:[%s11110_s22] sm:$0xff] %v10239_v21  ;;  %v10243_v60 = vadd.f32 %v10242_v36, %v7859_v0 }
 0xa63   : > { %8018 = vst [vmem:[%s11110_s22 + $0x18] sm:$0xff] %v10241_v17 }
 0xa64   : > { %8016 = vst [vmem:[%s11110_s22 + $0x8] sm:$0xff] %v10243_v60 }
 0xa66   : > { %v10146_v44 = vpop.f32.mrb[72].mxu1 }
 0xa67   : > { %v10245_v34 = vadd.f32 %v10244_v55, %v10146_v44  ;;  %v7872_v58 = vpop.f32.mrb[73].mxu1 }
 0xa68   : > { %v10247_v13 = vadd.f32 %v10246_v29, %v7872_v58  ;;  %v10147_v50 = vpop.f32.mrb[74].mxu1 }
 0xa69   : > { %8021 = vst [vmem:[%s11110_s22 + $0x30] sm:$0xff] %v10245_v34  ;;  %v10249_v59 = vadd.f32 %v10248_v32, %v10147_v50  ;;  %v7875_v24 = vpop.f32.mrb[75].mxu1 }
 0xa6a   : > { %8019 = vst [vmem:[%s11110_s22 + $0x20] sm:$0xff] %v10247_v13  ;;  %v10251_v41 = vadd.f32 %v10250_v28, %v7875_v24 }
 0xa6b   : > { %8022 = vst [vmem:[%s11110_s22 + $0x38] sm:$0xff] %v10249_v59 }
 0xa6c   : > { %8020 = vst [vmem:[%s11110_s22 + $0x28] sm:$0xff] %v10251_v41 }
 0xa6e   : > { %v10150_v33 = vpop.f32.mrb[76].mxu1 }
 0xa6f   : > { %v10253_v10 = vadd.f32 %v10252_v43, %v10150_v33  ;;  %v7888_v7 = vpop.f32.mrb[77].mxu1 }
 0xa70   : > { %v10255_v40 = vadd.f32 %v10254_v25, %v7888_v7  ;;  %v10151_v22 = vpop.f32.mrb[78].mxu1 }
 0xa71   : > { %8025 = vst [vmem:[%s11110_s22 + $0x50] sm:$0xff] %v10253_v10  ;;  %v10257_v54 = vadd.f32 %v10256_v23, %v10151_v22  ;;  %v7891_v11 = vpop.f32.mrb[79].mxu1 }
 0xa72   : > { %8023 = vst [vmem:[%s11110_s22 + $0x40] sm:$0xff] %v10255_v40  ;;  %v10259_v26 = vadd.f32 %v10258_v37, %v7891_v11 }
 0xa73   : > { %8026 = vst [vmem:[%s11110_s22 + $0x58] sm:$0xff] %v10257_v54 }
 0xa74   : > { %8024 = vst [vmem:[%s11110_s22 + $0x48] sm:$0xff] %v10259_v26 }
 0xa76   : > { %v10154_v9 = vpop.f32.mrb[80].mxu1 }
 0xa77   : > { %v10261_v51 = vadd.f32 %v10260_v14, %v10154_v9  ;;  %v7904_v2 = vpop.f32.mrb[81].mxu1 }
 0xa78   : > { %v10263_v63 = vadd.f32 %v10262_v61, %v7904_v2  ;;  %v10155_v35 = vpop.f32.mrb[82].mxu1 }
 0xa79   : > { %8029 = vst [vmem:[%s11110_s22 + $0x70] sm:$0xff] %v10261_v51  ;;  %v10265_v46 = vadd.f32 %v10264_v6, %v10155_v35  ;;  %v7907_v49 = vpop.f32.mrb[83].mxu1 }
 0xa7a   : > { %8027 = vst [vmem:[%s11110_s22 + $0x60] sm:$0xff] %v10263_v63  ;;  %v10267_v36 = vadd.f32 %v10266_v20, %v7907_v49 }
 0xa7b   : > { %8030 = vst [vmem:[%s11110_s22 + $0x78] sm:$0xff] %v10265_v46 }
 0xa7c   : > { %8028 = vst [vmem:[%s11110_s22 + $0x68] sm:$0xff] %v10267_v36 }
 0xa7e   : > { %v10158_v62 = vpop.f32.mrb[84].mxu1 }
 0xa7f   : > { %v10269_v55 = vadd.f32 %v10268_v39, %v10158_v62  ;;  %v7920_v5 = vpop.f32.mrb[85].mxu1 }
 0xa80   : > { %v10271_v29 = vadd.f32 %v10270_v47, %v7920_v5  ;;  %v10159_v3 = vpop.f32.mrb[86].mxu1 }
 0xa81   : > { %8033 = vst [vmem:[%s11110_s22 + $0x90] sm:$0xff] %v10269_v55  ;;  %v10273_v32 = vadd.f32 %v10272_v8, %v10159_v3  ;;  %v7923_v42 = vpop.f32.mrb[87].mxu1 }
 0xa82   : > { %8031 = vst [vmem:[%s11110_s22 + $0x80] sm:$0xff] %v10271_v29  ;;  %v10275_v28 = vadd.f32 %v10274_v45, %v7923_v42 }
 0xa83   : > { %8034 = vst [vmem:[%s11110_s22 + $0x98] sm:$0xff] %v10273_v32 }
 0xa84   : > { %8032 = vst [vmem:[%s11110_s22 + $0x88] sm:$0xff] %v10275_v28 }
 0xa86   : > { %v10162_v12 = vpop.f32.mrb[56].mxu1 }
 0xa87   : > { %8037 = vst [vmem:[%s11110_s22 + $0xb0] sm:$0xff] %v10162_v12  ;;  %v7936_v43 = vpop.f32.mrb[57].mxu1 }
 0xa88   : > { %8035 = vst [vmem:[%s11110_s22 + $0xa0] sm:$0xff] %v7936_v43  ;;  %v10163_v30 = vpop.f32.mrb[58].mxu1 }
 0xa89   : > { %8038 = vst [vmem:[%s11110_s22 + $0xb8] sm:$0xff] %v10163_v30  ;;  %v7939_v25 = vpop.f32.mrb[59].mxu1 }
 0xa8a   : > { %8036 = vst [vmem:[%s11110_s22 + $0xa8] sm:$0xff] %v7939_v25 }
 0xa8e   : > { %v10166_v53 = vpop.f32.mrb[60].mxu1 }
 0xa8f   : > { %8041 = vst [vmem:[%s11110_s22 + $0xd0] sm:$0xff] %v10166_v53  ;;  %v7952_v23 = vpop.f32.mrb[61].mxu1 }
 0xa90   : > { %8039 = vst [vmem:[%s11110_s22 + $0xc0] sm:$0xff] %v7952_v23  ;;  %v10167_v19 = vpop.f32.mrb[62].mxu1 }
 0xa91   : > { %8042 = vst [vmem:[%s11110_s22 + $0xd8] sm:$0xff] %v10167_v19  ;;  %v7955_v37 = vpop.f32.mrb[63].mxu1 }
 0xa92   : > { %8040 = vst [vmem:[%s11110_s22 + $0xc8] sm:$0xff] %v7955_v37 }
 0xa96   : > { %v10170_v4 = vpop.f32.mrb[64].mxu1 }
 0xa97   : > { %8045 = vst [vmem:[%s11110_s22 + $0xf0] sm:$0xff] %v10170_v4  ;;  %v7968_v14 = vpop.f32.mrb[65].mxu1 }
 0xa98   : > { %8043 = vst [vmem:[%s11110_s22 + $0xe0] sm:$0xff] %v7968_v14  ;;  %v10171_v48 = vpop.f32.mrb[66].mxu1 }
 0xa99   : > { %8046 = vst [vmem:[%s11110_s22 + $0xf8] sm:$0xff] %v10171_v48  ;;  %v7971_v61 = vpop.f32.mrb[67].mxu1 }
 0xa9a   : > { %8044 = vst [vmem:[%s11110_s22 + $0xe8] sm:$0xff] %v7971_v61 }
 0xa9b PF: > { %s30_s1 = sadd.s32 1, %s10962_s1  }
 0xa9c   : > { %p27_p4 = scmp.ge.s32.totalorder %s30_s1, 4  }
 0xa9e   :  { %29 = sbr.rel (!%p27_p4) target bundleno = 6 (0x6), region = 233 }
 0xaa5   :  { %8068 = vsyncmov [#allocation4] }
 0xaa8   :  { %s8069_s25 = vpop.sfrf %8068 }
 0xaa9   :  { %p8589_p5 = scmp.ne.s32.totalorder %s8069_s25, 0 }
 0xaab   :  { %8073 = shalt.err (%p8589_p5)  }

</bundles_post_ra>
